<compile_context>
chip_gen: v5e
topology: v5e:2x2
jax: 0.10.0
libtpu: 0.0.40
codegen_flags: <defaults>
</compile_context>

<pallas_src>
import jax
import jax.numpy as jnp
import numpy as np
from jax.experimental import pallas as pl
from jax.experimental.pallas import tpu as pltpu


# ----------------------------------------------------------------------------
# Host-side helpers (plain numpy / XLA — layout plumbing, not kernel compute).
# ----------------------------------------------------------------------------
def _bilinear_matrix_np(n_in: int, n_out: int) -> np.ndarray:
    """(n_out, n_in) interpolation matrix for bilinear, align_corners=True."""
    if n_out == 1:
        m = np.zeros((1, n_in), np.float32)
        m[0, 0] = 1.0
        return m
    src = np.arange(n_out, dtype=np.float64) * (n_in - 1) / (n_out - 1)
    i0 = np.clip(np.floor(src).astype(np.int64), 0, n_in - 1)
    i1 = np.clip(i0 + 1, 0, n_in - 1)
    frac = (src - i0).astype(np.float32)
    m = np.zeros((n_out, n_in), np.float32)
    m[np.arange(n_out), i0] += 1.0 - frac
    m[np.arange(n_out), i1] += frac
    return m


def _pick_channel_block(C: int, H: int, cin_block, max_block: int = 128) -> int:
    """Choose an input-channel block size that keeps block shapes layout-legal."""
    if cin_block is None:
        if C <= max_block:
            cin_block = C
        else:
            cin_block = next((d for d in range(max_block, 7, -1)
                              if C % d == 0 and d % 8 == 0), C)
    assert C % cin_block == 0, "cin_block must divide C"
    if cin_block != C and (cin_block % 8 != 0 or (cin_block * H) % 8 != 0):
        cin_block = C   # fall back to a single block rather than violate (8,128)
    return cin_block


def _vmem_limit_bytes(C, Cb, H, W, itemsize, with_conv):
    """Rough per-step VMEM budget (double-buffered blocks + scratch) + headroom."""
    hout, wout = 2 * H, 2 * W
    hw = hout * wout
    n = 2 * Cb * H * W * 4                                   # input blocks
    n += 2 * ((hout + 2) * H + W * (wout + 2)) * itemsize    # interp matrices
    n += 4 * Cb * (hout + 2) * (wout + 2) * 4                # upsample temporaries
    if with_conv:
        n += 2 * C * hw * 4                                  # output blocks
        n += 2 * C * (9 * Cb + 1) * itemsize                 # weight blocks
        n += (9 * Cb + 1) * hw * 4 + C * hw * 4              # act + acc scratch
    else:
        n += 2 * Cb * hw * 4                                 # output blocks
    return int(min(max(2 * n + (4 << 20), 32 << 20), 64 << 20))


# ----------------------------------------------------------------------------
# Kernels
# ----------------------------------------------------------------------------
def _upsample_conv_kernel(x_ref, ahp_ref, awpT_ref, w_ref, o_ref,
                          act_ref, acc_ref):
    # x_ref   : (1, Cb*H, W)          input channel block, rows ordered (c, h)
    # ahp_ref : (Hout+2, H)           row-interp matrix, zero first/last row
    # awpT_ref: (W, Wout+2)           col-interp matrix, zero first/last col
    # w_ref   : (1, C_out, 9*Cb + 1)  tap-major conv weights (+ bias column)
    # o_ref   : (1, C_out, Hout*Wout) lane-dense output
    # act_ref : (9*Cb + 1, Hout*Wout) f32 im2col scratch (+ ones row)
    # acc_ref : (C_out, Hout*Wout)    f32 accumulator scratch
    hp, h_in = ahp_ref.shape
    w_in, wp = awpT_ref.shape
    hout, wout = hp - 2, wp - 2
    hw = hout * wout
    cb = x_ref.shape[1] // h_in
    cdt = awpT_ref.dtype                    # matmul operand dtype (f32 / bf16)

    blk = pl.program_id(1)

    @pl.when(blk == 0)
    def _init():
        acc_ref[...] = jnp.zeros_like(acc_ref)

    # ---- bilinear upsample of this channel block (two MXU matmuls) ---------
    # W pass: (Cb*H, W) @ (W, Wout+2); the zero columns of awpT give the
    # left/right halo of the 3x3 'same' conv for free.
    xb = x_ref[0].astype(cdt)
    t = jnp.dot(xb, awpT_ref[...], preferred_element_type=jnp.float32)
    # H pass: contraction over H; the zero rows of ahp give the top/bottom
    # halo.  `up` is already the zero-padded activation -> no pad buffer and
    # no extra full-size copy.
    t = t.reshape(cb, h_in, wp).astype(cdt)
    up = jnp.einsum('ih,chj->cij', ahp_ref[...], t,
                    preferred_element_type=jnp.float32)   # (Cb, Hout+2, Wout+2)

    # ---- im2col: 9 shifted views stacked on the contraction axis -----------
    for ky in range(3):
        for kx in range(3):
            ti = ky * 3 + kx
            tap = up[:, ky:ky + hout, kx:kx + wout]        # (Cb, Hout, Wout)
            act_ref[ti * cb:(ti + 1) * cb, :] = tap.reshape(cb, hw)
    # Constant ones-row: multiplied by the bias column of the weight slab
    # (non-zero only for input-channel block 0), so bias is fused into the dot.
    act_ref[9 * cb:9 * cb + 1, :] = jnp.ones((1, hw), act_ref.dtype)

    # ---- fused conv matmul: (C_out, 9*Cb+1) @ (9*Cb+1, Hout*Wout) -----------
    acc_ref[...] += jnp.dot(w_ref[0], act_ref[...].astype(cdt),
                            preferred_element_type=jnp.float32)

    @pl.when(blk == pl.num_programs(1) - 1)
    def _finalize():
        o_ref[0] = acc_ref[...].astype(o_ref.dtype)


def _upsample_kernel(x_ref, ah_ref, awT_ref, o_ref):
    # Upsample-only path (with_conv=False); channel blocks are independent.
    hout, h_in = ah_ref.shape
    w_in, wout = awT_ref.shape
    cb = x_ref.shape[1] // h_in
    cdt = awT_ref.dtype

    xb = x_ref[0].astype(cdt)                                     # (Cb*H, W)
    t = jnp.dot(xb, awT_ref[...], preferred_element_type=jnp.float32)
    t = t.reshape(cb, h_in, wout).astype(cdt)
    up = jnp.einsum('ih,chj->cij', ah_ref[...], t,
                    preferred_element_type=jnp.float32)           # (Cb,Hout,Wout)
    o_ref[0] = up.reshape(cb, hout * wout).astype(o_ref.dtype)    # lane-dense


# ----------------------------------------------------------------------------
# Wrapper
# ----------------------------------------------------------------------------
def upsample_forward(x, conv_w=None, conv_b=None, *, with_conv=True,
                     cin_block=None, compute_dtype=jnp.float32):
    """Pallas equivalent of Upsample.forward.  x: (B, C, H, W)."""
    B, C, H, W = x.shape
    hout, wout = 2 * H, 2 * W
    hw = hout * wout
    Cb = _pick_channel_block(C, H, cin_block)
    n_blk = C // Cb

    # (B, C, H, W) -> (B, C*H, W): pure view, rows ordered (c, h).
    x2d = x.reshape(B, C * H, W)
    x_spec = pl.BlockSpec((1, Cb * H, W), lambda b, k: (b, k, 0))

    out_shape = jax.ShapeDtypeStruct((B, C, hw), x.dtype)
    vmem_limit = _vmem_limit_bytes(C, Cb, H, W,
                                   jnp.dtype(compute_dtype).itemsize, with_conv)

    if with_conv:
        assert conv_w is not None and conv_b is not None
        # Zero-bordered interpolation matrices (halo produced by the matmuls).
        ahp = np.pad(_bilinear_matrix_np(H, hout), ((1, 1), (0, 0)))     # (Hout+2, H)
        awpT = np.pad(_bilinear_matrix_np(W, wout), ((1, 1), (0, 0))).T  # (W, Wout+2)
        ahp = jnp.asarray(ahp, dtype=compute_dtype)
        awpT = jnp.asarray(awpT, dtype=compute_dtype)

        # Weight re-layout: (C_out, C_in, 3, 3) -> (n_blk, C_out, 9*Cb) so the
        # VMEM block has lane/sublane-friendly trailing dims and each tap is a
        # contiguous slab; append the bias as one extra weight column (block 0).
        w_blk = jnp.transpose(conv_w.reshape(C, n_blk, Cb, 3, 3),
                              (1, 0, 3, 4, 2)).reshape(n_blk, C, 9 * Cb)
        bias_col = jnp.zeros((n_blk, C, 1), conv_w.dtype).at[0, :, 0].set(conv_b)
        w_blk = jnp.concatenate([w_blk, bias_col], axis=-1).astype(compute_dtype)

        out = pl.pallas_call(
            _upsample_conv_kernel,
            out_shape=out_shape,
            grid=(B, n_blk),
            in_specs=[
                x_spec,
                pl.BlockSpec((hout + 2, H), lambda b, k: (0, 0)),
                pl.BlockSpec((W, wout + 2), lambda b, k: (0, 0)),
                pl.BlockSpec((1, C, 9 * Cb + 1), lambda b, k: (k, 0, 0)),
            ],
            out_specs=pl.BlockSpec((1, C, hw), lambda b, k: (b, 0, 0)),
            scratch_shapes=[
                pltpu.VMEM((9 * Cb + 1, hw), jnp.float32),   # im2col activations
                pltpu.VMEM((C, hw), jnp.float32),            # conv accumulator
            ],
            compiler_params=pltpu.CompilerParams(
                dimension_semantics=("parallel", "arbitrary"),
                vmem_limit_bytes=vmem_limit),
        )(x2d, ahp, awpT, w_blk)
    else:
        ah = jnp.asarray(_bilinear_matrix_np(H, hout), dtype=compute_dtype)
        awT = jnp.asarray(_bilinear_matrix_np(W, wout).T, dtype=compute_dtype)
        out = pl.pallas_call(
            _upsample_kernel,
            out_shape=out_shape,
            grid=(B, n_blk),
            in_specs=[
                x_spec,
                pl.BlockSpec((hout, H), lambda b, k: (0, 0)),
                pl.BlockSpec((W, wout), lambda b, k: (0, 0)),
            ],
            out_specs=pl.BlockSpec((1, Cb, hw), lambda b, k: (b, k, 0)),
            compiler_params=pltpu.CompilerParams(
                dimension_semantics=("parallel", "parallel"),
                vmem_limit_bytes=vmem_limit),
        )(x2d, ah, awT)

    return out.reshape(B, C, hout, wout)


# ----------------------------------------------------------------------------
# Plain-JAX reference (for correctness checking only)
# ----------------------------------------------------------------------------
def _reference(x, conv_w, conv_b, with_conv):
    B, C, H, W = x.shape
    ah = jnp.asarray(_bilinear_matrix_np(H, 2 * H))
    aw = jnp.asarray(_bilinear_matrix_np(W, 2 * W))
    up = jnp.einsum('ih,bchw,jw->bcij', ah, x, aw)
    if not with_conv:
        return up
    out = jax.lax.conv_general_dilated(
        up, conv_w, window_strides=(1, 1), padding=((1, 1), (1, 1)),
        dimension_numbers=('NCHW', 'OIHW', 'NCHW'))
    return out + conv_b[None, :, None, None]


if __name__ == "__main__":
    B, C, H, W = 2, 4, 16, 16
    key = jax.random.PRNGKey(0)
    kx, kw, kb = jax.random.split(key, 3)

    x = jax.random.normal(kx, (B, C, H, W), dtype=jnp.float32)
    # Deterministic synthetic Conv2d(C, C, 3, 3) params (not a checkpoint).
    fan_in = C * 3 * 3
    bound = 1.0 / np.sqrt(fan_in)
    conv_w = jax.random.uniform(kw, (C, C, 3, 3), jnp.float32, -bound, bound)
    conv_b = jax.random.uniform(kb, (C,), jnp.float32, -bound, bound)

    # with_conv=True, f32 compute (strict check)
    out = jax.block_until_ready(upsample_forward(x, conv_w, conv_b,
                                                 with_conv=True))
    ref = _reference(x, conv_w, conv_b, with_conv=True)
    assert out.shape == (B, C, 2 * H, 2 * W)
    np.testing.assert_allclose(np.asarray(out), np.asarray(ref),
                               rtol=5e-4, atol=5e-4)

    # with_conv=False path
    out2 = jax.block_until_ready(upsample_forward(x, with_conv=False))
    ref2 = _reference(x, None, None, with_conv=False)
    np.testing.assert_allclose(np.asarray(out2), np.asarray(ref2),
                               rtol=5e-4, atol=5e-4)

    # exercise the input-channel-block reduction (n_blk > 1) path
    B2, C2, H2, W2 = 1, 16, 8, 8
    k2x, k2w, k2b = jax.random.split(jax.random.PRNGKey(1), 3)
    x2 = jax.random.normal(k2x, (B2, C2, H2, W2), jnp.float32)
    w2 = jax.random.uniform(k2w, (C2, C2, 3, 3), jnp.float32, -0.1, 0.1)
    b2 = jax.random.uniform(k2b, (C2,), jnp.float32, -0.1, 0.1)
    out3 = jax.block_until_ready(
        upsample_forward(x2, w2, b2, with_conv=True, cin_block=8))
    ref3 = _reference(x2, w2, b2, with_conv=True)
    np.testing.assert_allclose(np.asarray(out3), np.asarray(ref3),
                               rtol=5e-4, atol=5e-4)

    # bf16 MXU-operand path (f32 accumulation) -- loose tolerance
    out4 = jax.block_until_ready(
        upsample_forward(x, conv_w, conv_b, with_conv=True,
                         compute_dtype=jnp.bfloat16))
    np.testing.assert_allclose(np.asarray(out4), np.asarray(ref),
                               rtol=5e-2, atol=5e-2)

    print("KERNEL_OK")
</pallas_src>

<mosaic_0001>
module attributes {stable_mosaic.version = 11 : i64} {
  func.func @_upsample_conv_kernel(%arg0: i32, %arg1: i32, %arg2: memref<1x64x16xf32, #tpu.memory_space<vmem>>, %arg3: memref<34x16xf32, #tpu.memory_space<vmem>>, %arg4: memref<16x34xf32, #tpu.memory_space<vmem>>, %arg5: memref<1x4x37xf32, #tpu.memory_space<vmem>>, %arg6: memref<1x4x1024xf32, #tpu.memory_space<vmem>>, %arg7: memref<37x1024xf32, #tpu.memory_space<vmem>>, %arg8: memref<4x1024xf32, #tpu.memory_space<vmem>>) attributes {dimension_semantics = [#tpu.dimension_semantics<parallel>, #tpu.dimension_semantics<arbitrary>], iteration_bounds = array<i64: 2, 1>, scalar_prefetch = 0 : i64, scratch_operands = 2 : i64, tpu.core_type = #tpu.core_type<tc>, window_params = [{transform_indices = @transform_0, window_bounds = array<i64: 1, 64, 16>}, {pipeline_mode = #tpu.pipeline_mode<synchronous>, transform_indices = @transform_1, window_bounds = array<i64: 34, 16>}, {pipeline_mode = #tpu.pipeline_mode<synchronous>, transform_indices = @transform_2, window_bounds = array<i64: 16, 34>}, {transform_indices = @transform_3, window_bounds = array<i64: 1, 4, 37>}, {transform_indices = @transform_4, window_bounds = array<i64: 1, 4, 1024>}]} {
    %c0_i32 = arith.constant 0 : i32
    %0 = arith.cmpi eq, %arg1, %c0_i32 : i32
    %1 = arith.extui %0 : i1 to i32
    %c0_i32_0 = arith.constant 0 : i32
    %2 = arith.cmpi ne, %1, %c0_i32_0 : i32
    scf.if %2 {
      %cst_32 = arith.constant 0.000000e+00 : f32
      %50 = vector.broadcast %cst_32 : f32 to vector<4x1024xf32>
      %c0_33 = arith.constant 0 : index
      %c0_34 = arith.constant 0 : index
      %51 = vector.load %arg8[%c0_33, %c0_34] : memref<4x1024xf32, #tpu.memory_space<vmem>>, vector<4x1024xf32>
      tpu.vector_store %arg8[%c0_33, %c0_34], %50 {strides = array<i32>} : memref<4x1024xf32, #tpu.memory_space<vmem>>, vector<4x1024xf32>,
    } else {
    }
    %c0 = arith.constant 0 : index
    %c0_1 = arith.constant 0 : index
    %c0_2 = arith.constant 0 : index
    %3 = vector.load %arg2[%c0, %c0_1, %c0_2] : memref<1x64x16xf32, #tpu.memory_space<vmem>>, vector<1x64x16xf32>
    %4 = vector.shape_cast %3 : vector<1x64x16xf32> to vector<64x16xf32>
    %c0_3 = arith.constant 0 : index
    %c0_4 = arith.constant 0 : index
    %5 = vector.load %arg4[%c0_3, %c0_4] : memref<16x34xf32, #tpu.memory_space<vmem>>, vector<16x34xf32>
    %cst = arith.constant dense<0.000000e+00> : vector<64x34xf32>
    %6 = tpu.matmul %4, %5, %cst {dimension_numbers = #tpu.dot_dimension_numbers<[1], [0], [0], [1], [0, 0, 1, 1], [], []>} : vector<64x16xf32>, vector<16x34xf32>, vector<64x34xf32> -> vector<64x34xf32>
    %7 = vector.shape_cast %6 : vector<64x34xf32> to vector<4x16x34xf32>
    %c0_5 = arith.constant 0 : index
    %c0_6 = arith.constant 0 : index
    %8 = vector.load %arg3[%c0_5, %c0_6] : memref<34x16xf32, #tpu.memory_space<vmem>>, vector<34x16xf32>
    "tpu.trace_start"() <{level = 10 : i32, message = "ih,chj->cij"}> : () -> ()
    %cst_7 = arith.constant dense<0.000000e+00> : vector<4x34x34xf32>
    %9 = tpu.matmul %7, %8, %cst_7 {dimension_numbers = #tpu.dot_dimension_numbers<[1], [1], [0, 2], [0], [0, 0, 0, 2, 1, 0], [], []>} : vector<4x16x34xf32>, vector<34x16xf32>, vector<4x34x34xf32> -> vector<4x34x34xf32>
    %10 = tpu.transpose %9, [0, 2, 1] : vector<4x34x34xf32> -> vector<4x34x34xf32>
    "tpu.trace_stop"() : () -> ()
    %11 = vector.extract_strided_slice %10 {offsets = [0, 0, 0], sizes = [4, 32, 32], strides = [1, 1, 1]} : vector<4x34x34xf32> to vector<4x32x32xf32>
    %12 = vector.shape_cast %11 : vector<4x32x32xf32> to vector<4x1024xf32>
    %c0_8 = arith.constant 0 : index
    %c0_9 = arith.constant 0 : index
    %13 = vector.load %arg7[%c0_8, %c0_9] : memref<37x1024xf32, #tpu.memory_space<vmem>>, vector<4x1024xf32>
    tpu.vector_store %arg7[%c0_8, %c0_9], %12 {strides = array<i32>} : memref<37x1024xf32, #tpu.memory_space<vmem>>, vector<4x1024xf32>,
    %14 = vector.extract_strided_slice %10 {offsets = [0, 0, 1], sizes = [4, 32, 32], strides = [1, 1, 1]} : vector<4x34x34xf32> to vector<4x32x32xf32>
    %15 = vector.shape_cast %14 : vector<4x32x32xf32> to vector<4x1024xf32>
    %c4 = arith.constant 4 : index
    %c0_10 = arith.constant 0 : index
    %16 = vector.load %arg7[%c4, %c0_10] : memref<37x1024xf32, #tpu.memory_space<vmem>>, vector<4x1024xf32>
    tpu.vector_store %arg7[%c4, %c0_10], %15 {strides = array<i32>} : memref<37x1024xf32, #tpu.memory_space<vmem>>, vector<4x1024xf32>,
    %17 = vector.extract_strided_slice %10 {offsets = [0, 0, 2], sizes = [4, 32, 32], strides = [1, 1, 1]} : vector<4x34x34xf32> to vector<4x32x32xf32>
    %18 = vector.shape_cast %17 : vector<4x32x32xf32> to vector<4x1024xf32>
    %c8 = arith.constant 8 : index
    %c0_11 = arith.constant 0 : index
    %19 = vector.load %arg7[%c8, %c0_11] : memref<37x1024xf32, #tpu.memory_space<vmem>>, vector<4x1024xf32>
    tpu.vector_store %arg7[%c8, %c0_11], %18 {strides = array<i32>} : memref<37x1024xf32, #tpu.memory_space<vmem>>, vector<4x1024xf32>,
    %20 = vector.extract_strided_slice %10 {offsets = [0, 1, 0], sizes = [4, 32, 32], strides = [1, 1, 1]} : vector<4x34x34xf32> to vector<4x32x32xf32>
    %21 = vector.shape_cast %20 : vector<4x32x32xf32> to vector<4x1024xf32>
    %c12 = arith.constant 12 : index
    %c0_12 = arith.constant 0 : index
    %22 = vector.load %arg7[%c12, %c0_12] : memref<37x1024xf32, #tpu.memory_space<vmem>>, vector<4x1024xf32>
    tpu.vector_store %arg7[%c12, %c0_12], %21 {strides = array<i32>} : memref<37x1024xf32, #tpu.memory_space<vmem>>, vector<4x1024xf32>,
    %23 = vector.extract_strided_slice %10 {offsets = [0, 1, 1], sizes = [4, 32, 32], strides = [1, 1, 1]} : vector<4x34x34xf32> to vector<4x32x32xf32>
    %24 = vector.shape_cast %23 : vector<4x32x32xf32> to vector<4x1024xf32>
    %c16 = arith.constant 16 : index
    %c0_13 = arith.constant 0 : index
    %25 = vector.load %arg7[%c16, %c0_13] : memref<37x1024xf32, #tpu.memory_space<vmem>>, vector<4x1024xf32>
    tpu.vector_store %arg7[%c16, %c0_13], %24 {strides = array<i32>} : memref<37x1024xf32, #tpu.memory_space<vmem>>, vector<4x1024xf32>,
    %26 = vector.extract_strided_slice %10 {offsets = [0, 1, 2], sizes = [4, 32, 32], strides = [1, 1, 1]} : vector<4x34x34xf32> to vector<4x32x32xf32>
    %27 = vector.shape_cast %26 : vector<4x32x32xf32> to vector<4x1024xf32>
    %c20 = arith.constant 20 : index
    %c0_14 = arith.constant 0 : index
    %28 = vector.load %arg7[%c20, %c0_14] : memref<37x1024xf32, #tpu.memory_space<vmem>>, vector<4x1024xf32>
    tpu.vector_store %arg7[%c20, %c0_14], %27 {strides = array<i32>} : memref<37x1024xf32, #tpu.memory_space<vmem>>, vector<4x1024xf32>,
    %29 = vector.extract_strided_slice %10 {offsets = [0, 2, 0], sizes = [4, 32, 32], strides = [1, 1, 1]} : vector<4x34x34xf32> to vector<4x32x32xf32>
    %30 = vector.shape_cast %29 : vector<4x32x32xf32> to vector<4x1024xf32>
    %c24 = arith.constant 24 : index
    %c0_15 = arith.constant 0 : index
    %31 = vector.load %arg7[%c24, %c0_15] : memref<37x1024xf32, #tpu.memory_space<vmem>>, vector<4x1024xf32>
    tpu.vector_store %arg7[%c24, %c0_15], %30 {strides = array<i32>} : memref<37x1024xf32, #tpu.memory_space<vmem>>, vector<4x1024xf32>,
    %32 = vector.extract_strided_slice %10 {offsets = [0, 2, 1], sizes = [4, 32, 32], strides = [1, 1, 1]} : vector<4x34x34xf32> to vector<4x32x32xf32>
    %33 = vector.shape_cast %32 : vector<4x32x32xf32> to vector<4x1024xf32>
    %c28 = arith.constant 28 : index
    %c0_16 = arith.constant 0 : index
    %34 = vector.load %arg7[%c28, %c0_16] : memref<37x1024xf32, #tpu.memory_space<vmem>>, vector<4x1024xf32>
    tpu.vector_store %arg7[%c28, %c0_16], %33 {strides = array<i32>} : memref<37x1024xf32, #tpu.memory_space<vmem>>, vector<4x1024xf32>,
    %35 = vector.extract_strided_slice %10 {offsets = [0, 2, 2], sizes = [4, 32, 32], strides = [1, 1, 1]} : vector<4x34x34xf32> to vector<4x32x32xf32>
    %36 = vector.shape_cast %35 : vector<4x32x32xf32> to vector<4x1024xf32>
    %c32 = arith.constant 32 : index
    %c0_17 = arith.constant 0 : index
    %37 = vector.load %arg7[%c32, %c0_17] : memref<37x1024xf32, #tpu.memory_space<vmem>>, vector<4x1024xf32>
    tpu.vector_store %arg7[%c32, %c0_17], %36 {strides = array<i32>} : memref<37x1024xf32, #tpu.memory_space<vmem>>, vector<4x1024xf32>,
    %cst_18 = arith.constant 1.000000e+00 : f32
    %38 = vector.broadcast %cst_18 : f32 to vector<1x1024xf32>
    %c36 = arith.constant 36 : index
    %c0_19 = arith.constant 0 : index
    %39 = vector.load %arg7[%c36, %c0_19] : memref<37x1024xf32, #tpu.memory_space<vmem>>, vector<1x1024xf32>
    tpu.vector_store %arg7[%c36, %c0_19], %38 {strides = array<i32>} : memref<37x1024xf32, #tpu.memory_space<vmem>>, vector<1x1024xf32>,
    %c0_20 = arith.constant 0 : index
    %c0_21 = arith.constant 0 : index
    %40 = vector.load %arg8[%c0_20, %c0_21] : memref<4x1024xf32, #tpu.memory_space<vmem>>, vector<4x1024xf32>
    %c0_22 = arith.constant 0 : index
    %c0_23 = arith.constant 0 : index
    %c0_24 = arith.constant 0 : index
    %41 = vector.load %arg5[%c0_22, %c0_23, %c0_24] : memref<1x4x37xf32, #tpu.memory_space<vmem>>, vector<1x4x37xf32>
    %42 = vector.shape_cast %41 : vector<1x4x37xf32> to vector<4x37xf32>
    %c0_25 = arith.constant 0 : index
    %c0_26 = arith.constant 0 : index
    %43 = vector.load %arg7[%c0_25, %c0_26] : memref<37x1024xf32, #tpu.memory_space<vmem>>, vector<37x1024xf32>
    %cst_27 = arith.constant dense<0.000000e+00> : vector<4x1024xf32>
    %44 = tpu.matmul %42, %43, %cst_27 {dimension_numbers = #tpu.dot_dimension_numbers<[1], [0], [0], [1], [0, 0, 1, 1], [], []>} : vector<4x37xf32>, vector<37x1024xf32>, vector<4x1024xf32> -> vector<4x1024xf32>
    %45 = arith.addf %40, %44 : vector<4x1024xf32>
    %c0_28 = arith.constant 0 : index
    %c0_29 = arith.constant 0 : index
    %46 = vector.load %arg8[%c0_28, %c0_29] : memref<4x1024xf32, #tpu.memory_space<vmem>>, vector<4x1024xf32>
    tpu.vector_store %arg8[%c0_28, %c0_29], %45 {strides = array<i32>} : memref<4x1024xf32, #tpu.memory_space<vmem>>, vector<4x1024xf32>,
    %c0_i32_30 = arith.constant 0 : i32
    %47 = arith.cmpi eq, %arg1, %c0_i32_30 : i32
    %48 = arith.extui %47 : i1 to i32
    %c0_i32_31 = arith.constant 0 : i32
    %49 = arith.cmpi ne, %48, %c0_i32_31 : i32
    scf.if %49 {
      %c0_32 = arith.constant 0 : index
      %c0_33 = arith.constant 0 : index
      %50 = vector.load %arg8[%c0_32, %c0_33] : memref<4x1024xf32, #tpu.memory_space<vmem>>, vector<4x1024xf32>
      %c0_34 = arith.constant 0 : index
      %c0_35 = arith.constant 0 : index
      %c0_36 = arith.constant 0 : index
      %51 = vector.load %arg6[%c0_34, %c0_35, %c0_36] : memref<1x4x1024xf32, #tpu.memory_space<vmem>>, vector<1x4x1024xf32>
      %52 = vector.shape_cast %51 : vector<1x4x1024xf32> to vector<4x1024xf32>
      %53 = vector.shape_cast %50 : vector<4x1024xf32> to vector<1x4x1024xf32>
      tpu.vector_store %arg6[%c0_34, %c0_35, %c0_36], %53 {strides = array<i32>} : memref<1x4x1024xf32, #tpu.memory_space<vmem>>, vector<1x4x1024xf32>,
    } else {
    }
    return
  }
  func.func @transform_0(%arg0: i32, %arg1: i32) -> (i32, i32, i32) {
    %c0_i32 = arith.constant 0 : i32
    %c0_i32_0 = arith.constant 0 : i32
    return %arg0, %arg1, %c0_i32 : i32, i32, i32
  }
  func.func @transform_1(%arg0: i32, %arg1: i32) -> (i32, i32) {
    %c0_i32 = arith.constant 0 : i32
    %c0_i32_0 = arith.constant 0 : i32
    %c0_i32_1 = arith.constant 0 : i32
    return %c0_i32, %c0_i32_0 : i32, i32
  }
  func.func @transform_2(%arg0: i32, %arg1: i32) -> (i32, i32) {
    %c0_i32 = arith.constant 0 : i32
    %c0_i32_0 = arith.constant 0 : i32
    %c0_i32_1 = arith.constant 0 : i32
    return %c0_i32, %c0_i32_0 : i32, i32
  }
  func.func @transform_3(%arg0: i32, %arg1: i32) -> (i32, i32, i32) {
    %c0_i32 = arith.constant 0 : i32
    %c0_i32_0 = arith.constant 0 : i32
    %c0_i32_1 = arith.constant 0 : i32
    return %arg1, %c0_i32, %c0_i32_0 : i32, i32, i32
  }
  func.func @transform_4(%arg0: i32, %arg1: i32) -> (i32, i32, i32) {
    %c0_i32 = arith.constant 0 : i32
    %c0_i32_0 = arith.constant 0 : i32
    %c0_i32_1 = arith.constant 0 : i32
    return %arg0, %c0_i32, %c0_i32_0 : i32, i32, i32
  }
}

</mosaic_0001>

<bundles_post_ra>
// kernel: tpu_custom_call.1
= control target key start
LH: loop header
LB: loop body
LE: loop exit
PB: predicated region body
PF: predicated region fallthrough
CT: control target
= control target key end

     0   :  { %9 = vsyncpa [#allocation5], 0  ;;  %s8192_s0 = inlined_call_operand.vmem [shape: f32[2,64,16], index: 0, kind: input, shape index: {}]   ;;  %s8193_s1 = inlined_call_operand.vmem [shape: f32[34,16], index: 1, kind: input, shape index: {}]   ;;  %s8194_s2 = inlined_call_operand.vmem [shape: f32[16,34], index: 2, kind: input, shape index: {}]   ;;  %s8195_s3 = inlined_call_operand.vmem [shape: f32[1,4,37], index: 3, kind: input, shape index: {}]   ;;  %s8196_s4 = inlined_call_operand.hbm [shape: f32[2,4,1024], index: 4, kind: output, shape index: {}]  }
   0x1   :  { %11 = vsyncpa [#allocation5 + $0x1], 0  ;;  %s5359_s15 = smov 0   ;;  %s5361_s16 = smov 0  }
   0x2   :  { %s5363_s17 = smov 0   ;;  %s5365_s18 = smov 0  }
   0x3   :  { %s5367_s19 = smov 0   ;;  %s5369_s20 = smov 0  }
   0x4 LB: > { %s5110_s21 = sadd.s32 4294967295, %s5324_s20   ;;  %s5111_s22 = sadd.s32 4294967294, %s5324_s20   ;;  %s5324_s20 = sphi %s5369_s20, %s17_s20   ;;  %s5320_s19 = sphi %s5367_s19, %s8387_s19   ;;  %s5316_s18 = sphi %s5365_s18, %s8386_s18   ;;  %s5312_s17 = sphi %s5363_s17, %s8385_s17   ;;  %s5308_s16 = sphi %s5361_s16, %s8384_s16   ;;  %s5304_s15 = sphi %s5359_s15, %s8383_s15  }
   0x5   : > { %s29_s23 = sadd.s32 1, %s5320_s19  ;;  %s132_s24 = sadd.s32 1, %s5312_s17 }
   0x6   : > { %p31_p0 = scmp.ge.s32.totalorder %s29_s23, 2  ;;  %p142_p1 = scmp.ne.s32.totalorder %s5312_s17, %s5308_s16 }
   0x7   : > { %p143_p2 = scmp.eq.s32.totalorder %s5110_s21, 1  ;;  %p148_p3 = scmp.ne.s32.totalorder %s5308_s16, %s5304_s15 }
   0x8   : > { %s8389_s23 = smov (%p31_p0, %s29_s23), 0  ;;  %p149_p5 = scmp.eq.s32.totalorder %s5111_s22, 1 }
   0x9   : > { %p5399_p4 = por %p143_p2, %p142_p1  ;;  %s129_s26 = ssub.s32 %s5320_s19, %s8389_s23 }
   0xa   : > { %p5115_p6 = scmp.ge.s32.totalorder %s5324_s20, 1  ;;  %p130_p7 = scmp.eq.s32.totalorder %s129_s26, 0 }
   0xb   : > { %p5406_p8 = por %p149_p5, %p148_p3  ;;  %p193_p9 = scmp.lt.s32.totalorder %s5324_s20, 3 }
   0xc   : > { %s5412_s28 = scalar_select %p130_p7, %s5312_s17, %s132_s24  }
   0xd   : > { %p194_p10 = pnand %p5115_p6, %p193_p9 }
   0xf   : > { %197 = sbr.rel (%p194_p10) target bundleno = 2053 (0x805), region = 36 }
  0x14   : > { %v258_v0 = vld [vmem:[%s8194_s2 + $0x8] sm:$0xff]  ;;  %v257_v1 = vld [vmem:[%s8194_s2] sm:$0xff]  ;;  %p228_p11 = scmp.lt.s32.totalorder %s5316_s18, 1  ;;  %vm259_vm0 = vcmask 130048   ;;  %v328_v15 = vld [vmem:[%s8193_s1 + $0x18] sm:$0xff]  ;;  %s5326_s6 = smov 127  }
  0x15   : > { %298 = vmatpush.msra.mxu0 %v258_v0  ;;  %v329_v14 = vld [vmem:[%s8193_s1 + $0x20] sm:$0x3]  ;;  %v327_v16 = vld [vmem:[%s8193_s1 + $0x10] sm:$0xff]  ;;  %v326_v21 = vld [vmem:[%s8193_s1 + $0x8] sm:$0xff]  ;;  %vm2246_vm1 = vcmask 1046528   ;;  %vm1047_vm2 = vcmask 1047556  }
  0x16   : > { %s229_s7 = scalar_select %p228_p11, %s5316_s18, 1  ;;  %5127 = vmatpush.xpose.msk.msra.mxu1 %vm259_vm0, %v329_v14  ;;  %5172 = vmatpush.xpose.msk.msra.mxu2 %vm259_vm0, %v329_v14  ;;  %v325_v22 = vld [vmem:[%s8193_s1] sm:$0xff]  ;;  %vm1367_vm3 = vcmask 261120   ;;  %vm1369_vm4 = vcmask 523264   ;;  %vm1371_vm5 = vcmask 785408   ;;  %vm3499_vm6 = vcmask 1045504  }
  0x17   : > { %299 = vmatpush.msra.mxu0 %v257_v1  ;;  %5173 = vmatpush.xpose.msk.msra.mxu3 %vm259_vm0, %v329_v14  ;;  %s5331_s9 = smov 96   ;;  %s5332_s10 = smov 32   ;;  %vm4780_vm7 = vcmask 1044480   ;;  %vm4776_vm8 = vcmask 302080   ;;  %vm4977_vm9 = vcmask 1043456  }
  0x18   : > { %s5170_s8 = sshll.u32 %s229_s7, 6  ;;  %s5327_s7 = smov 126  }
  0x19   : > { %s235_s11 = scalar_lea.vmem %s8192_s0, %s5170_s8  ;;  %s5330_s8 = smov 64  }
  0x1a   : > { %v249_v2 = vld [vmem:[%s235_s11] sm:$0xff]  ;;  %v250_v3 = vld [vmem:[%s235_s11 + $0x8] sm:$0xff]  ;;  %v251_v4 = vld [vmem:[%s235_s11 + $0x10] sm:$0xff]  ;;  %5128 = vmatpush.xpose.msk.msra.mxu1 %vm259_vm0, %v328_v15  ;;  %5174 = vmatpush.xpose.msk.msra.mxu2 %vm259_vm0, %v328_v15  ;;  %s224_s13 = sand.u32 1, %s5308_s16   ;;  %s5171_s22 = sshll.u32 %s5316_s18, 5 }
  0x1b   : > { %5119 = vmatmul.msk.f32.vlgmr.msra.gmra.mxu0 %vm259_vm0, %v249_v2  ;;  %v252_v5 = vld [vmem:[%s235_s11 + $0x18] sm:$0xff]  ;;  %v253_v6 = vld [vmem:[%s235_s11 + $0x20] sm:$0xff]  ;;  %v254_v7 = vld [vmem:[%s235_s11 + $0x28] sm:$0xff]  ;;  %5175 = vmatpush.xpose.msk.msra.mxu3 %vm259_vm0, %v328_v15  ;;  %s5116_s14 = sshll.u32 %s224_s13, 5  ;;  %s5017_s29 = scalar_lea.hbm %s8196_s4, %s5171_s22 }
  0x1c   : > { %v255_v8 = vld [vmem:[%s235_s11 + $0x30] sm:$0xff]  ;;  %v256_v9 = vld [vmem:[%s235_s11 + $0x38] sm:$0xff]  ;;  %s226_s21 = scalar_lea.vmem [#allocation4], %s5116_s14  ;;  %s5021_s5 = sshll.u32 %s5017_s29, 4  ;;  %s5022_s5 = int_to_ptr.hbm [resolvable:$true] %s5021_s5 }
  0x1d   : > { %s5019_s30 = sshll.u32 %s226_s21, 4  ;;  %s5020_s30 = int_to_ptr.vmem [resolvable:$true] %s5019_s30 }
  0x1e   : > { %5129 = vmatpush.xpose.msk.msra.mxu1 %vm259_vm0, %v327_v16  ;;  %5176 = vmatpush.xpose.msk.msra.mxu2 %vm259_vm0, %v327_v16 }
  0x1f   : > { %5177 = vmatpush.xpose.msk.msra.mxu3 %vm259_vm0, %v327_v16 }
  0x22   : > { %5130 = vmatpush.xpose.msk.msra.mxu1 %vm259_vm0, %v326_v21  ;;  %5178 = vmatpush.xpose.msk.msra.mxu2 %vm259_vm0, %v326_v21 }
  0x23   : > { %5120 = vmatmul.msk.f32.gmra.mxu0 %vm259_vm0, %v250_v3  ;;  %5179 = vmatpush.xpose.msk.msra.mxu3 %vm259_vm0, %v326_v21 }
  0x26   : > { %5131 = vmatpush.xpose.msk.msra.mxu1 %vm259_vm0, %v325_v22  ;;  %5180 = vmatpush.xpose.msk.msra.mxu2 %vm259_vm0, %v325_v22 }
  0x27   : > { %5181 = vmatpush.xpose.msk.msra.mxu3 %vm259_vm0, %v325_v22 }
  0x2b   : > { %5121 = vmatmul.msk.f32.gmra.mxu0 %vm259_vm0, %v251_v4 }
  0x33   : > { %5122 = vmatmul.msk.f32.gmra.mxu0 %vm259_vm0, %v252_v5 }
  0x3b   : > { %5123 = vmatmul.msk.f32.gmra.mxu0 %vm259_vm0, %v253_v6 }
  0x43   : > { %5124 = vmatmul.msk.f32.gmra.mxu0 %vm259_vm0, %v254_v7 }
  0x4b   : > { %5125 = vmatmul.msk.f32.gmra.mxu0 %vm259_vm0, %v255_v8 }
  0x53   : > { %5126 = vmatmul.msk.f32.gmra.mxu0 %vm259_vm0, %v256_v9 }
  0x98   : > { %v301_v10 = vpop.f32.mrf.mxu0 }
  0x99   : > { %330 = vxpose.xlu0.b32.start [1/2] (short) (narrow) %v301_v10, 40 }
  0xa0   : > { %v304_v11 = vpop.f32.mrf.mxu0 }
  0xa1   : > { %331 = vxpose.xlu0.b32.end [2/2] (short) (narrow) %v304_v11, 40 }
  0xa8   : > { %v307_v12 = vpop.f32.mrf.mxu0 }
  0xa9   : > { %362 = vxpose.xlu1.b32.start [1/2] (short) (narrow) %v307_v12, 40 }
  0xb0   : > { %v310_v13 = vpop.f32.mrf.mxu0 }
  0xb1   : > { %363 = vxpose.xlu1.b32.end [2/2] (short) (narrow) %v310_v13, 40 }
  0xb8   : > { %v313_v17 = vpop.f32.mrf.mxu0 }
  0xb9   : > { %394 = vxpose.xlu2.b32.start [1/2] (short) (narrow) %v313_v17, 40 }
  0xc0   : > { %v316_v18 = vpop.f32.mrf.mxu0 }
  0xc1   : > { %395 = vxpose.xlu2.b32.end [2/2] (short) (narrow) %v316_v18, 40 }
  0xc8   : > { %v319_v19 = vpop.f32.mrf.mxu0 }
  0xc9   : > { %426 = vxpose.xlu0.b32.start [1/2] (short) (narrow) %v319_v19, 40 }
  0xd0   : > { %v322_v20 = vpop.f32.mrf.mxu0 }
  0xd1   : > { %427 = vxpose.xlu0.b32.end [2/2] (short) (narrow) %v322_v20, 40 }
 0x13d   : > { %v346_v23 = vpop.trf.xlu0 }
 0x13e   : > { %v478_v24 = vrot.slane %v346_v23, 2  ;;  %v479_v25 = vrot.slane %v346_v23, 4  ;;  %v480_v26 = vrot.slane %v346_v23, 6  ;;  %526 = vst [vmem:[#allocation1] ss:$4 sm:$0xff] %v346_v23 }
 0x140   : > { %528 = vst [vmem:[#allocation1 + $0x1] ss:$4 sm:$0xff] %v478_v24 }
 0x141   : > { %530 = vst [vmem:[#allocation1 + $0x2] ss:$4 sm:$0xff] %v479_v25 }
 0x142   : > { %532 = vst [vmem:[#allocation1 + $0x3] ss:$4 sm:$0xff] %v480_v26 }
 0x145   : > { %v347_v27 = vpop.trf.xlu0 }
 0x146   : > { %v481_v28 = vrot.slane %v347_v27, 2  ;;  %v482_v29 = vrot.slane %v347_v27, 4  ;;  %v483_v30 = vrot.slane %v347_v27, 6  ;;  %534 = vst [vmem:[#allocation1 + $0x20] ss:$4 sm:$0xff] %v347_v27 }
 0x148   : > { %536 = vst [vmem:[#allocation1 + $0x21] ss:$4 sm:$0xff] %v481_v28 }
 0x149   : > { %v541_v31 = vld.sshfl [vmem:[#allocation1] sm:$0xff pattern:$0x73625140]  ;;  %538 = vst [vmem:[#allocation1 + $0x22] ss:$4 sm:$0xff] %v482_v29 }
 0x14a   : > { %540 = vst [vmem:[#allocation1 + $0x23] ss:$4 sm:$0xff] %v483_v30  ;;  %5132 = vmatmul.msk.f32.vlgmr.msra.gmra.mxu1 %vm259_vm0, %v541_v31 }
 0x14d   : > { %v348_v32 = vpop.trf.xlu0  ;;  %v378_v33 = vpop.trf.xlu1 }
 0x14e   : > { %v484_v34 = vrot.slane %v348_v32, 2  ;;  %v485_v35 = vrot.slane %v348_v32, 4  ;;  %v486_v36 = vrot.slane %v348_v32, 6  ;;  %543 = vst [vmem:[#allocation1] ss:$4 sm:$0xff] %v348_v32  ;;  %v490_v43 = vrot.slane %v378_v33, 2 }
 0x14f   : > { %v491_v45 = vrot.slane %v378_v33, 4  ;;  %v492_v48 = vrot.slane %v378_v33, 6 }
 0x150   : > { %545 = vst [vmem:[#allocation1 + $0x2] ss:$4 sm:$0xff] %v485_v35 }
 0x151   : > { %v542_v37 = vld.sshfl [vmem:[#allocation1 + $0x20] sm:$0xff pattern:$0x73625140]  ;;  %546 = vst [vmem:[#allocation1 + $0x3] ss:$4 sm:$0xff] %v486_v36 }
 0x152   : > { %544 = vst [vmem:[#allocation1 + $0x1] ss:$4 sm:$0xff] %v484_v34  ;;  %5133 = vmatmul.msk.f32.gmra.mxu1 %vm259_vm0, %v542_v37  ;;  %v410_v49 = vpop.trf.xlu2 }
 0x153   : > { %v502_v0 = vrot.slane %v410_v49, 2  ;;  %v503_v4 = vrot.slane %v410_v49, 4  ;;  %v504_v5 = vrot.slane %v410_v49, 6 }
 0x155   : > { %v349_v38 = vpop.trf.xlu0  ;;  %v379_v39 = vpop.trf.xlu1 }
 0x156   : > { %v487_v40 = vrot.slane %v349_v38, 2  ;;  %v488_v41 = vrot.slane %v349_v38, 4  ;;  %v489_v42 = vrot.slane %v349_v38, 6  ;;  %547 = vst [vmem:[#allocation1 + $0x20] ss:$4 sm:$0xff] %v349_v38  ;;  %v493_v50 = vrot.slane %v379_v39, 2 }
 0x157   : > { %v494_v52 = vrot.slane %v379_v39, 4  ;;  %v495_v53 = vrot.slane %v379_v39, 6 }
 0x158   : > { %549 = vst [vmem:[#allocation1 + $0x22] ss:$4 sm:$0xff] %v488_v41 }
 0x159   : > { %550 = vst [vmem:[#allocation1 + $0x23] ss:$4 sm:$0xff] %v489_v42  ;;  %v551_v44 = vld.sshfl [vmem:[#allocation1] sm:$0xff pattern:$0x73625140] }
 0x15a   : > { %548 = vst [vmem:[#allocation1 + $0x21] ss:$4 sm:$0xff] %v487_v40  ;;  %5134 = vmatmul.msk.f32.gmra.mxu1 %vm259_vm0, %v551_v44  ;;  %v411_v58 = vpop.trf.xlu2 }
 0x15b   : > { %554 = vst [vmem:[#allocation1 + $0x1] ss:$4 sm:$0xff] %v378_v33  ;;  %v505_v8 = vrot.slane %v411_v58, 2  ;;  %v506_v9 = vrot.slane %v411_v58, 4  ;;  %v507_v10 = vrot.slane %v411_v58, 6 }
 0x15c   : > { %555 = vst [vmem:[#allocation1 + $0x2] ss:$4 sm:$0xff] %v490_v43 }
 0x15d   : > { %556 = vst [vmem:[#allocation1 + $0x3] ss:$4 sm:$0xff] %v491_v45  ;;  %v350_v46 = vpop.trf.xlu0  ;;  %v380_v47 = vpop.trf.xlu1 }
 0x15e   : > { %553 = vst [vmem:[#allocation1] ss:$4 sm:$0xff] %v350_v46  ;;  %v497_v54 = vrot.slane %v380_v47, 4  ;;  %v496_v56 = vrot.slane %v380_v47, 2  ;;  %v498_v59 = vrot.slane %v380_v47, 6 }
 0x161   : > { %v552_v51 = vld.sshfl [vmem:[#allocation1 + $0x20] sm:$0xff pattern:$0x73625140] }
 0x162   : > { %557 = vst [vmem:[#allocation1 + $0x20] ss:$4 sm:$0xff] %v492_v48  ;;  %5135 = vmatmul.msk.f32.gmra.mxu1 %vm259_vm0, %v552_v51  ;;  %v412_v3 = vpop.trf.xlu2 }
 0x163   : > { %558 = vst [vmem:[#allocation1 + $0x21] ss:$4 sm:$0xff] %v379_v39  ;;  %v508_v12 = vrot.slane %v412_v3, 2  ;;  %v509_v14 = vrot.slane %v412_v3, 4  ;;  %v510_v16 = vrot.slane %v412_v3, 6 }
 0x164   : > { %559 = vst [vmem:[#allocation1 + $0x22] ss:$4 sm:$0xff] %v493_v50 }
 0x165   : > { %v561_v55 = vld.sshfl [vmem:[#allocation1] sm:$0xff pattern:$0x73625140]  ;;  %560 = vst [vmem:[#allocation1 + $0x23] ss:$4 sm:$0xff] %v494_v52  ;;  %v381_v57 = vpop.trf.xlu1 }
 0x166   : > { %563 = vst [vmem:[#allocation1] ss:$4 sm:$0xff] %v495_v53  ;;  %v500_v60 = vrot.slane %v381_v57, 4  ;;  %v499_v62 = vrot.slane %v381_v57, 2  ;;  %v501_v63 = vrot.slane %v381_v57, 6 }
 0x167   : > { %564 = vst [vmem:[#allocation1 + $0x1] ss:$4 sm:$0xff] %v380_v47 }
 0x168   : > { %566 = vst [vmem:[#allocation1 + $0x3] ss:$4 sm:$0xff] %v497_v54 }
 0x169   : > { %565 = vst [vmem:[#allocation1 + $0x2] ss:$4 sm:$0xff] %v496_v56 }
 0x16a   : > { %5136 = vmatmul.msk.f32.gmra.mxu1 %vm259_vm0, %v561_v55  ;;  %v413_v13 = vpop.trf.xlu2 }
 0x16b   : > { %v511_v18 = vrot.slane %v413_v13, 2  ;;  %v512_v19 = vrot.slane %v413_v13, 4  ;;  %v513_v20 = vrot.slane %v413_v13, 6 }
 0x16c   : > { %v562_v61 = vld.sshfl [vmem:[#allocation1 + $0x20] sm:$0xff pattern:$0x73625140] }
 0x16d   : > { %567 = vst [vmem:[#allocation1 + $0x20] ss:$4 sm:$0xff] %v498_v59  ;;  %v382_v2 = vpop.trf.xlu1  ;;  %v442_v6 = vpop.trf.xlu0 }
 0x16e   : > { %568 = vst [vmem:[#allocation1 + $0x21] ss:$4 sm:$0xff] %v381_v57  ;;  %v514_v24 = vrot.slane %v442_v6, 2  ;;  %v515_v25 = vrot.slane %v442_v6, 4  ;;  %v516_v26 = vrot.slane %v442_v6, 6 }
 0x16f   : > { %570 = vst [vmem:[#allocation1 + $0x23] ss:$4 sm:$0xff] %v500_v60 }
 0x170   : > { %v571_v1 = vld.sshfl [vmem:[#allocation1] sm:$0xff pattern:$0x73625140]  ;;  %569 = vst [vmem:[#allocation1 + $0x22] ss:$4 sm:$0xff] %v499_v62 }
 0x171   : > { %573 = vst [vmem:[#allocation1] ss:$4 sm:$0xff] %v501_v63 }
 0x172   : > { %575 = vst [vmem:[#allocation1 + $0x2] ss:$4 sm:$0xff] %v410_v49  ;;  %5137 = vmatmul.msk.f32.gmra.mxu1 %vm259_vm0, %v562_v61  ;;  %v414_v22 = vpop.trf.xlu2 }
 0x173   : > { %576 = vst [vmem:[#allocation1 + $0x3] ss:$4 sm:$0xff] %v502_v0 }
 0x174   : > { %574 = vst [vmem:[#allocation1 + $0x1] ss:$4 sm:$0xff] %v382_v2 }
 0x175   : > { %v443_v15 = vpop.trf.xlu0 }
 0x176   : > { %v517_v28 = vrot.slane %v443_v15, 2  ;;  %v518_v29 = vrot.slane %v443_v15, 4  ;;  %v519_v30 = vrot.slane %v443_v15, 6 }
 0x177   : > { %v572_v7 = vld.sshfl [vmem:[#allocation1 + $0x20] sm:$0xff pattern:$0x73625140] }
 0x178   : > { %577 = vst [vmem:[#allocation1 + $0x20] ss:$4 sm:$0xff] %v503_v4 }
 0x179   : > { %578 = vst [vmem:[#allocation1 + $0x21] ss:$4 sm:$0xff] %v504_v5 }
 0x17a   : > { %579 = vst [vmem:[#allocation1 + $0x22] ss:$4 sm:$0xff] %v411_v58  ;;  %5138 = vmatmul.msk.f32.gmra.mxu1 %vm259_vm0, %v571_v1 }
 0x17b   : > { %v581_v11 = vld.sshfl [vmem:[#allocation1] sm:$0xff pattern:$0x73625140]  ;;  %580 = vst [vmem:[#allocation1 + $0x23] ss:$4 sm:$0xff] %v505_v8 }
 0x17c   : > { %583 = vst [vmem:[#allocation1] ss:$4 sm:$0xff] %v506_v9  ;;  %5140 = vmatmul.msk.f32.vlgmr.msra.gmra.mxu2 %vm259_vm0, %v581_v11 }
 0x17d   : > { %584 = vst [vmem:[#allocation1 + $0x1] ss:$4 sm:$0xff] %v507_v10  ;;  %v444_v23 = vpop.trf.xlu0 }
 0x17e   : > { %585 = vst [vmem:[#allocation1 + $0x2] ss:$4 sm:$0xff] %v412_v3  ;;  %v520_v33 = vrot.slane %v444_v23, 2  ;;  %v521_v34 = vrot.slane %v444_v23, 4  ;;  %v522_v35 = vrot.slane %v444_v23, 6 }
 0x17f   : > { %586 = vst [vmem:[#allocation1 + $0x3] ss:$4 sm:$0xff] %v508_v12 }
 0x182   : > { %v582_v17 = vld.sshfl [vmem:[#allocation1 + $0x20] sm:$0xff pattern:$0x73625140]  ;;  %5139 = vmatmul.msk.f32.gmra.mxu1 %vm259_vm0, %v572_v7 }
 0x183   : > { %587 = vst [vmem:[#allocation1 + $0x20] ss:$4 sm:$0xff] %v509_v14 }
 0x184   : > { %588 = vst [vmem:[#allocation1 + $0x21] ss:$4 sm:$0xff] %v510_v16  ;;  %5141 = vmatmul.msk.f32.gmra.mxu2 %vm259_vm0, %v582_v17 }
 0x185   : > { %589 = vst [vmem:[#allocation1 + $0x22] ss:$4 sm:$0xff] %v413_v13  ;;  %v445_v32 = vpop.trf.xlu0 }
 0x186   : > { %v591_v21 = vld.sshfl [vmem:[#allocation1] sm:$0xff pattern:$0x73625140]  ;;  %590 = vst [vmem:[#allocation1 + $0x23] ss:$4 sm:$0xff] %v511_v18  ;;  %v523_v37 = vrot.slane %v445_v32, 2 }
 0x187   : > { %593 = vst [vmem:[#allocation1] ss:$4 sm:$0xff] %v512_v19  ;;  %v524_v38 = vrot.slane %v445_v32, 4  ;;  %v525_v39 = vrot.slane %v445_v32, 6 }
 0x188   : > { %594 = vst [vmem:[#allocation1 + $0x1] ss:$4 sm:$0xff] %v513_v20 }
 0x189   : > { %595 = vst [vmem:[#allocation1 + $0x2] ss:$4 sm:$0xff] %v414_v22 }
 0x18a   : > { %596 = vst [vmem:[#allocation1 + $0x3] ss:$4 sm:$0xff] %v442_v6 }
 0x18c   : > { %5142 = vmatmul.msk.f32.gmra.mxu2 %vm259_vm0, %v591_v21 }
 0x18d   : > { %v592_v27 = vld.sshfl [vmem:[#allocation1 + $0x20] sm:$0xff pattern:$0x73625140]  ;;  %v446_v41 = vpop.trf.xlu0 }
 0x18e   : > { %597 = vst [vmem:[#allocation1 + $0x20] ss:$4 sm:$0xff] %v514_v24 }
 0x18f   : > { %598 = vst [vmem:[#allocation1 + $0x21] ss:$4 sm:$0xff] %v515_v25 }
 0x190   : > { %599 = vst [vmem:[#allocation1 + $0x22] ss:$4 sm:$0xff] %v516_v26 }
 0x191   : > { %v601_v31 = vld.sshfl [vmem:[#allocation1] sm:$0xff pattern:$0x73625140]  ;;  %600 = vst [vmem:[#allocation1 + $0x23] ss:$4 sm:$0xff] %v443_v15 }
 0x192   : > { %603 = vst [vmem:[#allocation1] ss:$4 sm:$0xff] %v517_v28  ;;  %5144 = vmatmul.msk.f32.vlgmr.msra.gmra.mxu3 %vm259_vm0, %v601_v31 }
 0x193   : > { %604 = vst [vmem:[#allocation1 + $0x1] ss:$4 sm:$0xff] %v518_v29 }
 0x194   : > { %605 = vst [vmem:[#allocation1 + $0x2] ss:$4 sm:$0xff] %v519_v30  ;;  %5143 = vmatmul.msk.f32.gmra.mxu2 %vm259_vm0, %v592_v27 }
 0x195   : > { %606 = vst [vmem:[#allocation1 + $0x3] ss:$4 sm:$0xff] %v444_v23 }
 0x198   : > { %v602_v36 = vld.sshfl [vmem:[#allocation1 + $0x20] sm:$0xff pattern:$0x73625140] }
 0x199   : > { %607 = vst [vmem:[#allocation1 + $0x20] ss:$4 sm:$0xff] %v520_v33 }
 0x19a   : > { %608 = vst [vmem:[#allocation1 + $0x21] ss:$4 sm:$0xff] %v521_v34  ;;  %5145 = vmatmul.msk.f32.gmra.mxu3 %vm259_vm0, %v602_v36 }
 0x19b   : > { %609 = vst [vmem:[#allocation1 + $0x22] ss:$4 sm:$0xff] %v522_v35 }
 0x19c   : > { %v611_v40 = vld.sshfl [vmem:[#allocation1] sm:$0xff pattern:$0x73625140]  ;;  %610 = vst [vmem:[#allocation1 + $0x23] ss:$4 sm:$0xff] %v445_v32 }
 0x19d   : > { %613 = vst [vmem:[#allocation1] ss:$4 sm:$0xff] %v523_v37 }
 0x19e   : > { %614 = vst [vmem:[#allocation1 + $0x1] ss:$4 sm:$0xff] %v524_v38 }
 0x19f   : > { %615 = vst [vmem:[#allocation1 + $0x2] ss:$4 sm:$0xff] %v525_v39 }
 0x1a0   : > { %616 = vst [vmem:[#allocation1 + $0x3] ss:$4 sm:$0xff] %v446_v41 }
 0x1a2   : > { %5146 = vmatmul.msk.f32.gmra.mxu3 %vm259_vm0, %v611_v40 }
 0x1a3   : > { %v612_v42 = vld.sshfl [vmem:[#allocation1 + $0x20] sm:$0xff pattern:$0x73625140] }
 0x1a7   : > { %v617_v43 = vld.sshfl [vmem:[#allocation1] sm:$0xff pattern:$0x73625140] }
 0x1aa   : > { %5147 = vmatmul.msk.f32.gmra.mxu3 %vm259_vm0, %v612_v42 }
 0x1b2   : > { %5148 = vmatmul.msk.f32.gmra.mxu3 %vm259_vm0, %v617_v43 }
 0x1c7   : > { %v684_v44 = vpop.f32.mrf.mxu1 }
 0x1c8   : > { %v752_v45 = vrot.slane %v684_v44, 2  ;;  %v753_v46 = vrot.slane %v684_v44, 4  ;;  %v754_v47 = vrot.slane %v684_v44, 6  ;;  %803 = vst [vmem:[#allocation1] ss:$4 sm:$0xff] %v684_v44 }
 0x1ca   : > { %805 = vst [vmem:[#allocation1 + $0x1] ss:$4 sm:$0xff] %v752_v45 }
 0x1cb   : > { %807 = vst [vmem:[#allocation1 + $0x2] ss:$4 sm:$0xff] %v753_v46 }
 0x1cc   : > { %809 = vst [vmem:[#allocation1 + $0x3] ss:$4 sm:$0xff] %v754_v47 }
 0x1cf   : > { %v687_v48 = vpop.f32.mrf.mxu1 }
 0x1d0   : > { %v755_v49 = vrot.slane %v687_v48, 2  ;;  %v756_v50 = vrot.slane %v687_v48, 4  ;;  %v757_v51 = vrot.slane %v687_v48, 6  ;;  %811 = vst [vmem:[#allocation1 + $0x20] ss:$4 sm:$0xff] %v687_v48 }
 0x1d2   : > { %813 = vst [vmem:[#allocation1 + $0x21] ss:$4 sm:$0xff] %v755_v49 }
 0x1d3   : > { %v818_v52 = vld.sshfl [vmem:[#allocation1] sm:$0xff pattern:$0x73625140]  ;;  %815 = vst [vmem:[#allocation1 + $0x22] ss:$4 sm:$0xff] %v756_v50 }
 0x1d4   : > { %817 = vst [vmem:[#allocation1 + $0x23] ss:$4 sm:$0xff] %v757_v51  ;;  %918 = vxpose.xlu1.b32.start [1/5] (short) (narrow) %v818_v52, 40 }
 0x1d7   : > { %v690_v53 = vpop.f32.mrf.mxu1 }
 0x1d8   : > { %v758_v54 = vrot.slane %v690_v53, 2  ;;  %v759_v55 = vrot.slane %v690_v53, 4  ;;  %v760_v56 = vrot.slane %v690_v53, 6  ;;  %820 = vst [vmem:[#allocation1] ss:$4 sm:$0xff] %v690_v53 }
 0x1da   : > { %821 = vst [vmem:[#allocation1 + $0x1] ss:$4 sm:$0xff] %v758_v54 }
 0x1db   : > { %v819_v57 = vld.sshfl [vmem:[#allocation1 + $0x20] sm:$0xff pattern:$0x73625140]  ;;  %822 = vst [vmem:[#allocation1 + $0x2] ss:$4 sm:$0xff] %v759_v55 }
 0x1dc   : > { %823 = vst [vmem:[#allocation1 + $0x3] ss:$4 sm:$0xff] %v760_v56  ;;  %919 = vxpose.xlu1.b32.cont [2/5] (short) (narrow) %v819_v57, 40 }
 0x1df   : > { %v693_v58 = vpop.f32.mrf.mxu1 }
 0x1e0   : > { %v761_v59 = vrot.slane %v693_v58, 2  ;;  %v762_v60 = vrot.slane %v693_v58, 4  ;;  %v763_v61 = vrot.slane %v693_v58, 6  ;;  %824 = vst [vmem:[#allocation1 + $0x20] ss:$4 sm:$0xff] %v693_v58 }
 0x1e2   : > { %825 = vst [vmem:[#allocation1 + $0x21] ss:$4 sm:$0xff] %v761_v59 }
 0x1e3   : > { %v828_v62 = vld.sshfl [vmem:[#allocation1] sm:$0xff pattern:$0x73625140]  ;;  %826 = vst [vmem:[#allocation1 + $0x22] ss:$4 sm:$0xff] %v762_v60 }
 0x1e4   : > { %827 = vst [vmem:[#allocation1 + $0x23] ss:$4 sm:$0xff] %v763_v61  ;;  %920 = vxpose.xlu1.b32.cont [3/5] (short) (narrow) %v828_v62, 40 }
 0x1e7   : > { %v696_v63 = vpop.f32.mrf.mxu1 }
 0x1e8   : > { %v764_v0 = vrot.slane %v696_v63, 2  ;;  %830 = vst [vmem:[#allocation1] ss:$4 sm:$0xff] %v696_v63  ;;  %v765_v1 = vrot.slane %v696_v63, 4  ;;  %v766_v2 = vrot.slane %v696_v63, 6 }
 0x1eb   : > { %v829_v3 = vld.sshfl [vmem:[#allocation1 + $0x20] sm:$0xff pattern:$0x73625140] }
 0x1ec   : > { %832 = vst [vmem:[#allocation1 + $0x20] ss:$4 sm:$0xff] %v764_v0  ;;  %921 = vxpose.xlu1.b32.cont [4/5] (short) (narrow) %v829_v3, 40 }
 0x1ed   : > { %833 = vst [vmem:[#allocation1 + $0x21] ss:$4 sm:$0xff] %v765_v1 }
 0x1ee   : > { %834 = vst [vmem:[#allocation1 + $0x22] ss:$4 sm:$0xff] %v766_v2 }
 0x1ef   : > { %v699_v4 = vpop.f32.mrf.mxu1  ;;  %v831_v8 = vld.sshfl [vmem:[#allocation1] sm:$0xff pattern:$0x73625140] }
 0x1f0   : > { %v767_v5 = vrot.slane %v699_v4, 2  ;;  %v768_v6 = vrot.slane %v699_v4, 4  ;;  %v769_v7 = vrot.slane %v699_v4, 6  ;;  %835 = vst [vmem:[#allocation1 + $0x23] ss:$4 sm:$0xff] %v699_v4 }
 0x1f2   : > { %837 = vst [vmem:[#allocation1] ss:$4 sm:$0xff] %v767_v5 }
 0x1f3   : > { %838 = vst [vmem:[#allocation1 + $0x1] ss:$4 sm:$0xff] %v768_v6 }
 0x1f4   : > { %839 = vst [vmem:[#allocation1 + $0x2] ss:$4 sm:$0xff] %v769_v7  ;;  %922 = vxpose.xlu1.b32.end [5/5] (short) (narrow) %v831_v8, 40 }
 0x1f7   : > { %v836_v9 = vld.sshfl [vmem:[#allocation1 + $0x20] sm:$0xff pattern:$0x73625140]  ;;  %v702_v10 = vpop.f32.mrf.mxu1 }
 0x1f8   : > { %v770_v11 = vrot.slane %v702_v10, 2  ;;  %v771_v12 = vrot.slane %v702_v10, 4  ;;  %v772_v13 = vrot.slane %v702_v10, 6  ;;  %840 = vst [vmem:[#allocation1 + $0x3] ss:$4 sm:$0xff] %v702_v10  ;;  %950 = vxpose.xlu2.b32.start [1/5] (short) (narrow) %v836_v9, 40 }
 0x1fa   : > { %841 = vst [vmem:[#allocation1 + $0x20] ss:$4 sm:$0xff] %v770_v11 }
 0x1fb   : > { %842 = vst [vmem:[#allocation1 + $0x21] ss:$4 sm:$0xff] %v771_v12 }
 0x1fc   : > { %843 = vst [vmem:[#allocation1 + $0x22] ss:$4 sm:$0xff] %v772_v13 }
 0x1ff   : > { %v845_v14 = vld.sshfl [vmem:[#allocation1] sm:$0xff pattern:$0x73625140]  ;;  %v705_v15 = vpop.f32.mrf.mxu1  ;;  %v708_v16 = vpop.f32.mrf.mxu2 }
 0x200   : > { %v773_v17 = vrot.slane %v705_v15, 2  ;;  %v774_v18 = vrot.slane %v705_v15, 4  ;;  %v775_v19 = vrot.slane %v705_v15, 6  ;;  %844 = vst [vmem:[#allocation1 + $0x23] ss:$4 sm:$0xff] %v705_v15  ;;  %951 = vxpose.xlu2.b32.cont [2/5] (short) (narrow) %v845_v14, 40 }
 0x201   : > { %850 = vst [vmem:[#allocation1 + $0x3] ss:$4 sm:$0xff] %v708_v16  ;;  %v776_v20 = vrot.slane %v708_v16, 2  ;;  %v777_v23 = vrot.slane %v708_v16, 4  ;;  %v778_v24 = vrot.slane %v708_v16, 6 }
 0x202   : > { %847 = vst [vmem:[#allocation1] ss:$4 sm:$0xff] %v773_v17 }
 0x203   : > { %848 = vst [vmem:[#allocation1 + $0x1] ss:$4 sm:$0xff] %v774_v18 }
 0x204   : > { %849 = vst [vmem:[#allocation1 + $0x2] ss:$4 sm:$0xff] %v775_v19 }
 0x207   : > { %v846_v21 = vld.sshfl [vmem:[#allocation1 + $0x20] sm:$0xff pattern:$0x73625140]  ;;  %v711_v22 = vpop.f32.mrf.mxu2 }
 0x208   : > { %851 = vst [vmem:[#allocation1 + $0x20] ss:$4 sm:$0xff] %v776_v20  ;;  %952 = vxpose.xlu2.b32.cont [3/5] (short) (narrow) %v846_v21, 40  ;;  %v779_v26 = vrot.slane %v711_v22, 2  ;;  %v780_v27 = vrot.slane %v711_v22, 4  ;;  %v781_v28 = vrot.slane %v711_v22, 6 }
 0x20b   : > { %v852_v25 = vld.sshfl [vmem:[#allocation1] sm:$0xff pattern:$0x73625140] }
 0x20c   : > { %854 = vst [vmem:[#allocation1] ss:$4 sm:$0xff] %v777_v23 }
 0x20d   : > { %855 = vst [vmem:[#allocation1 + $0x1] ss:$4 sm:$0xff] %v778_v24 }
 0x20e   : > { %856 = vst [vmem:[#allocation1 + $0x2] ss:$4 sm:$0xff] %v711_v22 }
 0x20f   : > { %v853_v29 = vld.sshfl [vmem:[#allocation1 + $0x20] sm:$0xff pattern:$0x73625140]  ;;  %857 = vst [vmem:[#allocation1 + $0x3] ss:$4 sm:$0xff] %v779_v26  ;;  %v714_v30 = vpop.f32.mrf.mxu2 }
 0x210   : > { %858 = vst [vmem:[#allocation1 + $0x20] ss:$4 sm:$0xff] %v780_v27  ;;  %953 = vxpose.xlu2.b32.cont [4/5] (short) (narrow) %v852_v25, 40  ;;  %v782_v31 = vrot.slane %v714_v30, 2  ;;  %v783_v32 = vrot.slane %v714_v30, 4  ;;  %v784_v33 = vrot.slane %v714_v30, 6 }
 0x211   : > { %859 = vst [vmem:[#allocation1 + $0x21] ss:$4 sm:$0xff] %v781_v28 }
 0x212   : > { %860 = vst [vmem:[#allocation1 + $0x22] ss:$4 sm:$0xff] %v714_v30 }
 0x213   : > { %861 = vst [vmem:[#allocation1 + $0x23] ss:$4 sm:$0xff] %v782_v31 }
 0x215   : > { %v720_v34 = vpop.f32.mrf.mxu3 }
 0x216   : > { %v5480_v35 = vld.sshfl [vmem:[#allocation1] sm:$0xff pattern:$0x73625140]  ;;  %v788_v40 = vrot.slane %v720_v34, 2  ;;  %v789_v43 = vrot.slane %v720_v34, 4  ;;  %v790_v45 = vrot.slane %v720_v34, 6 }
 0x217   : > { %v717_v36 = vpop.f32.mrf.mxu2  ;;  %864 = vst [vmem:[#allocation1] ss:$4 sm:$0xff] %v783_v32 }
 0x218   : > { %954 = vxpose.xlu2.b32.end [5/5] (short) (narrow) %v853_v29, 40  ;;  %v785_v37 = vrot.slane %v717_v36, 2  ;;  %v786_v38 = vrot.slane %v717_v36, 4  ;;  %v787_v39 = vrot.slane %v717_v36, 6  ;;  %865 = vst [vmem:[#allocation1 + $0x1] ss:$4 sm:$0xff] %v784_v33 }
 0x219   : > { %866 = vst [vmem:[#allocation1 + $0x2] ss:$4 sm:$0xff] %v717_v36 }
 0x21a   : > { %867 = vst [vmem:[#allocation1 + $0x3] ss:$4 sm:$0xff] %v785_v37  ;;  %v5482_v41 = vld.sshfl [vmem:[#allocation1 + $0x20] sm:$0xff pattern:$0x73625140] }
 0x21b   : > { %868 = vst [vmem:[#allocation1 + $0x20] ss:$4 sm:$0xff] %v786_v38 }
 0x21c   : > { %869 = vst [vmem:[#allocation1 + $0x21] ss:$4 sm:$0xff] %v787_v39 }
 0x21d   : > { %v723_v42 = vpop.f32.mrf.mxu3  ;;  %870 = vst [vmem:[#allocation1 + $0x22] ss:$4 sm:$0xff] %v720_v34 }
 0x21e   : > { %871 = vst [vmem:[#allocation1 + $0x23] ss:$4 sm:$0xff] %v788_v40  ;;  %v791_v46 = vrot.slane %v723_v42, 2  ;;  %v792_v47 = vrot.slane %v723_v42, 4  ;;  %v793_v50 = vrot.slane %v723_v42, 6 }
 0x221   : > { %v5484_v44 = vld.sshfl [vmem:[#allocation1] sm:$0xff pattern:$0x73625140] }
 0x222   : > { %874 = vst [vmem:[#allocation1] ss:$4 sm:$0xff] %v789_v43 }
 0x225   : > { %v726_v48 = vpop.f32.mrf.mxu3  ;;  %v5486_v49 = vld.sshfl [vmem:[#allocation1 + $0x20] sm:$0xff pattern:$0x73625140] }
 0x226   : > { %876 = vst [vmem:[#allocation1 + $0x20] ss:$4 sm:$0xff] %v790_v45  ;;  %v794_v51 = vrot.slane %v726_v48, 2  ;;  %v795_v52 = vrot.slane %v726_v48, 4  ;;  %v796_v54 = vrot.slane %v726_v48, 6 }
 0x227   : > { %877 = vst [vmem:[#allocation1 + $0x21] ss:$4 sm:$0xff] %v723_v42 }
 0x228   : > { %878 = vst [vmem:[#allocation1 + $0x22] ss:$4 sm:$0xff] %v791_v46 }
 0x229   : > { %879 = vst [vmem:[#allocation1 + $0x23] ss:$4 sm:$0xff] %v792_v47  ;;  %v5488_v53 = vld.sshfl [vmem:[#allocation1] sm:$0xff pattern:$0x73625140] }
 0x22a   : > { %881 = vst [vmem:[#allocation1] ss:$4 sm:$0xff] %v793_v50  ;;  %v5328_v47 = vmov 1983009808  }
 0x22b   : > { %882 = vst [vmem:[#allocation1 + $0x1] ss:$4 sm:$0xff] %v726_v48  ;;  %v1052_v48 = vunpack.c.l.s4 %v5328_v47 }
 0x22c   : > { %883 = vst [vmem:[#allocation1 + $0x2] ss:$4 sm:$0xff] %v794_v51 }
 0x22d   : > { %v729_v55 = vpop.f32.mrf.mxu3  ;;  %884 = vst [vmem:[#allocation1 + $0x3] ss:$4 sm:$0xff] %v795_v52 }
 0x22e   : > { %v797_v56 = vrot.slane %v729_v55, 2  ;;  %v798_v57 = vrot.slane %v729_v55, 4  ;;  %v799_v59 = vrot.slane %v729_v55, 6 }
 0x230   : > { %v880_v58 = vld.sshfl [vmem:[#allocation1 + $0x20] sm:$0xff pattern:$0x73625140] }
 0x231   : > { %885 = vst [vmem:[#allocation1 + $0x20] ss:$4 sm:$0xff] %v796_v54 }
 0x232   : > { %886 = vst [vmem:[#allocation1 + $0x21] ss:$4 sm:$0xff] %v729_v55 }
 0x233   : > { %887 = vst [vmem:[#allocation1 + $0x22] ss:$4 sm:$0xff] %v797_v56 }
 0x234   : > { %888 = vst [vmem:[#allocation1 + $0x23] ss:$4 sm:$0xff] %v798_v57  ;;  %v889_v60 = vld.sshfl [vmem:[#allocation1] sm:$0xff pattern:$0x73625140] }
 0x235   : > { %v732_v61 = vpop.f32.mrf.mxu3  ;;  %891 = vst [vmem:[#allocation1] ss:$4 sm:$0xff] %v799_v59 }
 0x236   : > { %v800_v62 = vrot.slane %v732_v61, 2  ;;  %v801_v63 = vrot.slane %v732_v61, 4  ;;  %892 = vst [vmem:[#allocation1 + $0x1] ss:$4 sm:$0xff] %v732_v61  ;;  %v802_v0 = vrot.slane %v732_v61, 6 }
 0x238   : > { %893 = vst [vmem:[#allocation1 + $0x2] ss:$4 sm:$0xff] %v800_v62 }
 0x239   : > { %894 = vst [vmem:[#allocation1 + $0x3] ss:$4 sm:$0xff] %v801_v63 }
 0x23b   : > { %v890_v1 = vld.sshfl [vmem:[#allocation1 + $0x20] sm:$0xff pattern:$0x73625140] }
 0x23c   : > { %895 = vst [vmem:[#allocation1 + $0x20] ss:$4 sm:$0xff] %v802_v0 }
 0x240   : > { %v896_v19 = vld.sshfl [vmem:[#allocation1] sm:$0xff pattern:$0x73625140] }
 0x243   : > { %v897_v20 = vld.sshfl [vmem:[#allocation1 + $0x20] sm:$0xff pattern:$0x73625140] }
 0x278   : > { %v5490_v2 = vpop.trf.xlu1 }
 0x279   : > { %8267 = vst [vmem:[#allocation7_spill] sm:$0xff] %v5490_v2  ;;  %1418 = vrot.lane.b32.xlu0 %v5490_v2, %s5326_s6  ;;  %v2247_v4 = vrot.slane %v5490_v2, 1  ;;  %v1049_v50 = vrot.slane %v5490_v2, 4 }
 0x280   : > { %v5494_v3 = vpop.trf.xlu1 }
 0x281   : > { %8268 = vst [vmem:[#allocation8_spill] sm:$0xff] %v5494_v3  ;;  %1844 = vrot.lane.b32.xlu1 %v5494_v3, %s5327_s7  ;;  %1842 = vrot.lane.b32.xlu2 %v5490_v2, %s5327_s7  ;;  %v2248_v5 = vrot.slane %v5494_v3, 1 }
 0x283   : > { %v5503_v6 = vsel %vm2246_vm1, %v2247_v4, %v2248_v5 }
 0x284   : > { %3075 = vrot.lane.b32.xlu0 %v5503_v6, %s5327_s7 }
 0x288   : > { %v5507_v7 = vpop.trf.xlu1 }
 0x289   : > { %8269 = vst [vmem:[#allocation9_spill] sm:$0xff] %v5507_v7  ;;  %2675 = vrot.lane.b32.xlu1 %v5503_v6, %s5326_s6  ;;  %1420 = vrot.lane.b32.xlu2 %v5494_v3, %s5326_s6  ;;  %v2250_v8 = vrot.slane %v5507_v7, 1 }
 0x28b   : > { %v5519_v10 = vsel %vm2246_vm1, %v2248_v5, %v2250_v8 }
 0x28c   : > { %1846 = vrot.lane.b32.xlu0 %v5507_v7, %s5327_s7 }
 0x290   : > { %v5516_v9 = vpop.trf.xlu1 }
 0x291   : > { %8270 = vst [vmem:[#allocation10_spill] sm:$0xff] %v5516_v9  ;;  %1422 = vrot.lane.b32.xlu1 %v5507_v7, %s5326_s6  ;;  %3077 = vrot.lane.b32.xlu2 %v5519_v10, %s5327_s7  ;;  %v2252_v11 = vrot.slane %v5516_v9, 1  ;;  %v5536_v15 = vpop.trf.xlu2 }
 0x292   : > { %8272 = vst [vmem:[#allocation12_spill] sm:$0xff] %v5536_v15  ;;  %v2256_v31 = vrot.slane %v5536_v15, 1  ;;  %v1061_v59 = vrot.slane %v5536_v15, 4 }
 0x293   : > { %v5527_v12 = vsel %vm2246_vm1, %v2250_v8, %v2252_v11 }
 0x298   : > { %v5529_v13 = vpop.trf.xlu1 }
 0x299   : > { %8271 = vst [vmem:[#allocation11_spill] sm:$0xff] %v5529_v13  ;;  %3079 = vrot.lane.b32.xlu1 %v5527_v12, %s5327_s7  ;;  %1848 = vrot.lane.b32.xlu2 %v5516_v9, %s5327_s7  ;;  %v2254_v14 = vrot.slane %v5529_v13, 1  ;;  %v5545_v17 = vpop.trf.xlu2 }
 0x29a   : > { %8273 = vst [vmem:[#allocation13_spill] sm:$0xff] %v5545_v17  ;;  %v2257_v21 = vrot.slane %v5545_v17, 1 }
 0x29b   : > { %v5539_v16 = vsel %vm2246_vm1, %v2252_v11, %v2254_v14 }
 0x29c   : > { %v5599_v33 = vsel %vm2246_vm1, %v2256_v31, %v2257_v21 }
 0x29d   : > { %8280 = vst [vmem:[#allocation20_spill] sm:$0xff] %v5599_v33 }
 0x2a1   : > { %2681 = vrot.lane.b32.xlu1 %v5539_v16, %s5326_s6  ;;  %2679 = vrot.lane.b32.xlu2 %v5527_v12, %s5326_s6  ;;  %v5552_v18 = vpop.trf.xlu2 }
 0x2a2   : > { %8274 = vst [vmem:[#allocation14_spill] sm:$0xff] %v5552_v18  ;;  %v2259_v22 = vrot.slane %v5552_v18, 1 }
 0x2a4   : > { %v5563_v23 = vsel %vm2246_vm1, %v2257_v21, %v2259_v22 }
 0x2a5   : > { %8275 = vst [vmem:[#allocation15_spill] sm:$0xff] %v5563_v23 }
 0x2a9   : > { %1850 = vrot.lane.b32.xlu1 %v5536_v15, %s5327_s7  ;;  %1426 = vrot.lane.b32.xlu2 %v5536_v15, %s5326_s6  ;;  %v5567_v24 = vpop.trf.xlu2 }
 0x2aa   : > { %8276 = vst [vmem:[#allocation16_spill] sm:$0xff] %v5567_v24  ;;  %v2261_v42 = vrot.slane %v5567_v24, 1 }
 0x2ac   : > { %v5632_v43 = vsel %vm2246_vm1, %v2259_v22, %v2261_v42 }
 0x2ad   : > { %8285 = vst [vmem:[#allocation25_spill] sm:$0xff] %v5632_v43 }
 0x2ae   : > { %982 = vxpose.xlu0.b32.start [1/5] (short) (narrow) %v5480_v35, 40 }
 0x2b1   : > { %1854 = vrot.lane.b32.xlu2 %v5552_v18, %s5327_s7  ;;  %v5607_v37 = vpop.trf.xlu2 }
 0x2b2   : > { %8281 = vst [vmem:[#allocation21_spill] sm:$0xff] %v5607_v37  ;;  %v2263_v46 = vrot.slane %v5607_v37, 1 }
 0x2b4   : > { %v5649_v51 = vsel %vm2246_vm1, %v2261_v42, %v2263_v46 }
 0x2b5   : > { %8287 = vst [vmem:[#allocation27_spill] sm:$0xff] %v5649_v51 }
 0x2b6   : > { %983 = vxpose.xlu0.b32.cont [2/5] (short) (narrow) %v5482_v41, 40 }
 0x2b9   : > { %2685 = vrot.lane.b32.xlu2 %v5563_v23, %s5326_s6 }
 0x2be   : > { %984 = vxpose.xlu0.b32.cont [3/5] (short) (narrow) %v5484_v44, 40 }
 0x2c1   : > { %1432 = vrot.lane.b32.xlu2 %v5567_v24, %s5326_s6 }
 0x2c6   : > { %985 = vxpose.xlu0.b32.cont [4/5] (short) (narrow) %v5486_v49, 40 }
 0x2ce   : > { %986 = vxpose.xlu0.b32.end [5/5] (short) (narrow) %v5488_v53, 40  ;;  %v5652_v53 = vunpack.c.0.s8 %v1052_v48 }
 0x2db   : > { %v5622_v40 = vpop.permute.xlu2 %1842 }
 0x2de   : > { %1014 = vxpose.xlu1.b32.start [1/5] (short) (narrow) %v880_v58, 40 }
 0x2e3   : > { %v5638_v45 = vpop.permute.xlu2 %1420 }
 0x2e6   : > { %1015 = vxpose.xlu1.b32.cont [2/5] (short) (narrow) %v889_v60, 40  ;;  %v5329_v60 = vmov 1934713408  }
 0x2e7   : > { %v1076_v61 = vunpack.c.l.s4 %v5329_v60 }
 0x2e9   : > { %v5680_v8 = vunpack.c.0.s8 %v1076_v61 }
 0x2eb   : > { %v5571_v25 = vpop.permute.xlu0 %1418  ;;  %v5656_v54 = vpop.permute.xlu2 %3077 }
 0x2ec   : > { %8288 = vst [vmem:[#allocation28_spill] sm:$0xff] %v5656_v54 }
 0x2ee   : > { %1016 = vxpose.xlu1.b32.cont [3/5] (short) (narrow) %v890_v1, 40 }
 0x2f3   : > { %v5579_v27 = vpop.permute.xlu1 %1844 }
 0x2f6   : > { %1017 = vxpose.xlu1.b32.cont [4/5] (short) (narrow) %v896_v19, 40  ;;  %v5575_v26 = vpop.permute.xlu0 %3075 }
 0x2f7   : > { %8277 = vst [vmem:[#allocation17_spill] sm:$0xff] %v5575_v26 }
 0x2fb   : > { %v5585_v29 = vpop.permute.xlu1 %2675 }
 0x2fe   : > { %1018 = vxpose.xlu1.b32.end [5/5] (short) (narrow) %v897_v20, 40  ;;  %v5581_v28 = vpop.permute.xlu0 %1846  ;;  %v5686_v20 = vpop.permute.xlu2 %1848 }
 0x2ff   : > { %8291 = vst [vmem:[#allocation31_spill] sm:$0xff] %v5686_v20 }
 0x303   : > { %v5601_v34 = vpop.permute.xlu1 %1422 }
 0x306   : > { %v5704_v48 = vpop.permute.xlu2 %2679 }
 0x307   : > { %8294 = vst [vmem:[#allocation34_spill] sm:$0xff] %v5704_v48 }
 0x30b   : > { %v5618_v39 = vpop.permute.xlu1 %3079 }
 0x30c   : > { %8283 = vst [vmem:[#allocation23_spill] sm:$0xff] %v5618_v39 }
 0x313   : > { %v5634_v44 = vpop.permute.xlu1 %2681 }
 0x314   : > { %8286 = vst [vmem:[#allocation26_spill] sm:$0xff] %v5634_v44 }
 0x31b   : > { %v5645_v49 = vpop.permute.xlu1 %1850 }
 0x33c   : > { %2677 = vrot.lane.b32.xlu0 %v5519_v10, %s5326_s6 }
 0x344   : > { %1424 = vrot.lane.b32.xlu0 %v5516_v9, %s5326_s6 }
 0x34c   : > { %3081 = vrot.lane.b32.xlu0 %v5539_v16, %s5327_s7 }
 0x352   : > { %v5587_v30 = vpop.trf.xlu0 }
 0x353   : > { %8278 = vst [vmem:[#allocation18_spill] sm:$0xff] %v5587_v30  ;;  %v2265_v35 = vrot.slane %v5587_v30, 1  ;;  %v1050_v55 = vsel %vm1047_vm2, %v5587_v30, %v1049_v50  ;;  %v1046_v56 = vrot.slane %v5587_v30, 4 }
 0x354   : > { %1852 = vrot.lane.b32.xlu0 %v5545_v17, %s5327_s7  ;;  %v1058_v58 = vperm.slane %v1050_v55, %v5652_v53 }
 0x355   : > { %v1048_v1 = vsel %vm1047_vm2, %v1046_v56, %v5490_v2 }
 0x356   : > { %v1085_v5 = vrot.slane %v1058_v58, 4  ;;  %v1054_v19 = vperm.slane %v1048_v1, %v5652_v53 }
 0x358   : > { %1428 = vrot.lane.b32.xlu1 %v5545_v17, %s5326_s6 }
 0x35a   : > { %v5594_v32 = vpop.trf.xlu0 }
 0x35b   : > { %8279 = vst [vmem:[#allocation19_spill] sm:$0xff] %v5594_v32  ;;  %1860 = vrot.lane.b32.xlu2 %v5594_v32, %s5327_s7  ;;  %v2266_v36 = vrot.slane %v5594_v32, 1 }
 0x35c   : > { %2683 = vrot.lane.b32.xlu0 %v5599_v33, %s5326_s6 }
 0x35d   : > { %v5612_v38 = vsel %vm2246_vm1, %v2265_v35, %v2266_v36  ;;  %v1073_v35 = vrot.slane %v1054_v19, 4 }
 0x35e   : > { %8282 = vst [vmem:[#allocation22_spill] sm:$0xff] %v5612_v38 }
 0x360   : > { %1856 = vrot.lane.b32.xlu1 %v5567_v24, %s5327_s7 }
 0x362   : > { %v5624_v41 = vpop.trf.xlu0 }
 0x363   : > { %2691 = vrot.lane.b32.xlu2 %v5612_v38, %s5326_s6  ;;  %8284 = vst [vmem:[#allocation24_spill] sm:$0xff] %v5624_v41  ;;  %v2268_v52 = vrot.slane %v5624_v41, 1 }
 0x364   : > { %1430 = vrot.lane.b32.xlu0 %v5552_v18, %s5326_s6 }
 0x365   : > { %v5662_v57 = vsel %vm2246_vm1, %v2266_v36, %v2268_v52 }
 0x366   : > { %8289 = vst [vmem:[#allocation29_spill] sm:$0xff] %v5662_v57 }
 0x368   : > { %1434 = vrot.lane.b32.xlu1 %v5587_v30, %s5326_s6 }
 0x36a   : > { %v5688_v21 = vpop.trf.xlu0 }
 0x36b   : > { %1438 = vrot.lane.b32.xlu2 %v5624_v41, %s5326_s6  ;;  %8292 = vst [vmem:[#allocation32_spill] sm:$0xff] %v5688_v21  ;;  %v8198_v46 = vrot.slane %v5688_v21, 1  ;;  %v1215_v20 = vrot.slane %v5688_v21, 4 }
 0x36c   : > { %1858 = vrot.lane.b32.xlu0 %v5587_v30, %s5327_s7  ;;  %v1173_v30 = vrot.slane %v5552_v18, 4 }
 0x36d   : > { %v5711_v50 = vsel %vm2246_vm1, %v2268_v52, %v8198_v46 }
 0x36e   : > { %8295 = vst [vmem:[#allocation35_spill] sm:$0xff] %v5711_v50 }
 0x370   : > { %2687 = vrot.lane.b32.xlu1 %v5632_v43, %s5326_s6 }
 0x374   : > { %1436 = vrot.lane.b32.xlu0 %v5594_v32, %s5326_s6 }
 0x378   : > { %1862 = vrot.lane.b32.xlu1 %v5624_v41, %s5327_s7 }
 0x37c   : > { %2689 = vrot.lane.b32.xlu0 %v5649_v51, %s5326_s6 }
 0x380   : > { %2693 = vrot.lane.b32.xlu1 %v5662_v57, %s5326_s6 }
 0x382   : > { %v5668_v62 = vpop.trf.xlu1 }
 0x383   : > { %8290 = vst [vmem:[#allocation30_spill] sm:$0xff] %v5668_v62  ;;  %v1059_v63 = vrot.slane %v5668_v62, 4  ;;  %1866 = vrot.lane.b32.xlu2 %v5668_v62, %s5327_s7  ;;  %v1062_v0 = vsel %vm1047_vm2, %v5668_v62, %v1061_v59  ;;  %v1103_v59 = vrot.slane %v5594_v32, 4 }
 0x384   : > { %1442 = vrot.lane.b32.xlu0 %v5668_v62, %s5326_s6  ;;  %v1070_v4 = vperm.slane %v1062_v0, %v5652_v53 }
 0x385   : > { %v1060_v11 = vsel %vm1047_vm2, %v1059_v63, %v5536_v15 }
 0x386   : > { %v1086_v14 = vsel %vm1047_vm2, %v1070_v4, %v1085_v5  ;;  %v1066_v22 = vperm.slane %v1060_v11, %v5652_v53  ;;  %v1083_v56 = vrot.slane %v1070_v4, 4  ;;  %v1104_v5 = vsel %vm1047_vm2, %v1103_v59, %v5494_v3  ;;  %v5727_v11 = vpop.permute.xlu2 %1426 }
 0x387   : > { %v1094_v31 = vperm.slane %v1086_v14, %v5680_v8 }
 0x388   : > { %1440 = vrot.lane.b32.xlu1 %v5688_v21, %s5326_s6  ;;  %v1074_v36 = vsel %vm1047_vm2, %v1066_v22, %v1073_v35  ;;  %v1084_v63 = vsel %vm1047_vm2, %v1083_v56, %v1058_v58  ;;  %v2274_v58 = vrot.slane %v5668_v62, 1  ;;  %v1071_v14 = vrot.slane %v1066_v22, 4 }
 0x389   : > { %v1082_v47 = vperm.slane %v1074_v36, %v5680_v8  ;;  %v1101_v60 = vrot.slane %v1094_v31, 4  ;;  %v5723_v4 = vperm.slane %v1084_v63, %v5680_v8  ;;  %v2313_v56 = vrot.slane %v5599_v33, 4 }
 0x38a   : > { %v5698_v42 = vpop.trf.xlu1  ;;  %v1105_v63 = vrot.slane %v5494_v3, 4 }
 0x38b   : > { %1288 = vrot.lane.b32.xlu2 %v1094_v31, %s5330_s8  ;;  %8293 = vst [vmem:[#allocation33_spill] sm:$0xff] %v5698_v42  ;;  %v1097_v55 = vrot.slane %v1082_v47, 4  ;;  %v1115_v0 = vrot.slane %v5698_v42, 4  ;;  %v8197_v52 = vrot.slane %v5698_v42, 1  ;;  %v1102_v1 = vsel %vm1047_vm2, 0.0, %v1101_v60 }
 0x38c   : > { %1864 = vrot.lane.b32.xlu0 %v5688_v21, %s5327_s7  ;;  %v2301_v31 = vrot.slane %v5503_v6, 4  ;;  %v1099_v59 = vrot.slane %v5723_v4, 4  ;;  %v1072_v60 = vsel %vm1047_vm2, %v1071_v14, %v1054_v19  ;;  %v1117_v19 = vrot.slane %v5545_v17, 4 }
 0x38d   : > { %v1098_v61 = vsel %vm1047_vm2, 0.0, %v1097_v55  ;;  %v1116_v35 = vsel %vm1047_vm2, %v1115_v0, %v5545_v17  ;;  %v5738_v36 = vsel %vm2246_vm1, %v2274_v58, %v8197_v52  ;;  %v5741_v55 = vperm.slane %v1104_v5, %v5652_v53 }
 0x38e   : > { %8296 = vst [vmem:[#allocation36_spill] sm:$0xff] %v5738_v36  ;;  %v2302_v22 = vsel %vm1047_vm2, %v5612_v38, %v2301_v31  ;;  %v2299_v5 = vrot.slane %v5612_v38, 4  ;;  %v1100_v58 = vsel %vm1047_vm2, 0.0, %v1099_v59  ;;  %v5763_v31 = vperm.slane %v1072_v60, %v5680_v8 }
 0x38f   : > { %v5757_v0 = vperm.slane %v2302_v22, %v5652_v53  ;;  %v1106_v59 = vsel %vm1047_vm2, %v5594_v32, %v1105_v63  ;;  %v2311_v60 = vrot.slane %v5738_v36, 4  ;;  %v1118_v46 = vsel %vm1047_vm2, %v5698_v42, %v1117_v19 }
 0x390   : > { %1868 = vrot.lane.b32.xlu1 %v5698_v42, %s5327_s7  ;;  %v1095_v13 = vrot.slane %v5763_v31, 4  ;;  %v1114_v63 = vperm.slane %v1106_v59, %v5652_v53  ;;  %v1126_v19 = vperm.slane %v1118_v46, %v5652_v53 }
 0x391   : > { %v2337_v52 = vrot.slane %v5757_v0, 4  ;;  %v2312_v2 = vsel %vm1047_vm2, %v2311_v60, %v5599_v33 }
 0x392   : > { %v5766_v14 = vpop.trf.xlu1  ;;  %v2318_v59 = vperm.slane %v2312_v2, %v5652_v53  ;;  %v1139_v2 = vrot.slane %v1126_v19, 4 }
 0x393   : > { %1444 = vrot.lane.b32.xlu2 %v5698_v42, %s5326_s6  ;;  %8297 = vst [vmem:[#allocation37_spill] sm:$0xff] %v5766_v14 }
 0x394   : > { %2695 = vrot.lane.b32.xlu0 %v5711_v50, %s5326_s6 }
 0x398   : > { %1280 = vrot.lane.b32.xlu1 %v1098_v61, %s5331_s9  ;;  %v2314_v61 = vsel %vm1047_vm2, %v5738_v36, %v2313_v56 }
 0x399   : > { %v2322_v56 = vperm.slane %v2314_v61, %v5652_v53  ;;  %v2300_v61 = vsel %vm1047_vm2, %v2299_v5, %v5503_v6  ;;  %v1096_v6 = vsel %vm1047_vm2, 0.0, %v1095_v13 }
 0x39a   : > { %v2306_v3 = vperm.slane %v2300_v61, %v5652_v53 }
 0x39b   : > { %1292 = vrot.lane.b32.xlu2 %v1102_v1, %s5331_s9  ;;  %v1129_v1 = vrot.slane %v5741_v55, 4  ;;  %v2338_v37 = vsel %vm1047_vm2, %v2322_v56, %v2337_v52  ;;  %v2335_v32 = vrot.slane %v2322_v56, 4  ;;  %v1174_v56 = vsel %vm1047_vm2, %v5766_v14, %v1173_v30 }
 0x39c   : > { %1276 = vrot.lane.b32.xlu0 %v1082_v47, %s5330_s8  ;;  %v5748_v47 = vperm.slane %v1116_v35, %v5652_v53  ;;  %v5768_v35 = vpop.permute.xlu2 %1854  ;;  %v5797_v5 = vperm.slane %v2338_v37, %v5680_v8  ;;  %v2325_v46 = vrot.slane %v2306_v3, 4  ;;  %v1182_v30 = vperm.slane %v1174_v56, %v5652_v53 }
 0x39e   : > { %v1130_v22 = vsel %vm1047_vm2, %v5748_v47, %v1129_v1  ;;  %v2326_v13 = vsel %vm1047_vm2, %v2318_v59, %v2325_v46 }
 0x39f   : > { %v1138_v1 = vperm.slane %v1130_v22, %v5680_v8  ;;  %v1141_v22 = vrot.slane %v1114_v63, 4 }
 0x3a0   : > { %2699 = vrot.lane.b32.xlu1 %v5738_v36, %s5326_s6 }
 0x3a1   : > { %v1142_v52 = vsel %vm1047_vm2, %v1126_v19, %v1141_v22  ;;  %v5819_v22 = vperm.slane %v2326_v13, %v5680_v8 }
 0x3a2   : > { %v1150_v37 = vperm.slane %v1142_v52, %v5680_v8  ;;  %v1140_v52 = vsel %vm1047_vm2, %v1139_v2, %v1114_v63  ;;  %v8306_v63 = vrot.slane %v5698_v42, 1 }
 0x3a3   : > { %1284 = vrot.lane.b32.xlu2 %v1100_v58, %s5332_s10  ;;  %v5784_v58 = vpop.trf.xlu0  ;;  %v5833_v13 = vperm.slane %v1140_v52, %v5680_v8  ;;  %v2357_v52 = vrot.slane %v5519_v10, 4 }
 0x3a4   : > { %1870 = vrot.lane.b32.xlu0 %v5766_v14, %s5327_s7  ;;  %8298 = vst [vmem:[#allocation38_spill] sm:$0xff] %v5784_v58  ;;  %v5804_v60 = vpop.permute.xlu2 %2685  ;;  %v2272_v61 = vrot.slane %v5784_v58, 1  ;;  %v1157_v58 = vrot.slane %v1150_v37, 4 }
 0x3a5   : > { %8299 = vst [vmem:[#allocation39_spill] sm:$0xff] %v5804_v60  ;;  %v1155_v2 = vrot.slane %v5833_v13, 4  ;;  %v2358_v42 = vsel %vm1047_vm2, %v5662_v57, %v2357_v52  ;;  %v2411_v60 = vrot.slane %v5711_v50, 4 }
 0x3a6   : > { %v1158_v62 = vsel %vm1047_vm2, 0.0, %v1157_v58  ;;  %v5870_v52 = vperm.slane %v2358_v42, %v5652_v53 }
 0x3a7   : > { %v1156_v39 = vsel %vm1047_vm2, 0.0, %v1155_v2 }
 0x3a8   : > { %1300 = vrot.lane.b32.xlu1 %v1138_v1, %s5330_s8 }
 0x3ab   : > { %1272 = vrot.lane.b32.xlu2 %v1096_v6, %s5332_s10  ;;  %v8301_v6 = vrot.slane %v5688_v21, 1 }
 0x3ac   : > { %2540 = vrot.lane.b32.xlu0 %v5797_v5, %s5330_s8  ;;  %v5828_v19 = vpop.permute.xlu2 %1432 }
 0x3ad   : > { %v5816_v15 = vsel %vm2246_vm1, %v8301_v6, %v2272_v61  ;;  %8304 = vst [vmem:[#allocation43_spill] sm:$0xff] %v5828_v19  ;;  %v8213_v61 = vrot.slane %v5766_v14, 1  ;;  %v5835_v6 = vpop.trf.xlu1  ;;  %v1229_v19 = vrot.slane %v5567_v24, 4 }
 0x3ae   : > { %v5807_v17 = vpop.permute.xlu0 %2677  ;;  %8302 = vst [vmem:[#allocation41_spill] sm:$0xff] %v5816_v15 }
 0x3af   : > { %8300 = vst [vmem:[#allocation40_spill] sm:$0xff] %v5807_v17  ;;  %v5845_v58 = vsel %vm2246_vm1, %v8306_v63, %v8213_v61  ;;  %v1153_v61 = vrot.slane %v1138_v1, 4 }
 0x3b0   : > { %1446 = vrot.lane.b32.xlu1 %v5766_v14, %s5326_s6  ;;  %8305 = vst [vmem:[#allocation44_spill] sm:$0xff] %v5835_v6 }
 0x3b1   : > { %8307 = vst [vmem:[#allocation45_spill] sm:$0xff] %v5845_v58  ;;  %v1154_v2 = vsel %vm1047_vm2, 0.0, %v1153_v61  ;;  %v2393_v61 = vrot.slane %v5870_v52, 4 }
 0x3b3   : > { %2697 = vrot.lane.b32.xlu2 %v5816_v15, %s5326_s6 }
 0x3b4   : > { %2528 = vrot.lane.b32.xlu0 %v5819_v22, %s5330_s8 }
 0x3b5   : > { %v5874_v1 = vpop.trf.xlu1 }
 0x3b6   : > { %v5826_v46 = vpop.permute.xlu0 %1424  ;;  %8309 = vst [vmem:[#allocation47_spill] sm:$0xff] %v5874_v1 }
 0x3b7   : > { %8303 = vst [vmem:[#allocation42_spill] sm:$0xff] %v5826_v46 }
 0x3b8   : > { %1316 = vrot.lane.b32.xlu1 %v1158_v62, %s5331_s9  ;;  %v2336_v62 = vsel %vm1047_vm2, %v2335_v32, %v5757_v0  ;;  %v2323_v32 = vrot.slane %v2318_v59, 4  ;;  %v1161_v0 = vrot.slane %v5507_v7, 4  ;;  %v1127_v59 = vrot.slane %v5748_v47, 4 }
 0x3b9   : > { %v5862_v54 = vperm.slane %v2336_v62, %v5680_v8 }
 0x3ba   : > { %v1162_v56 = vsel %vm1047_vm2, %v5624_v41, %v1161_v0  ;;  %v2324_v42 = vsel %vm1047_vm2, %v2323_v32, %v2306_v3  ;;  %v1128_v3 = vsel %vm1047_vm2, %v1127_v59, %v5741_v55 }
 0x3bb   : > { %1312 = vrot.lane.b32.xlu2 %v1150_v37, %s5330_s8  ;;  %v2369_v37 = vrot.slane %v5563_v23, 4  ;;  %v1170_v38 = vperm.slane %v1162_v56, %v5652_v53  ;;  %v5898_v36 = vperm.slane %v2324_v42, %v5680_v8  ;;  %v5913_v42 = vperm.slane %v1128_v3, %v5680_v8 }
 0x3bc   : > { %2701 = vrot.lane.b32.xlu0 %v5845_v58, %s5326_s6 }
 0x3bd   : > { %v2370_v26 = vsel %vm1047_vm2, %v5845_v58, %v2369_v37  ;;  %v1195_v37 = vrot.slane %v1182_v30, 4  ;;  %v1197_v44 = vrot.slane %v1170_v38, 4  ;;  %v2347_v59 = vrot.slane %v5898_v36, 4 }
 0x3be   : > { %v5858_v63 = vpop.permute.xlu0 %3081  ;;  %v5878_v62 = vperm.slane %v2370_v26, %v5652_v53  ;;  %v1159_v26 = vrot.slane %v5624_v41, 4  ;;  %v2355_v41 = vrot.slane %v5662_v57, 4 }
 0x3bf   : > { %8308 = vst [vmem:[#allocation46_spill] sm:$0xff] %v5858_v63  ;;  %v5872_v63 = vpop.permute.xlu2 %1860  ;;  %v1196_v32 = vsel %vm1047_vm2, %v1195_v37, %v1170_v38 }
 0x3c0   : > { %1308 = vrot.lane.b32.xlu1 %v1156_v39, %s5332_s10  ;;  %v2351_v39 = vrot.slane %v5862_v54, 4  ;;  %v2394_v0 = vsel %vm1047_vm2, %v5878_v62, %v2393_v61  ;;  %v5920_v37 = vperm.slane %v1196_v32, %v5680_v8  ;;  %v2356_v3 = vsel %vm1047_vm2, %v2355_v41, %v5519_v10 }
 0x3c1   : > { %v5910_v61 = vperm.slane %v2394_v0, %v5680_v8  ;;  %v1198_v0 = vsel %vm1047_vm2, %v1182_v30, %v1197_v44  ;;  %v1151_v32 = vrot.slane %v5913_v42, 4  ;;  %v2362_v10 = vperm.slane %v2356_v3, %v5652_v53 }
 0x3c2   : > { %v2352_v47 = vsel %vm1047_vm2, 0.0, %v2351_v39 }
 0x3c3   : > { %1304 = vrot.lane.b32.xlu2 %v1154_v2, %s5331_s9  ;;  %v2353_v2 = vrot.slane %v5797_v5, 4  ;;  %v1171_v5 = vrot.slane %v5766_v14, 4  ;;  %v2381_v3 = vrot.slane %v2362_v10, 4 }
 0x3c4   : > { %1448 = vrot.lane.b32.xlu0 %v5835_v6, %s5326_s6 }
 0x3c5   : > { %v2354_v39 = vsel %vm1047_vm2, 0.0, %v2353_v2  ;;  %v2367_v2 = vrot.slane %v5845_v58, 4  ;;  %v1172_v38 = vsel %vm1047_vm2, %v1171_v5, %v5552_v18  ;;  %v1206_v58 = vperm.slane %v1198_v0, %v5680_v8 }
 0x3c6   : > { %v5890_v33 = vpop.permute.xlu0 %1852  ;;  %v1178_v30 = vperm.slane %v1172_v38, %v5652_v53  ;;  %v1152_v5 = vsel %vm1047_vm2, 0.0, %v1151_v32 }
 0x3c7   : > { %v5915_v55 = vpop.permute.xlu2 %2691  ;;  %v2368_v44 = vsel %vm1047_vm2, %v2367_v2, %v5563_v23  ;;  %v1213_v18 = vrot.slane %v1206_v58, 4 }
 0x3c8   : > { %2536 = vrot.lane.b32.xlu1 %v2352_v47, %s5332_s10  ;;  %v1160_v47 = vsel %vm1047_vm2, %v1159_v26, %v5507_v7  ;;  %v2348_v26 = vsel %vm1047_vm2, 0.0, %v2347_v59  ;;  %v1211_v7 = vrot.slane %v5920_v37, 4  ;;  %v2374_v0 = vperm.slane %v2368_v44, %v5652_v53 }
 0x3c9   : > { %v1166_v57 = vperm.slane %v1160_v47, %v5652_v53  ;;  %v1214_v32 = vsel %vm1047_vm2, 0.0, %v1213_v18 }
 0x3ca   : > { %v5906_v56 = vpop.permute.xlu1 %1428  ;;  %v1212_v59 = vsel %vm1047_vm2, 0.0, %v1211_v7  ;;  %v2382_v48 = vsel %vm1047_vm2, %v2374_v0, %v2381_v3  ;;  %v2391_v7 = vrot.slane %v5878_v62, 4  ;;  %v2413_v62 = vrot.slane %v5527_v12, 4 }
 0x3cb   : > { %2544 = vrot.lane.b32.xlu2 %v2354_v39, %s5331_s9  ;;  %v1185_v47 = vrot.slane %v1166_v57, 4  ;;  %v1230_v3 = vsel %vm1047_vm2, %v5835_v6, %v1229_v19 }
 0x3cc   : > { %2564 = vrot.lane.b32.xlu0 %v5910_v61, %s5330_s8  ;;  %v1238_v17 = vperm.slane %v1230_v3, %v5652_v53 }
 0x3cd   : > { %v1186_v2 = vsel %vm1047_vm2, %v1178_v30, %v1185_v47  ;;  %v8233_v47 = vrot.slane %v5835_v6, 1 }
 0x3ce   : > { %v5932_v39 = vpop.permute.xlu0 %2683 }
 0x3cf   : > { %v5952_v38 = vpop.permute.xlu2 %1438 }
 0x3d0   : > { %2524 = vrot.lane.b32.xlu1 %v2348_v26, %s5332_s10  ;;  %v1183_v26 = vrot.slane %v1178_v30, 4 }
 0x3d2   : > { %v5944_v41 = vpop.permute.xlu1 %1856  ;;  %v1184_v44 = vsel %vm1047_vm2, %v1183_v26, %v1166_v57  ;;  %v2392_v57 = vsel %vm1047_vm2, %v2391_v7, %v5870_v52  ;;  %v2349_v52 = vrot.slane %v5819_v22, 4 }
 0x3d3   : > { %8310 = vst [vmem:[#allocation48_spill] sm:$0xff] %v5944_v41  ;;  %1296 = vrot.lane.b32.xlu2 %v1152_v5, %s5332_s10  ;;  %v1194_v5 = vperm.slane %v1186_v2, %v5680_v8  ;;  %v5971_v2 = vperm.slane %v1184_v44, %v5680_v8  ;;  %v2414_v44 = vsel %vm1047_vm2, %v5711_v50, %v2413_v62  ;;  %v1217_v62 = vrot.slane %v5516_v9, 4 }
 0x3d4   : > { %1332 = vrot.lane.b32.xlu0 %v1212_v59, %s5332_s10  ;;  %v5966_v59 = vperm.slane %v2382_v48, %v5680_v8  ;;  %v8312_v48 = vrot.slane %v5766_v14, 1  ;;  %v6006_v41 = vperm.slane %v2414_v44, %v5652_v53  ;;  %v1251_v44 = vrot.slane %v1238_v17, 4 }
 0x3d5   : > { %v1209_v18 = vrot.slane %v1194_v5, 4  ;;  %v1207_v14 = vrot.slane %v5971_v2, 4 }
 0x3d6   : > { %v5954_v23 = vpop.permute.xlu0 %1430  ;;  %v5983_v26 = vsel %vm2246_vm1, %v8312_v48, %v8233_v47  ;;  %v5998_v48 = vperm.slane %v2392_v57, %v5680_v8  ;;  %v2379_v47 = vrot.slane %v2374_v0, 4  ;;  %v1218_v0 = vsel %vm1047_vm2, %v5688_v21, %v1217_v62 }
 0x3d7   : > { %8311 = vst [vmem:[#allocation49_spill] sm:$0xff] %v5954_v23  ;;  %v1210_v7 = vsel %vm1047_vm2, 0.0, %v1209_v18  ;;  %v2350_v18 = vsel %vm1047_vm2, 0.0, %v2349_v52  ;;  %v1208_v57 = vsel %vm1047_vm2, 0.0, %v1207_v14  ;;  %v2449_v52 = vrot.slane %v6006_v41, 4 }
 0x3d8   : > { %1340 = vrot.lane.b32.xlu1 %v1214_v32, %s5331_s9  ;;  %8313 = vst [vmem:[#allocation50_spill] sm:$0xff] %v5983_v26  ;;  %v2425_v32 = vrot.slane %v5632_v43, 4  ;;  %v2380_v3 = vsel %vm1047_vm2, %v2379_v47, %v2362_v10  ;;  %v1226_v14 = vperm.slane %v1218_v0, %v5652_v53  ;;  %v1227_v47 = vrot.slane %v5835_v6, 4 }
 0x3d9   : > { %v2423_v21 = vrot.slane %v5983_v26, 4 }
 0x3da   : > { %v5963_v30 = vpop.permute.xlu1 %1434  ;;  %v2426_v19 = vsel %vm1047_vm2, %v5983_v26, %v2425_v32  ;;  %v1252_v10 = vsel %vm1047_vm2, %v1251_v44, %v1226_v14  ;;  %v1216_v44 = vsel %vm1047_vm2, %v1215_v20, %v5516_v9 }
 0x3db   : > { %1336 = vrot.lane.b32.xlu2 %v1206_v58, %s5330_s8  ;;  %v6015_v32 = vperm.slane %v2426_v19, %v5652_v53  ;;  %v1222_v50 = vperm.slane %v1216_v44, %v5652_v53 }
 0x3dc   : > { %2552 = vrot.lane.b32.xlu0 %v5966_v59, %s5330_s8 }
 0x3dd   : > { %v5985_v58 = vpop.permute.xlu2 %1866  ;;  %v2450_v62 = vsel %vm1047_vm2, %v6015_v32, %v2449_v52  ;;  %v1241_v44 = vrot.slane %v1222_v50, 4 }
 0x3de   : > { %v5992_v46 = vpop.permute.xlu0 %1858  ;;  %v6041_v0 = vperm.slane %v2450_v62, %v5680_v8 }
 0x3e0   : > { %1328 = vrot.lane.b32.xlu1 %v1210_v7, %s5331_s9  ;;  %v2407_v7 = vrot.slane %v5998_v48, 4 }
 0x3e2   : > { %v6008_v22 = vpop.permute.xlu1 %2687  ;;  %v2408_v19 = vsel %vm1047_vm2, 0.0, %v2407_v7  ;;  %v1253_v7 = vrot.slane %v1226_v14, 4  ;;  %v2412_v14 = vsel %vm1047_vm2, %v2411_v60, %v5527_v12 }
 0x3e3   : > { %8314 = vst [vmem:[#allocation51_spill] sm:$0xff] %v6008_v22  ;;  %2532 = vrot.lane.b32.xlu2 %v2350_v18, %s5331_s9  ;;  %v6073_v12 = vperm.slane %v2412_v14, %v5652_v53 }
 0x3e4   : > { %1320 = vrot.lane.b32.xlu0 %v1208_v57, %s5332_s10  ;;  %v6032_v57 = vperm.slane %v2380_v3, %v5680_v8  ;;  %v6046_v3 = vperm.slane %v1252_v10, %v5680_v8 }
 0x3e5   : > { %v6021_v22 = vpop.permute.xlu2 %1288 }
 0x3e6   : > { %v6024_v18 = vpop.permute.xlu0 %1436  ;;  %8315 = vst [vmem:[#allocation52_spill] sm:$0xff] %v6032_v57  ;;  %v2403_v52 = vrot.slane %v6032_v57, 4  ;;  %v1267_v9 = vrot.slane %v6046_v3, 4 }
 0x3e7   : > { %8316 = vst [vmem:[#allocation53_spill] sm:$0xff] %v6046_v3 }
 0x3e8   : > { %2560 = vrot.lane.b32.xlu1 %v2408_v19, %s5332_s10  ;;  %v1254_v19 = vsel %vm1047_vm2, %v1238_v17, %v1253_v7  ;;  %v2404_v20 = vsel %vm1047_vm2, 0.0, %v2403_v52  ;;  %v2424_v7 = vsel %vm1047_vm2, %v2423_v21, %v5632_v43  ;;  %v1268_v52 = vsel %vm1047_vm2, 0.0, %v1267_v9 }
 0x3e9   : > { %v6066_v17 = vperm.slane %v1254_v19, %v5680_v8 }
 0x3ea   : > { %v6038_v23 = vpop.permute.xlu1 %1862 }
 0x3eb   : > { %1324 = vrot.lane.b32.xlu2 %v1194_v5, %s5330_s8  ;;  %v1228_v5 = vsel %vm1047_vm2, %v1227_v47, %v5567_v24  ;;  %v1269_v19 = vrot.slane %v6066_v17, 4  ;;  %v2437_v24 = vrot.slane %v6073_v12, 4 }
 0x3ec   : > { %2588 = vrot.lane.b32.xlu0 %v6041_v0, %s5330_s8  ;;  %v1234_v47 = vperm.slane %v1228_v5, %v5652_v53 }
 0x3ed   : > { %v6054_v62 = vpop.permute.xlu2 %1444 }
 0x3ee   : > { %v6060_v10 = vpop.permute.xlu0 %2689  ;;  %v1242_v21 = vsel %vm1047_vm2, %v1234_v47, %v1241_v44  ;;  %v1239_v5 = vrot.slane %v1234_v47, 4  ;;  %v2281_v44 = vrot.slane %v5874_v1, 1 }
 0x3ef   : > { %8317 = vst [vmem:[#allocation54_spill] sm:$0xff] %v6060_v10  ;;  %v1270_v10 = vsel %vm1047_vm2, 0.0, %v1269_v19 }
 0x3f0   : > { %2548 = vrot.lane.b32.xlu1 %v2404_v20, %s5332_s10  ;;  %v6082_v20 = vperm.slane %v2424_v7, %v5652_v53  ;;  %v1240_v7 = vsel %vm1047_vm2, %v1239_v5, %v1222_v50 }
 0x3f1   : > { %v6107_v19 = vperm.slane %v1240_v7, %v5680_v8 }
 0x3f2   : > { %v6075_v60 = vpop.permute.xlu1 %2693  ;;  %v2438_v9 = vsel %vm1047_vm2, %v6082_v20, %v2437_v24 }
 0x3f3   : > { %8318 = vst [vmem:[#allocation55_spill] sm:$0xff] %v6075_v60  ;;  %1872 = vrot.lane.b32.xlu2 %v5835_v6, %s5327_s7  ;;  %v6093_v60 = vperm.slane %v1242_v21, %v5680_v8  ;;  %v8320_v21 = vrot.slane %v5835_v6, 1 }
 0x3f4   : > { %1356 = vrot.lane.b32.xlu0 %v1268_v52, %s5332_s10  ;;  %v6101_v52 = vperm.slane %v2438_v9, %v5680_v8  ;;  %v2481_v9 = vrot.slane %v5649_v51, 4 }
 0x3f5   : > { %v1293_v14 = vpop.permute.xlu2 %1292  ;;  %v1265_v24 = vrot.slane %v6093_v60, 4  ;;  %v6115_v5 = vsel %vm2246_vm1, %v8320_v21, %v2281_v44  ;;  %v1263_v44 = vrot.slane %v6107_v19, 4  ;;  %v2447_v21 = vrot.slane %v6015_v32, 4 }
 0x3f6   : > { %v6087_v43 = vpop.permute.xlu0 %1442  ;;  %8321 = vst [vmem:[#allocation57_spill] sm:$0xff] %v6115_v5 }
 0x3f7   : > { %v1266_v6 = vsel %vm1047_vm2, 0.0, %v1265_v24  ;;  %v1264_v32 = vsel %vm1047_vm2, 0.0, %v1263_v44  ;;  %v2435_v44 = vrot.slane %v6082_v20, 4 }
 0x3f8   : > { %1364 = vrot.lane.b32.xlu1 %v1270_v10, %s5331_s9  ;;  %v2469_v10 = vrot.slane %v5539_v16, 4 }
 0x3f9   : > { %v2436_v20 = vsel %vm1047_vm2, %v2435_v44, %v6073_v12  ;;  %v1904_v44 = vrot.slane %v5645_v49, 4 }
 0x3fa   : > { %v6098_v47 = vpop.permute.xlu1 %1440  ;;  %v2470_v1 = vsel %vm1047_vm2, %v5816_v15, %v2469_v10  ;;  %v6186_v12 = vperm.slane %v2436_v20, %v5680_v8  ;;  %v1468_v20 = vrot.slane %v5571_v25, 4 }
 0x3fb   : > { %8319 = vst [vmem:[#allocation56_spill] sm:$0xff] %v6098_v47  ;;  %2703 = vrot.lane.b32.xlu2 %v5983_v26, %s5326_s6  ;;  %v2409_v47 = vrot.slane %v5910_v61, 4  ;;  %v2478_v10 = vperm.slane %v2470_v1, %v5652_v53  ;;  %v2467_v61 = vrot.slane %v5816_v15, 4  ;;  %v2479_v1 = vrot.slane %v6115_v5, 4 }
 0x3fc   : > { %2576 = vrot.lane.b32.xlu0 %v6101_v52, %s5330_s8  ;;  %8324 = vst [vmem:[#allocation60_spill] sm:$0xff] %v6186_v12 }
 0x3fd   : > { %v1285_v50 = vpop.permute.xlu2 %1284  ;;  %v2468_v24 = vsel %vm1047_vm2, %v2467_v61, %v5539_v16 }
 0x3fe   : > { %v1373_v7 = vsel %vm1367_vm3, %v5723_v4, %v1285_v50  ;;  %v6122_v26 = vpop.permute.xlu0 %1864  ;;  %v2482_v4 = vsel %vm1047_vm2, %v6115_v5, %v2481_v9 }
 0x3ff   : > { %v1374_v57 = vsel %vm1369_vm4, %v1373_v7, %v6021_v22  ;;  %v2410_v22 = vsel %vm1047_vm2, 0.0, %v2409_v47 }
 0x400   : > { %v1375_v3 = vsel %vm1371_vm5, %v1374_v57, %v1293_v14  ;;  %1352 = vrot.lane.b32.xlu1 %v1266_v6, %s5331_s9  ;;  %v2490_v57 = vperm.slane %v2482_v4, %v5652_v53  ;;  %v2448_v6 = vsel %vm1047_vm2, %v2447_v21, %v6006_v41  ;;  %v2505_v14 = vrot.slane %v2478_v10, 4 }
 0x401   : > { %1395 = vst [vmem:[#allocation2 + $0x8] sm:$0xf] %v1375_v3  ;;  %v6151_v47 = vperm.slane %v2448_v6, %v5680_v8  ;;  %v2480_v41 = vsel %vm1047_vm2, %v2479_v1, %v5649_v51  ;;  %v2474_v21 = vperm.slane %v2468_v24, %v5652_v53  ;;  %v1892_v4 = vrot.slane %v5622_v40, 4 }
 0x402   : > { %v6136_v50 = vpop.permute.xlu1 %1868  ;;  %v2506_v7 = vsel %vm1047_vm2, %v2490_v57, %v2505_v14 }
 0x403   : > { %2568 = vrot.lane.b32.xlu2 %v2410_v22, %s5331_s9  ;;  %v6162_v61 = vperm.slane %v2506_v7, %v5680_v8  ;;  %v2463_v22 = vrot.slane %v6151_v47, 4  ;;  %v1893_v6 = vsel %vm1047_vm2, %v5992_v46, %v1892_v4  ;;  %v2493_v14 = vrot.slane %v2474_v21, 4 }
 0x404   : > { %1344 = vrot.lane.b32.xlu0 %v1264_v32, %s5332_s10  ;;  %v2486_v32 = vperm.slane %v2480_v41, %v5652_v53  ;;  %v2503_v7 = vrot.slane %v2490_v57, 4  ;;  %v2405_v41 = vrot.slane %v5966_v59, 4  ;;  %v6181_v4 = vperm.slane %v1893_v6, %v5652_v53 }
 0x405   : > { %v1273_v3 = vpop.permute.xlu2 %1272  ;;  %v1905_v59 = vsel %vm1047_vm2, %v5985_v58, %v1904_v44 }
 0x406   : > { %v6148_v9 = vpop.permute.xlu0 %2695  ;;  %v1368_v24 = vsel %vm1367_vm3, %v5763_v31, %v1273_v3  ;;  %v1890_v31 = vrot.slane %v5992_v46, 4  ;;  %v1928_v6 = vrot.slane %v6181_v4, 4  ;;  %v2459_v46 = vrot.slane %v6186_v12, 4 }
 0x407   : > { %8322 = vst [vmem:[#allocation58_spill] sm:$0xff] %v6148_v9 }
 0x408   : > { %2705 = vrot.lane.b32.xlu1 %v6115_v5, %s5326_s6  ;;  %v2494_v5 = vsel %vm1047_vm2, %v2486_v32, %v2493_v14  ;;  %v6210_v14 = vperm.slane %v1905_v59, %v5652_v53  ;;  %v2460_v44 = vsel %vm1047_vm2, 0.0, %v2459_v46  ;;  %v1466_v46 = vrot.slane %v5963_v30, 4 }
 0x40a   : > { %v1281_v16 = vpop.permute.xlu1 %1280 }
 0x40b   : > { %1360 = vrot.lane.b32.xlu2 %v6066_v17, %s5330_s8  ;;  %v2464_v17 = vsel %vm1047_vm2, 0.0, %v2463_v22  ;;  %v6198_v22 = vperm.slane %v2494_v5, %v5680_v8 }
 0x40c   : > { %2612 = vrot.lane.b32.xlu0 %v6162_v61, %s5330_s8 }
 0x40d   : > { %v6174_v1 = vpop.permute.xlu2 %2697 }
 0x40e   : > { %8323 = vst [vmem:[#allocation59_spill] sm:$0xff] %v6174_v1  ;;  %v1277_v51 = vpop.permute.xlu0 %1276 }
 0x40f   : > { %v1370_v15 = vsel %vm1369_vm4, %v1368_v24, %v1277_v51  ;;  %v2406_v51 = vsel %vm1047_vm2, 0.0, %v2405_v41  ;;  %v1480_v24 = vrot.slane %v5727_v11, 4 }
 0x410   : > { %v1372_v57 = vsel %vm1371_vm5, %v1370_v15, %v1281_v16  ;;  %2584 = vrot.lane.b32.xlu1 %v2464_v17, %s5332_s10  ;;  %v2504_v15 = vsel %vm1047_vm2, %v2503_v7, %v2478_v10  ;;  %v1891_v16 = vsel %vm1047_vm2, %v1890_v31, %v5622_v40  ;;  %v1902_v17 = vrot.slane %v5985_v58, 4 }
 0x411   : > { %1394 = vst [vmem:[#allocation2] sm:$0xf] %v1372_v57  ;;  %v6219_v10 = vperm.slane %v2504_v15, %v5680_v8  ;;  %v1469_v40 = vsel %vm1047_vm2, %v5963_v30, %v1468_v20  ;;  %v6224_v7 = vperm.slane %v1891_v16, %v5652_v53  ;;  %v1929_v31 = vsel %vm1047_vm2, %v6210_v14, %v1928_v6 }
 0x412   : > { %v6194_v3 = vpop.permute.xlu1 %2699  ;;  %v2491_v57 = vrot.slane %v2486_v32, 4  ;;  %v1481_v58 = vsel %vm1047_vm2, %v6087_v43, %v1480_v24  ;;  %v6233_v59 = vperm.slane %v1469_v40, %v5652_v53  ;;  %v6238_v16 = vperm.slane %v1929_v31, %v5680_v8 }
 0x413   : > { %2556 = vrot.lane.b32.xlu2 %v2406_v51, %s5331_s9  ;;  %8325 = vst [vmem:[#allocation61_spill] sm:$0xff] %v6219_v10  ;;  %v1903_v51 = vsel %vm1047_vm2, %v1902_v17, %v5645_v49  ;;  %v2519_v32 = vrot.slane %v6219_v10, 4  ;;  %v1916_v6 = vrot.slane %v6224_v7, 4  ;;  %v6246_v20 = vperm.slane %v1481_v58, %v5652_v53 }
 0x414   : > { %2600 = vrot.lane.b32.xlu0 %v6198_v22, %s5330_s8  ;;  %v2492_v49 = vsel %vm1047_vm2, %v2491_v57, %v2474_v21  ;;  %v6252_v24 = vperm.slane %v1903_v51, %v5652_v53  ;;  %v1478_v30 = vrot.slane %v6087_v43, 4  ;;  %v1467_v31 = vsel %vm1047_vm2, %v1466_v46, %v5571_v25 }
 0x415   : > { %v6212_v5 = vpop.permute.xlu2 %1312  ;;  %v2520_v58 = vsel %vm1047_vm2, 0.0, %v2519_v32  ;;  %v6265_v57 = vperm.slane %v2492_v49, %v5680_v8 }
 0x416   : > { %v6216_v41 = vpop.permute.xlu0 %1870  ;;  %v1917_v21 = vsel %vm1047_vm2, %v6252_v24, %v1916_v6  ;;  %v1479_v51 = vsel %vm1047_vm2, %v1478_v30, %v5727_v11 }
 0x417   : > { %8326 = vst [vmem:[#allocation62_spill] sm:$0xff] %v6265_v57  ;;  %v6279_v32 = vperm.slane %v1917_v21, %v5680_v8  ;;  %v2515_v6 = vrot.slane %v6265_v57, 4  ;;  %v1948_v57 = vrot.slane %v5579_v27, 4 }
 0x418   : > { %2572 = vrot.lane.b32.xlu1 %v2460_v44, %s5332_s10  ;;  %v2465_v44 = vrot.slane %v6041_v0, 4  ;;  %v6273_v0 = vperm.slane %v1467_v31, %v5652_v53  ;;  %v2461_v31 = vrot.slane %v6101_v52, 4 }
 0x41a   : > { %v1301_v15 = vpop.permute.xlu1 %1300  ;;  %v2466_v46 = vsel %vm1047_vm2, 0.0, %v2465_v44  ;;  %v1492_v30 = vrot.slane %v6273_v0, 4 }
 0x41b   : > { %1348 = vrot.lane.b32.xlu2 %v6093_v60, %s5330_s8  ;;  %v1504_v60 = vrot.slane %v6233_v59, 4 }
 0x41c   : > { %2131 = vrot.lane.b32.xlu0 %v6238_v16, %s5330_s8 }
 0x41d   : > { %v1305_v17 = vpop.permute.xlu2 %1304  ;;  %v1505_v43 = vsel %vm1047_vm2, %v6246_v20, %v1504_v60  ;;  %v6285_v60 = vperm.slane %v1479_v51, %v5652_v53 }
 0x41e   : > { %v6256_v40 = vpop.permute.xlu0 %2540  ;;  %v1513_v49 = vperm.slane %v1505_v43, %v5680_v8 }
 0x41f   : > { %v1493_v43 = vsel %vm1047_vm2, %v6285_v60, %v1492_v30 }
 0x420   : > { %2608 = vrot.lane.b32.xlu1 %v2520_v58, %s5332_s10  ;;  %v2516_v58 = vsel %vm1047_vm2, 0.0, %v2515_v6  ;;  %v1520_v21 = vrot.slane %v1513_v49, 4  ;;  %v1501_v9 = vperm.slane %v1493_v43, %v5680_v8  ;;  %v1949_v6 = vsel %vm1047_vm2, %v5872_v63, %v1948_v57 }
 0x421   : > { %v6320_v57 = vperm.slane %v1949_v6, %v5652_v53  ;;  %v1524_v6 = vrot.slane %v5638_v45, 4 }
 0x422   : > { %v6275_v25 = vpop.permute.xlu1 %1446  ;;  %v1521_v1 = vsel %vm1047_vm2, 0.0, %v1520_v21  ;;  %v1926_v21 = vrot.slane %v6210_v14, 4  ;;  %v1516_v10 = vrot.slane %v1501_v9, 4 }
 0x423   : > { %2592 = vrot.lane.b32.xlu2 %v2466_v46, %s5331_s9  ;;  %v2462_v46 = vsel %vm1047_vm2, 0.0, %v2461_v31 }
 0x424   : > { %2119 = vrot.lane.b32.xlu0 %v6279_v32, %s5330_s8 }
 0x425   : > { %v6289_v11 = vpop.permute.xlu2 %2544 }
 0x426   : > { %v6292_v44 = vpop.permute.xlu0 %2528 }
 0x428   : > { %2596 = vrot.lane.b32.xlu1 %v2516_v58, %s5332_s10  ;;  %v1960_v58 = vrot.slane %v5890_v33, 4 }
 0x42a   : > { %v1317_v51 = vpop.permute.xlu1 %1316 }
 0x42b   : > { %2580 = vrot.lane.b32.xlu2 %v2462_v46, %s5331_s9  ;;  %v2521_v46 = vrot.slane %v6162_v61, 4 }
 0x42c   : > { %1711 = vrot.lane.b32.xlu0 %v1521_v1, %s5331_s9  ;;  %v1961_v1 = vsel %vm1047_vm2, %v6136_v50, %v1960_v58  ;;  %v1984_v58 = vrot.slane %v6320_v57, 4 }
 0x42d   : > { %v1297_v52 = vpop.permute.xlu2 %1296  ;;  %v2522_v61 = vsel %vm1047_vm2, 0.0, %v2521_v46  ;;  %v6325_v14 = vperm.slane %v1961_v1, %v5652_v53 }
 0x42e   : > { %v1376_v30 = vsel %vm1367_vm3, %v5913_v42, %v1297_v52  ;;  %v6310_v31 = vpop.permute.xlu0 %2701  ;;  %v1946_v42 = vrot.slane %v5872_v63, 4 }
 0x42f   : > { %v1377_v43 = vsel %vm1369_vm4, %v1376_v30, %v1301_v15 }
 0x430   : > { %v1378_v12 = vsel %vm1371_vm5, %v1377_v43, %v1305_v17  ;;  %1707 = vrot.lane.b32.xlu1 %v1513_v49, %s5330_s8  ;;  %v1517_v17 = vsel %vm1047_vm2, 0.0, %v1516_v10  ;;  %v1927_v49 = vsel %vm1047_vm2, %v1926_v21, %v6181_v4  ;;  %v2517_v10 = vrot.slane %v6198_v22, 4 }
 0x431   : > { %1396 = vst [vmem:[#allocation2 + $0x10] sm:$0xf] %v1378_v12  ;;  %v1958_v12 = vrot.slane %v6136_v50, 4  ;;  %v1947_v4 = vsel %vm1047_vm2, %v1946_v42, %v5579_v27  ;;  %v1914_v50 = vrot.slane %v6252_v24, 4  ;;  %v1536_v21 = vrot.slane %v5906_v56, 4 }
 0x432   : > { %v1309_v52 = vpop.permute.xlu1 %1308  ;;  %v1985_v43 = vsel %vm1047_vm2, %v6325_v14, %v1984_v58  ;;  %v6360_v27 = vperm.slane %v1947_v4, %v5652_v53  ;;  %v2518_v1 = vsel %vm1047_vm2, 0.0, %v2517_v10  ;;  %v1944_v4 = vrot.slane %v6238_v16, 4 }
 0x433   : > { %v1379_v15 = vsel %vm1367_vm3, %v5833_v13, %v1309_v52  ;;  %2616 = vrot.lane.b32.xlu2 %v2522_v61, %s5331_s9  ;;  %v1959_v22 = vsel %vm1047_vm2, %v1958_v12, %v5890_v33  ;;  %v1537_v24 = vsel %vm1047_vm2, %v6054_v62, %v1536_v21  ;;  %v6369_v61 = vperm.slane %v1985_v43, %v5680_v8 }
 0x434   : > { %v1380_v63 = vsel %vm1369_vm4, %v1379_v15, %v6212_v5  ;;  %1699 = vrot.lane.b32.xlu0 %v1517_v17, %s5331_s9  ;;  %v6349_v5 = vperm.slane %v1927_v49, %v5680_v8  ;;  %v1915_v33 = vsel %vm1047_vm2, %v1914_v50, %v6224_v7  ;;  %v1502_v17 = vrot.slane %v6246_v20, 4 }
 0x435   : > { %v1381_v13 = vsel %vm1371_vm5, %v1380_v63, %v1317_v51  ;;  %v6340_v30 = vpop.permute.xlu2 %1336  ;;  %v1525_v51 = vsel %vm1047_vm2, %v6024_v18, %v1524_v6  ;;  %v6377_v49 = vperm.slane %v1959_v22, %v5652_v53  ;;  %v6383_v63 = vperm.slane %v1537_v24, %v5652_v53 }
 0x436   : > { %1397 = vst [vmem:[#allocation2 + $0x18] sm:$0xf] %v1381_v13  ;;  %v6346_v46 = vpop.permute.xlu0 %1448  ;;  %v6366_v42 = vperm.slane %v1525_v51, %v5652_v53  ;;  %v1942_v15 = vrot.slane %v6349_v5, 4  ;;  %v1534_v7 = vrot.slane %v6054_v62, 4  ;;  %v1945_v22 = vsel %vm1047_vm2, 0.0, %v1944_v4 }
 0x438   : > { %1695 = vrot.lane.b32.xlu1 %v1501_v9, %s5330_s8  ;;  %v1522_v9 = vrot.slane %v6024_v18, 4  ;;  %v1972_v18 = vrot.slane %v6360_v27, 4  ;;  %v1943_v21 = vsel %vm1047_vm2, 0.0, %v1942_v15  ;;  %v1535_v51 = vsel %vm1047_vm2, %v1534_v7, %v5906_v56 }
 0x439   : > { %v6428_v15 = vperm.slane %v1535_v51, %v5652_v53 }
 0x43a   : > { %v2537_v52 = vpop.permute.xlu1 %2536  ;;  %v1523_v50 = vsel %vm1047_vm2, %v1522_v9, %v5638_v45  ;;  %v1973_v62 = vsel %vm1047_vm2, %v6377_v49, %v1972_v18 }
 0x43b   : > { %v2622_v12 = vsel %vm1367_vm3, %v5862_v54, %v2537_v52  ;;  %2604 = vrot.lane.b32.xlu2 %v2518_v1, %s5331_s9  ;;  %v1560_v54 = vrot.slane %v6366_v42, 4  ;;  %v6413_v43 = vperm.slane %v1523_v50, %v5652_v53  ;;  %v6417_v24 = vperm.slane %v1973_v62, %v5680_v8 }
 0x43c   : > { %v2623_v6 = vsel %vm1369_vm4, %v2622_v12, %v6256_v40  ;;  %2155 = vrot.lane.b32.xlu0 %v6369_v61, %s5330_s8  ;;  %v6398_v40 = vperm.slane %v1915_v33, %v5680_v8 }
 0x43d   : > { %v2624_v20 = vsel %vm1371_vm5, %v2623_v6, %v6289_v11  ;;  %v2533_v58 = vpop.permute.xlu2 %2532  ;;  %v1503_v11 = vsel %vm1047_vm2, %v1502_v17, %v6233_v59  ;;  %v1561_v16 = vsel %vm1047_vm2, %v6383_v63, %v1560_v54 }
 0x43e   : > { %v2652_v13 = vrot.slane %v2624_v20, 4  ;;  %v6394_v10 = vpop.permute.xlu0 %2564  ;;  %v6420_v59 = vperm.slane %v1503_v11, %v5680_v8  ;;  %v1938_v52 = vrot.slane %v6398_v40, 4  ;;  %v1569_v56 = vperm.slane %v1561_v16, %v5680_v8 }
 0x43f   : > { %v2004_v16 = vrot.slane %v5581_v28, 4 }
 0x440   : > { %2668 = vst [vmem:[#allocation2 + $0x48] sm:$0xf0] %v2652_v13  ;;  %2127 = vrot.lane.b32.xlu1 %v1943_v21, %s5332_s10  ;;  %v1518_v18 = vrot.slane %v6420_v59, 4  ;;  %v1939_v20 = vsel %vm1047_vm2, 0.0, %v1938_v52  ;;  %v1576_v54 = vrot.slane %v1569_v56, 4  ;;  %v1490_v21 = vrot.slane %v6285_v60, 4 }
 0x441   : > { %v2016_v60 = vrot.slane %v5768_v35, 4 }
 0x442   : > { %v2525_v45 = vpop.permute.xlu1 %2524  ;;  %v1519_v50 = vsel %vm1047_vm2, 0.0, %v1518_v18  ;;  %v1577_v62 = vsel %vm1047_vm2, 0.0, %v1576_v54 }
 0x443   : > { %v2619_v1 = vsel %vm1367_vm3, %v5898_v36, %v2525_v45  ;;  %2135 = vrot.lane.b32.xlu2 %v1945_v22, %s5331_s9  ;;  %v1548_v36 = vrot.slane %v6413_v43, 4  ;;  %v2005_v45 = vsel %vm1047_vm2, %v6038_v23, %v2004_v16 }
 0x444   : > { %v2620_v33 = vsel %vm1369_vm4, %v2619_v1, %v6292_v44  ;;  %2143 = vrot.lane.b32.xlu0 %v6417_v24, %s5330_s8  ;;  %v1940_v1 = vrot.slane %v6279_v32, 4  ;;  %v6473_v18 = vperm.slane %v2005_v45, %v5652_v53 }
 0x445   : > { %v2621_v9 = vsel %vm1371_vm5, %v2620_v33, %v2533_v58  ;;  %v1325_v17 = vpop.permute.xlu2 %1324  ;;  %v1549_v44 = vsel %vm1047_vm2, %v6428_v15, %v1548_v36  ;;  %v2737_v58 = vrot.slane %v5932_v39, 4  ;;  %v1491_v33 = vsel %vm1047_vm2, %v1490_v21, %v6273_v0 }
 0x446   : > { %v2651_v12 = vrot.slane %v2621_v9, 4  ;;  %v1333_v6 = vpop.permute.xlu0 %1332  ;;  %v1557_v11 = vperm.slane %v1549_v44, %v5680_v8  ;;  %v1982_v9 = vrot.slane %v6325_v14, 4  ;;  %v1941_v32 = vsel %vm1047_vm2, 0.0, %v1940_v1 }
 0x447   : > { %v1385_v7 = vsel %vm1367_vm3, %v5920_v37, %v1333_v6  ;;  %v2725_v6 = vrot.slane %v5585_v29, 4 }
 0x448   : > { %2667 = vst [vmem:[#allocation2 + $0x40] sm:$0xf0] %v2651_v12  ;;  %2115 = vrot.lane.b32.xlu1 %v1939_v20, %s5332_s10  ;;  %v1386_v13 = vsel %vm1369_vm4, %v1385_v7, %v6340_v30  ;;  %v2738_v30 = vsel %vm1047_vm2, %v6194_v3, %v2737_v58  ;;  %v1572_v52 = vrot.slane %v1557_v11, 4  ;;  %v2017_v12 = vsel %vm1047_vm2, %v6216_v41, %v2016_v60 }
 0x449   : > { %v2746_v36 = vperm.slane %v2738_v30, %v5652_v53  ;;  %v6477_v20 = vperm.slane %v1491_v33, %v5680_v8  ;;  %v2726_v0 = vsel %vm1047_vm2, %v5915_v55, %v2725_v6  ;;  %v6482_v14 = vperm.slane %v2017_v12, %v5652_v53 }
 0x44a   : > { %v1341_v4 = vpop.permute.xlu1 %1340  ;;  %v1983_v44 = vsel %vm1047_vm2, %v1982_v9, %v6320_v57  ;;  %v2040_v58 = vrot.slane %v6473_v18, 4  ;;  %v2735_v60 = vrot.slane %v6194_v3, 4  ;;  %v2014_v12 = vrot.slane %v6216_v41, 4 }
 0x44b   : > { %v1387_v37 = vsel %vm1371_vm5, %v1386_v13, %v1341_v4  ;;  %1703 = vrot.lane.b32.xlu2 %v1519_v50, %s5332_s10  ;;  %v2759_v54 = vrot.slane %v2746_v36, 4  ;;  %v2734_v4 = vperm.slane %v2726_v0, %v5652_v53  ;;  %v1514_v21 = vrot.slane %v6477_v20, 4 }
 0x44c   : > { %1399 = vst [vmem:[#allocation2 + $0x28] sm:$0xf] %v1387_v37  ;;  %1735 = vrot.lane.b32.xlu0 %v1577_v62, %s5331_s9  ;;  %v2041_v62 = vsel %vm1047_vm2, %v6482_v14, %v2040_v58  ;;  %v6499_v16 = vperm.slane %v1983_v44, %v5680_v8 }
 0x44d   : > { %v6456_v51 = vpop.permute.xlu2 %1872  ;;  %v2760_v30 = vsel %vm1047_vm2, %v2759_v54, %v2734_v4  ;;  %v2761_v1 = vrot.slane %v2734_v4, 4  ;;  %v1515_v33 = vsel %vm1047_vm2, 0.0, %v1514_v21  ;;  %v6509_v9 = vperm.slane %v2041_v62, %v5680_v8 }
 0x44e   : > { %v6461_v22 = vpop.permute.xlu0 %2552  ;;  %v6516_v3 = vperm.slane %v2760_v30, %v5680_v8  ;;  %v2000_v54 = vrot.slane %v6369_v61, 4  ;;  %v1558_v61 = vrot.slane %v6383_v63, 4 }
 0x44f   : > { %v2762_v6 = vsel %vm1047_vm2, %v2746_v36, %v2761_v1 }
 0x450   : > { %1731 = vrot.lane.b32.xlu1 %v1569_v56, %s5330_s8  ;;  %v1573_v56 = vsel %vm1047_vm2, 0.0, %v1572_v52  ;;  %v2002_v52 = vrot.slane %v6038_v23, 4  ;;  %v2775_v36 = vrot.slane %v6516_v3, 4  ;;  %v2770_v58 = vperm.slane %v2762_v6, %v5680_v8 }
 0x451   : > { %v2001_v21 = vsel %vm1047_vm2, 0.0, %v2000_v54 }
 0x452   : > { %v1329_v7 = vpop.permute.xlu1 %1328  ;;  %v2003_v0 = vsel %vm1047_vm2, %v2002_v52, %v5581_v28  ;;  %v2015_v28 = vsel %vm1047_vm2, %v2014_v12, %v5768_v35  ;;  %v2776_v35 = vsel %vm1047_vm2, 0.0, %v2775_v36  ;;  %v2777_v62 = vrot.slane %v2770_v58, 4  ;;  %v8327_v52 = vld [vmem:[#allocation49_spill] sm:$0xff] }
 0x453   : > { %2123 = vrot.lane.b32.xlu2 %v1941_v32, %s5331_s9  ;;  %v2723_v32 = vrot.slane %v5915_v55, 4  ;;  %v6544_v4 = vperm.slane %v2003_v0, %v5652_v53  ;;  %v1578_v36 = vrot.slane %v5952_v38, 4 }
 0x454   : > { %1723 = vrot.lane.b32.xlu0 %v1573_v56, %s5331_s9 }
 0x455   : > { %v6490_v13 = vpop.permute.xlu2 %2703 }
 0x456   : > { %v1321_v50 = vpop.permute.xlu0 %1320 }
 0x457   : > { %v1382_v37 = vsel %vm1367_vm3, %v5971_v2, %v1321_v50 }
 0x458   : > { %v1383_v57 = vsel %vm1369_vm4, %v1382_v37, %v1325_v17  ;;  %1719 = vrot.lane.b32.xlu1 %v1557_v11, %s5330_s8  ;;  %v1998_v11 = vrot.slane %v6499_v16, 4  ;;  %v6551_v37 = vperm.slane %v2015_v28, %v5652_v53 }
 0x459   : > { %v1384_v45 = vsel %vm1371_vm5, %v1383_v57, %v1329_v7  ;;  %v1580_v57 = vrot.slane %v5601_v34, 4 }
 0x45a   : > { %1398 = vst [vmem:[#allocation2 + $0x20] sm:$0xf] %v1384_v45  ;;  %v2561_v2 = vpop.permute.xlu1 %2560 }
 0x45b   : > { %v2628_v17 = vsel %vm1367_vm3, %v5998_v48, %v2561_v2  ;;  %1691 = vrot.lane.b32.xlu2 %v1515_v33, %s5332_s10  ;;  %v2736_v48 = vsel %vm1047_vm2, %v2735_v60, %v5932_v39  ;;  %v1970_v39 = vrot.slane %v6377_v49, 4  ;;  %v2724_v49 = vsel %vm1047_vm2, %v2723_v32, %v5585_v29  ;;  %v8329_v32 = vld [vmem:[#allocation52_spill] sm:$0xff] }
 0x45c   : > { %2179 = vrot.lane.b32.xlu0 %v6509_v9, %s5330_s8  ;;  %v2629_v23 = vsel %vm1369_vm4, %v2628_v17, %v6394_v10  ;;  %v1999_v10 = vsel %vm1047_vm2, 0.0, %v1998_v11  ;;  %v6538_v55 = vperm.slane %v2736_v48, %v5652_v53  ;;  %v2028_v60 = vrot.slane %v6544_v4, 4  ;;  %v8328_v11 = vld [vmem:[#allocation53_spill] sm:$0xff] }
 0x45d   : > { %v2569_v7 = vpop.permute.xlu2 %2568  ;;  %v1971_v63 = vsel %vm1047_vm2, %v1970_v39, %v6360_v27  ;;  %v2730_v45 = vperm.slane %v2724_v49, %v5652_v53  ;;  %v1581_v1 = vsel %vm1047_vm2, %v5952_v38, %v1580_v57  ;;  %v1592_v2 = vrot.slane %v8327_v52, 4 }
 0x45e   : > { %v2630_v56 = vsel %vm1371_vm5, %v2629_v23, %v2569_v7  ;;  %v6530_v41 = vpop.permute.xlu0 %2588  ;;  %v2747_v30 = vrot.slane %v6538_v55, 4  ;;  %v1559_v17 = vsel %vm1047_vm2, %v1558_v61, %v6366_v42  ;;  %v2778_v23 = vsel %vm1047_vm2, 0.0, %v2777_v62 }
 0x45f   : > { %v2654_v44 = vrot.slane %v2630_v56, 4  ;;  %v2029_v27 = vsel %vm1047_vm2, %v6551_v37, %v2028_v60  ;;  %v6573_v6 = vperm.slane %v1971_v63, %v5680_v8  ;;  %v6578_v7 = vperm.slane %v1581_v1, %v5652_v53 }
 0x460   : > { %2151 = vrot.lane.b32.xlu1 %v1999_v10, %s5332_s10  ;;  %v2748_v48 = vsel %vm1047_vm2, %v2747_v30, %v2730_v45  ;;  %v1593_v42 = vsel %vm1047_vm2, %v6275_v25, %v1592_v2  ;;  %v6589_v10 = vperm.slane %v1559_v17, %v5680_v8  ;;  %v1579_v30 = vsel %vm1047_vm2, %v1578_v36, %v5601_v34  ;;  %v8330_v36 = vld [vmem:[#allocation39_spill] sm:$0xff] }
 0x461   : > { %2670 = vst [vmem:[#allocation2 + $0x58] sm:$0xf0] %v2654_v44  ;;  %v6586_v44 = vperm.slane %v2029_v27, %v5680_v8  ;;  %v1994_v28 = vrot.slane %v6573_v6, 4  ;;  %v6596_v61 = vperm.slane %v2748_v48, %v5680_v8  ;;  %v2749_v1 = vrot.slane %v2730_v45, 4 }
 0x462   : > { %v2549_v50 = vpop.permute.xlu1 %2548  ;;  %v1574_v57 = vrot.slane %v6589_v10, 4  ;;  %v6621_v2 = vperm.slane %v1579_v30, %v5652_v53  ;;  %v1996_v48 = vrot.slane %v6417_v24, 4 }
 0x463   : > { %2159 = vrot.lane.b32.xlu2 %v2001_v21, %s5331_s9  ;;  %v2625_v0 = vsel %vm1367_vm3, %v8329_v32, %v2549_v50  ;;  %v6599_v50 = vperm.slane %v1593_v42, %v5652_v53  ;;  %v1590_v21 = vrot.slane %v6275_v25, 4  ;;  %v1995_v60 = vsel %vm1047_vm2, 0.0, %v1994_v28 }
 0x464   : > { %2960 = vrot.lane.b32.xlu0 %v2776_v35, %s5332_s10  ;;  %v2626_v38 = vsel %vm1369_vm4, %v2625_v0, %v6461_v22  ;;  %v2771_v25 = vrot.slane %v6596_v61, 4  ;;  %v1575_v34 = vsel %vm1047_vm2, 0.0, %v1574_v57  ;;  %v2750_v45 = vsel %vm1047_vm2, %v6538_v55, %v2749_v1 }
 0x465   : > { %v1361_v29 = vpop.permute.xlu2 %1360  ;;  %v2758_v0 = vperm.slane %v2750_v45, %v5680_v8  ;;  %v1997_v24 = vsel %vm1047_vm2, 0.0, %v1996_v48  ;;  %v8334_v48 = vld [vmem:[#allocation55_spill] sm:$0xff] }
 0x466   : > { %v1357_v33 = vpop.permute.xlu0 %1356  ;;  %v2772_v17 = vsel %vm1047_vm2, 0.0, %v2771_v25 }
 0x467   : > { %v1391_v12 = vsel %vm1367_vm3, %v8328_v11, %v1357_v33 }
 0x468   : > { %2968 = vrot.lane.b32.xlu1 %v2778_v23, %s5331_s9  ;;  %v1392_v56 = vsel %vm1369_vm4, %v1391_v12, %v1361_v29  ;;  %v1591_v29 = vsel %vm1047_vm2, %v1590_v21, %v8327_v52  ;;  %v1604_v23 = vrot.slane %v6621_v2, 4 }
 0x469   : > { %v6628_v12 = vperm.slane %v1591_v29, %v5652_v53 }
 0x46a   : > { %v1365_v54 = vpop.permute.xlu1 %1364 }
 0x46b   : > { %v1393_v39 = vsel %vm1371_vm5, %v1392_v56, %v1365_v54  ;;  %2964 = vrot.lane.b32.xlu2 %v2770_v58, %s5330_s8  ;;  %v1616_v58 = vrot.slane %v6578_v7, 4  ;;  %v1605_v54 = vsel %vm1047_vm2, %v6628_v12, %v1604_v23 }
 0x46c   : > { %1401 = vst [vmem:[#allocation2 + $0x38] sm:$0xf] %v1393_v39  ;;  %2167 = vrot.lane.b32.xlu0 %v6586_v44, %s5330_s8  ;;  %v2793_v39 = vrot.slane %v8330_v36, 4 }
 0x46d   : > { %v2557_v49 = vpop.permute.xlu2 %2556  ;;  %v1617_v22 = vsel %vm1047_vm2, %v6599_v50, %v1616_v58  ;;  %v8331_v58 = vld [vmem:[#allocation31_spill] sm:$0xff] }
 0x46e   : > { %v2627_v35 = vsel %vm1371_vm5, %v2626_v38, %v2557_v49  ;;  %v6608_v62 = vpop.permute.xlu0 %2576  ;;  %v1625_v11 = vperm.slane %v1617_v22, %v5680_v8  ;;  %v2773_v49 = vrot.slane %v2758_v0, 4  ;;  %v1613_v38 = vperm.slane %v1605_v54, %v5680_v8 }
 0x46f   : > { %v2653_v63 = vrot.slane %v2627_v35, 4  ;;  %v2060_v35 = vrot.slane %v8331_v58, 4  ;;  %v2794_v57 = vsel %vm1047_vm2, %v6310_v31, %v2793_v39 }
 0x470   : > { %2139 = vrot.lane.b32.xlu1 %v1995_v60, %s5332_s10  ;;  %v1632_v32 = vrot.slane %v1625_v11, 4  ;;  %v2774_v22 = vsel %vm1047_vm2, 0.0, %v2773_v49  ;;  %v1628_v29 = vrot.slane %v1613_v38, 4 }
 0x471   : > { %2669 = vst [vmem:[#allocation2 + $0x50] sm:$0xf0] %v2653_v63  ;;  %v8332_v63 = vld [vmem:[#allocation48_spill] sm:$0xff] }
 0x472   : > { %v1353_v33 = vpop.permute.xlu1 %1352  ;;  %v1633_v21 = vsel %vm1047_vm2, 0.0, %v1632_v32  ;;  %v2072_v60 = vrot.slane %v8332_v63, 4  ;;  %v1629_v32 = vsel %vm1047_vm2, 0.0, %v1628_v29 }
 0x473   : > { %1727 = vrot.lane.b32.xlu2 %v1575_v34, %s5332_s10  ;;  %v2802_v34 = vperm.slane %v2794_v57, %v5652_v53  ;;  %v2791_v57 = vrot.slane %v6310_v31, 4  ;;  %v2070_v31 = vrot.slane %v6456_v51, 4 }
 0x474   : > { %2948 = vrot.lane.b32.xlu0 %v2772_v17, %s5332_s10  ;;  %v2073_v17 = vsel %vm1047_vm2, %v6456_v51, %v2072_v60  ;;  %v2058_v60 = vrot.slane %v6122_v26, 4 }
 0x475   : > { %v1349_v52 = vpop.permute.xlu2 %1348 }
 0x476   : > { %v1345_v27 = vpop.permute.xlu0 %1344 }
 0x477   : > { %v1388_v42 = vsel %vm1367_vm3, %v6107_v19, %v1345_v27  ;;  %v1546_v19 = vrot.slane %v6428_v15, 4  ;;  %v2061_v15 = vsel %vm1047_vm2, %v6122_v26, %v2060_v35 }
 0x478   : > { %v1389_v56 = vsel %vm1369_vm4, %v1388_v42, %v1349_v52  ;;  %1755 = vrot.lane.b32.xlu1 %v1625_v11, %s5330_s8  ;;  %v8333_v11 = vld [vmem:[#allocation40_spill] sm:$0xff]  ;;  %v6670_v52 = vperm.slane %v2061_v15, %v5652_v53 }
 0x479   : > { %v1390_v55 = vsel %vm1371_vm5, %v1389_v56, %v1353_v33  ;;  %v1547_v1 = vsel %vm1047_vm2, %v1546_v19, %v6413_v43  ;;  %v2038_v33 = vrot.slane %v6482_v14, 4  ;;  %v2781_v45 = vrot.slane %v8333_v11, 4 }
 0x47a   : > { %1400 = vst [vmem:[#allocation2 + $0x30] sm:$0xf] %v1390_v55  ;;  %v6644_v28 = vpop.permute.xlu1 %2705  ;;  %v6673_v27 = vperm.slane %v1547_v1, %v5680_v8  ;;  %v6678_v14 = vperm.slane %v2073_v17, %v5652_v53  ;;  %v2815_v56 = vrot.slane %v2802_v34, 4  ;;  %v2096_v39 = vrot.slane %v6670_v52, 4  ;;  %v8335_v1 = vld [vmem:[#allocation60_spill] sm:$0xff] }
 0x47b   : > { %2147 = vrot.lane.b32.xlu2 %v1997_v24, %s5331_s9  ;;  %v2782_v43 = vsel %vm1047_vm2, %v8334_v48, %v2781_v45  ;;  %v2039_v55 = vsel %vm1047_vm2, %v2038_v33, %v6473_v18 }
 0x47c   : > { %1759 = vrot.lane.b32.xlu0 %v1633_v21, %s5331_s9  ;;  %v1570_v49 = vrot.slane %v6673_v27, 4  ;;  %v6698_v35 = vperm.slane %v2039_v55, %v5680_v8 }
 0x47d   : > { %v2593_v30 = vpop.permute.xlu2 %2592 }
 0x47e   : > { %v6658_v25 = vpop.permute.xlu0 %2612 }
 0x480   : > { %2956 = vrot.lane.b32.xlu1 %v2774_v22, %s5331_s9  ;;  %v1571_v22 = vsel %vm1047_vm2, 0.0, %v1570_v49  ;;  %v8336_v49 = vld [vmem:[#allocation61_spill] sm:$0xff] }
 0x482   : > { %v2585_v23 = vpop.permute.xlu1 %2584 }
 0x483   : > { %v2634_v42 = vsel %vm1367_vm3, %v6151_v47, %v2585_v23  ;;  %2952 = vrot.lane.b32.xlu2 %v2758_v0, %s5330_s8  ;;  %v2790_v47 = vperm.slane %v2782_v43, %v5652_v53  ;;  %v2792_v23 = vsel %vm1047_vm2, %v2791_v57, %v8330_v36  ;;  %v2026_v36 = vrot.slane %v6551_v37, 4  ;;  %v8337_v57 = vld [vmem:[#allocation42_spill] sm:$0xff] }
 0x484   : > { %v2635_v54 = vsel %vm1369_vm4, %v2634_v42, %v6530_v41  ;;  %1747 = vrot.lane.b32.xlu0 %v1629_v32, %s5331_s9  ;;  %v2097_v41 = vsel %vm1047_vm2, %v6678_v14, %v2096_v39  ;;  %v2779_v32 = vrot.slane %v8334_v48, 4  ;;  %v2071_v48 = vsel %vm1047_vm2, %v2070_v31, %v8332_v63 }
 0x485   : > { %v2636_v24 = vsel %vm1371_vm5, %v2635_v54, %v2593_v30  ;;  %v2581_v19 = vpop.permute.xlu2 %2580  ;;  %v2816_v18 = vsel %vm1047_vm2, %v2815_v56, %v2790_v47  ;;  %v2817_v30 = vrot.slane %v2790_v47, 4  ;;  %v6706_v29 = vperm.slane %v2097_v41, %v5680_v8 }
 0x486   : > { %v2656_v21 = vrot.slane %v2636_v24, 4  ;;  %v6692_v0 = vpop.permute.xlu0 %2600  ;;  %v6713_v17 = vperm.slane %v2816_v18, %v5680_v8  ;;  %v2059_v56 = vsel %vm1047_vm2, %v2058_v60, %v8331_v58  ;;  %v6735_v24 = vperm.slane %v2792_v23, %v5652_v53 }
 0x487   : > { %v2818_v45 = vsel %vm1047_vm2, %v2802_v34, %v2817_v30  ;;  %v6741_v58 = vperm.slane %v2059_v56, %v5652_v53  ;;  %v1636_v30 = vrot.slane %v8337_v57, 4  ;;  %v2027_v60 = vsel %vm1047_vm2, %v2026_v36, %v6544_v4 }
 0x488   : > { %2672 = vst [vmem:[#allocation2 + $0x68] sm:$0xf0] %v2656_v21  ;;  %1743 = vrot.lane.b32.xlu1 %v1613_v38, %s5330_s8  ;;  %v2054_v38 = vrot.slane %v6698_v35, 4  ;;  %v2831_v34 = vrot.slane %v6713_v17, 4  ;;  %v2826_v39 = vperm.slane %v2818_v45, %v5680_v8  ;;  %v6748_v21 = vperm.slane %v2071_v48, %v5652_v53  ;;  %v8340_v48 = vld [vmem:[#allocation62_spill] sm:$0xff] }
 0x48a   : > { %v2573_v15 = vpop.permute.xlu1 %2572  ;;  %v2055_v55 = vsel %vm1047_vm2, 0.0, %v2054_v38  ;;  %v2832_v41 = vsel %vm1047_vm2, 0.0, %v2831_v34  ;;  %v2833_v18 = vrot.slane %v2826_v39, 4 }
 0x48b   : > { %v2631_v33 = vsel %vm1367_vm3, %v8335_v1, %v2573_v15  ;;  %1715 = vrot.lane.b32.xlu2 %v1571_v22, %s5332_s10  ;;  %v2084_v15 = vrot.slane %v6741_v58, 4 }
 0x48c   : > { %v2632_v26 = vsel %vm1369_vm4, %v2631_v33, %v6608_v62  ;;  %2203 = vrot.lane.b32.xlu0 %v6706_v29, %s5330_s8  ;;  %v2056_v62 = vrot.slane %v6509_v9, 4  ;;  %v2780_v9 = vsel %vm1047_vm2, %v2779_v32, %v8333_v11  ;;  %v2803_v11 = vrot.slane %v6735_v24, 4  ;;  %v8338_v33 = vld [vmem:[#allocation43_spill] sm:$0xff] }
 0x48d   : > { %v2633_v43 = vsel %vm1371_vm5, %v2632_v26, %v2581_v19  ;;  %v2617_v42 = vpop.permute.xlu2 %2616  ;;  %v1614_v19 = vrot.slane %v6599_v50, 4  ;;  %v1648_v38 = vrot.slane %v8338_v33, 4  ;;  %v2786_v31 = vperm.slane %v2780_v9, %v5652_v53  ;;  %v8339_v26 = vld [vmem:[#allocation56_spill] sm:$0xff] }
 0x48e   : > { %v2655_v51 = vrot.slane %v2633_v43, 4  ;;  %v6727_v54 = vpop.permute.xlu0 %2131  ;;  %v2057_v37 = vsel %vm1047_vm2, 0.0, %v2056_v62  ;;  %v1637_v45 = vsel %vm1047_vm2, %v8339_v26, %v1636_v30  ;;  %v2085_v4 = vsel %vm1047_vm2, %v6748_v21, %v2084_v15 }
 0x48f   : > { %v6773_v32 = vperm.slane %v2027_v60, %v5680_v8  ;;  %v2804_v56 = vsel %vm1047_vm2, %v2803_v11, %v2786_v31  ;;  %v6782_v62 = vperm.slane %v1637_v45, %v5652_v53  ;;  %v6785_v34 = vperm.slane %v2085_v4, %v5680_v8  ;;  %v8341_v45 = vld [vmem:[#allocation51_spill] sm:$0xff] }
 0x490   : > { %2671 = vst [vmem:[#allocation2 + $0x60] sm:$0xf0] %v2655_v51  ;;  %2175 = vrot.lane.b32.xlu1 %v2055_v55, %s5332_s10  ;;  %v1649_v51 = vsel %vm1047_vm2, %v6346_v46, %v1648_v38 }
 0x492   : > { %v2609_v47 = vpop.permute.xlu1 %2608 }
 0x493   : > { %v2640_v63 = vsel %vm1367_vm3, %v8336_v49, %v2609_v47  ;;  %2183 = vrot.lane.b32.xlu2 %v2057_v37, %s5331_s9  ;;  %v6796_v47 = vperm.slane %v2804_v56, %v5680_v8  ;;  %v6799_v37 = vperm.slane %v1649_v51, %v5652_v53 }
 0x494   : > { %v2641_v50 = vsel %vm1369_vm4, %v2640_v63, %v6658_v25  ;;  %2984 = vrot.lane.b32.xlu0 %v2832_v41, %s5332_s10  ;;  %v2834_v25 = vsel %vm1047_vm2, 0.0, %v2833_v18  ;;  %v1646_v63 = vrot.slane %v6346_v46, 4 }
 0x495   : > { %v2642_v22 = vsel %vm1371_vm5, %v2641_v50, %v2617_v42  ;;  %v2605_v1 = vpop.permute.xlu2 %2604  ;;  %v1615_v42 = vsel %vm1047_vm2, %v1614_v19, %v6578_v7  ;;  %v1634_v7 = vrot.slane %v8339_v26, 4  ;;  %v2050_v19 = vrot.slane %v6773_v32, 4 }
 0x496   : > { %v2658_v23 = vrot.slane %v2642_v22, 4  ;;  %v6767_v43 = vpop.permute.xlu0 %2119  ;;  %v6788_v36 = vperm.slane %v1615_v42, %v5680_v8  ;;  %v2827_v15 = vrot.slane %v6796_v47, 4  ;;  %v1647_v22 = vsel %vm1047_vm2, %v1646_v63, %v8338_v33  ;;  %v8342_v63 = vld [vmem:[#allocation34_spill] sm:$0xff] }
 0x497   : > { %v1635_v60 = vsel %vm1047_vm2, %v1634_v7, %v8337_v57  ;;  %v6829_v42 = vperm.slane %v1647_v22, %v5652_v53 }
 0x498   : > { %2674 = vst [vmem:[#allocation2 + $0x78] sm:$0xf0] %v2658_v23  ;;  %2992 = vrot.lane.b32.xlu1 %v2834_v25, %s5331_s9  ;;  %v1630_v50 = vrot.slane %v6788_v36, 4  ;;  %v6821_v38 = vperm.slane %v1635_v60, %v5652_v53  ;;  %v2849_v23 = vrot.slane %v8341_v45, 4  ;;  %v2828_v25 = vsel %vm1047_vm2, 0.0, %v2827_v15 }
 0x49a   : > { %v2597_v55 = vpop.permute.xlu1 %2596  ;;  %v1631_v57 = vsel %vm1047_vm2, 0.0, %v1630_v50  ;;  %v1660_v51 = vrot.slane %v6821_v38, 4  ;;  %v8343_v50 = vld [vmem:[#allocation58_spill] sm:$0xff] }
 0x49b   : > { %v2637_v9 = vsel %vm1367_vm3, %v8340_v48, %v2597_v55  ;;  %2988 = vrot.lane.b32.xlu2 %v2826_v39, %s5330_s8  ;;  %v1672_v39 = vrot.slane %v6782_v62, 4  ;;  %v2052_v48 = vrot.slane %v6586_v44, 4 }
 0x49c   : > { %v2638_v49 = vsel %vm1369_vm4, %v2637_v9, %v6692_v0  ;;  %2191 = vrot.lane.b32.xlu0 %v6785_v34, %s5330_s8  ;;  %v2051_v0 = vsel %vm1047_vm2, 0.0, %v2050_v19 }
 0x49d   : > { %v2639_v41 = vsel %vm1371_vm5, %v2638_v49, %v2605_v1  ;;  %v6807_v18 = vpop.permute.xlu2 %2135  ;;  %v1673_v46 = vsel %vm1047_vm2, %v6799_v37, %v1672_v39  ;;  %v2805_v1 = vrot.slane %v2786_v31, 4  ;;  %v2850_v31 = vsel %vm1047_vm2, %v6490_v13, %v2849_v23 }
 0x49e   : > { %v2657_v30 = vrot.slane %v2639_v41, 4  ;;  %v1712_v11 = vpop.permute.xlu0 %1711  ;;  %v1681_v4 = vperm.slane %v1673_v46, %v5680_v8  ;;  %v2837_v41 = vrot.slane %v8342_v63, 4  ;;  %v2053_v15 = vsel %vm1047_vm2, 0.0, %v2052_v48 }
 0x49f   : > { %v2806_v33 = vsel %vm1047_vm2, %v6735_v24, %v2805_v1  ;;  %v6844_v24 = vperm.slane %v2850_v31, %v5652_v53  ;;  %v1602_v46 = vrot.slane %v6628_v12, 4  ;;  %v2835_v12 = vrot.slane %v8343_v50, 4 }
 0x4a0   : > { %2673 = vst [vmem:[#allocation2 + $0x70] sm:$0xf0] %v2657_v30  ;;  %2163 = vrot.lane.b32.xlu1 %v2051_v0, %s5332_s10  ;;  %v1688_v19 = vrot.slane %v1681_v4, 4  ;;  %v2814_v49 = vperm.slane %v2806_v33, %v5680_v8  ;;  %v2847_v30 = vrot.slane %v6490_v13, 4  ;;  %v2838_v60 = vsel %vm1047_vm2, %v8343_v50, %v2837_v41 }
 0x4a1   : > { %v2846_v23 = vperm.slane %v2838_v60, %v5652_v53  ;;  %v1603_v31 = vsel %vm1047_vm2, %v1602_v46, %v6621_v2  ;;  %v2836_v41 = vsel %vm1047_vm2, %v2835_v12, %v8342_v63  ;;  %v2903_v12 = vrot.slane %v6644_v28, 4 }
 0x4a2   : > { %v1708_v26 = vpop.permute.xlu1 %1707  ;;  %v2829_v22 = vrot.slane %v2814_v49, 4  ;;  %v2848_v13 = vsel %vm1047_vm2, %v2847_v30, %v8341_v45  ;;  %v6899_v50 = vperm.slane %v2836_v41, %v5652_v53 }
 0x4a3   : > { %1751 = vrot.lane.b32.xlu2 %v1631_v57, %s5332_s10 }
 0x4a4   : > { %2972 = vrot.lane.b32.xlu0 %v2828_v25, %s5332_s10 }
 0x4a5   : > { %v1704_v56 = vpop.permute.xlu2 %1703 }
 0x4a6   : > { %v1789_v55 = vsel %vm1367_vm3, %v6420_v59, %v1704_v56  ;;  %v1700_v7 = vpop.permute.xlu0 %1699  ;;  %v1661_v59 = vsel %vm1047_vm2, %v6829_v42, %v1660_v51  ;;  %v2094_v56 = vrot.slane %v6678_v14, 4  ;;  %v6871_v51 = vperm.slane %v2848_v13, %v5652_v53 }
 0x4a7   : > { %v1790_v9 = vsel %vm1369_vm4, %v1789_v55, %v1708_v26  ;;  %v1669_v1 = vperm.slane %v1661_v59, %v5680_v8  ;;  %v2871_v26 = vrot.slane %v6844_v24, 4  ;;  %v8344_v55 = vld [vmem:[#allocation54_spill] sm:$0xff] }
 0x4a8   : > { %v1791_v39 = vsel %vm1371_vm5, %v1790_v9, %v1712_v11  ;;  %1779 = vrot.lane.b32.xlu1 %v1681_v4, %s5330_s8  ;;  %v1689_v11 = vsel %vm1047_vm2, 0.0, %v1688_v19  ;;  %v2830_v4 = vsel %vm1047_vm2, 0.0, %v2829_v22  ;;  %v2905_v48 = vrot.slane %v8344_v55, 4 }
 0x4a9   : > { %v1819_v44 = vrot.slane %v1791_v39, 4  ;;  %v1684_v33 = vrot.slane %v1669_v1, 4  ;;  %v2872_v45 = vsel %vm1047_vm2, %v2871_v26, %v2846_v23  ;;  %v6877_v19 = vperm.slane %v1603_v31, %v5680_v8 }
 0x4aa   : > { %v1696_v0 = vpop.permute.xlu1 %1695  ;;  %v6886_v39 = vperm.slane %v2872_v45, %v5680_v8  ;;  %v2859_v59 = vrot.slane %v6871_v51, 4  ;;  %v2095_v63 = vsel %vm1047_vm2, %v2094_v56, %v6670_v52 }
 0x4ab   : > { %1835 = vst [vmem:[#allocation2 + $0x8] sm:$0xf0] %v1819_v44  ;;  %2171 = vrot.lane.b32.xlu2 %v2053_v15, %s5331_s9  ;;  %v1685_v14 = vsel %vm1047_vm2, 0.0, %v1684_v33  ;;  %v1626_v15 = vrot.slane %v6877_v19, 4  ;;  %v8346_v33 = vld [vmem:[#allocation59_spill] sm:$0xff] }
 0x4ac   : > { %1783 = vrot.lane.b32.xlu0 %v1689_v11, %s5331_s9  ;;  %v2887_v46 = vrot.slane %v6886_v39, 4  ;;  %v6909_v11 = vperm.slane %v2095_v63, %v5680_v8 }
 0x4ad   : > { %v2124_v57 = vpop.permute.xlu2 %2123  ;;  %v1627_v45 = vsel %vm1047_vm2, 0.0, %v1626_v15 }
 0x4ae   : > { %v6863_v25 = vpop.permute.xlu0 %2155 }
 0x4b0   : > { %2980 = vrot.lane.b32.xlu1 %v2830_v4, %s5331_s9  ;;  %v2873_v4 = vrot.slane %v2846_v23, 4 }
 0x4b2   : > { %v2128_v9 = vpop.permute.xlu1 %2127  ;;  %v2874_v41 = vsel %vm1047_vm2, %v6844_v24, %v2873_v4 }
 0x4b3   : > { %v2213_v2 = vsel %vm1367_vm3, %v6349_v5, %v2128_v9  ;;  %2976 = vrot.lane.b32.xlu2 %v2814_v49, %s5330_s8  ;;  %v2906_v5 = vsel %vm1047_vm2, %v6644_v28, %v2905_v48 }
 0x4b4   : > { %v2214_v30 = vsel %vm1369_vm4, %v2213_v2, %v6727_v54  ;;  %1771 = vrot.lane.b32.xlu0 %v1685_v14, %s5331_s9  ;;  %v6913_v26 = vperm.slane %v2906_v5, %v5652_v53 }
 0x4b5   : > { %v2215_v49 = vsel %vm1371_vm5, %v2214_v30, %v6807_v18  ;;  %v1692_v44 = vpop.permute.xlu2 %1691  ;;  %v8345_v18 = vld [vmem:[#allocation26_spill] sm:$0xff] }
 0x4b6   : > { %2235 = vst [vmem:[#allocation2 + $0x48] sm:$0xf] %v2215_v49  ;;  %v1786_v60 = vsel %vm1367_vm3, %v6477_v20, %v1692_v44  ;;  %v6903_v54 = vpop.permute.xlu0 %2143  ;;  %v2893_v22 = vrot.slane %v8345_v18, 4  ;;  %v2860_v20 = vsel %vm1047_vm2, %v2859_v59, %v6899_v50  ;;  %v2927_v23 = vrot.slane %v6913_v26, 4 }
 0x4b7   : > { %v1787_v52 = vsel %vm1369_vm4, %v1786_v60, %v1696_v0  ;;  %v6929_v28 = vperm.slane %v2860_v20, %v5680_v8  ;;  %v2891_v59 = vrot.slane %v8346_v33, 4  ;;  %v2882_v49 = vperm.slane %v2874_v41, %v5680_v8 }
 0x4b8   : > { %v1788_v13 = vsel %vm1371_vm5, %v1787_v52, %v1700_v7  ;;  %1767 = vrot.lane.b32.xlu1 %v1669_v1, %s5330_s8  ;;  %v2894_v31 = vsel %vm1047_vm2, %v8346_v33, %v2893_v22  ;;  %v2888_v7 = vsel %vm1047_vm2, 0.0, %v2887_v46  ;;  %v2110_v1 = vrot.slane %v6909_v11, 4 }
 0x4b9   : > { %v1818_v0 = vrot.slane %v1788_v13, 4  ;;  %v6944_v30 = vperm.slane %v2894_v31, %v5652_v53  ;;  %v2883_v24 = vrot.slane %v6929_v28, 4  ;;  %v2892_v60 = vsel %vm1047_vm2, %v2891_v59, %v8345_v18 }
 0x4ba   : > { %v2116_v56 = vpop.permute.xlu1 %2115  ;;  %v2111_v5 = vsel %vm1047_vm2, 0.0, %v2110_v1  ;;  %v1670_v52 = vrot.slane %v6799_v37, 4  ;;  %v2889_v46 = vrot.slane %v2882_v49, 4 }
 0x4bb   : > { %1834 = vst [vmem:[#allocation2] sm:$0xf0] %v1818_v0  ;;  %v2210_v48 = vsel %vm1367_vm3, %v6398_v40, %v2116_v56  ;;  %1739 = vrot.lane.b32.xlu2 %v1627_v45, %s5332_s10  ;;  %v2904_v40 = vsel %vm1047_vm2, %v2903_v12, %v8344_v55  ;;  %v2082_v55 = vrot.slane %v6748_v21, 4  ;;  %v2928_v44 = vsel %vm1047_vm2, %v2927_v23, %v6944_v30 }
 0x4bc   : > { %v2211_v9 = vsel %vm1369_vm4, %v2210_v48, %v6767_v43  ;;  %3008 = vrot.lane.b32.xlu0 %v2888_v7, %s5332_s10  ;;  %v2112_v43 = vrot.slane %v6706_v29, 4  ;;  %v2884_v21 = vsel %vm1047_vm2, 0.0, %v2883_v24  ;;  %v6964_v22 = vperm.slane %v2928_v44, %v5680_v8 }
 0x4bd   : > { %v2212_v2 = vsel %vm1371_vm5, %v2211_v9, %v2124_v57  ;;  %v6940_v14 = vpop.permute.xlu2 %2159  ;;  %v6952_v57 = vperm.slane %v2904_v40, %v5652_v53  ;;  %v2083_v18 = vsel %vm1047_vm2, %v2082_v55, %v6741_v58  ;;  %v2898_v12 = vperm.slane %v2892_v60, %v5652_v53 }
 0x4be   : > { %2234 = vst [vmem:[#allocation2 + $0x40] sm:$0xf] %v2212_v2  ;;  %v1736_v63 = vpop.permute.xlu0 %1735  ;;  %v2113_v15 = vsel %vm1047_vm2, 0.0, %v2112_v43  ;;  %v2890_v37 = vsel %vm1047_vm2, 0.0, %v2889_v46  ;;  %v2943_v4 = vrot.slane %v6964_v22, 4  ;;  %v6976_v33 = vperm.slane %v2083_v18, %v5680_v8 }
 0x4bf   : > { %v2915_v13 = vrot.slane %v6952_v57, 4  ;;  %v1671_v31 = vsel %vm1047_vm2, %v1670_v52, %v6782_v62  ;;  %v2861_v58 = vrot.slane %v6899_v50, 4  ;;  %v2917_v18 = vrot.slane %v2898_v12, 4 }
 0x4c0   : > { %2199 = vrot.lane.b32.xlu1 %v2111_v5, %s5332_s10  ;;  %v6986_v48 = vperm.slane %v1671_v31, %v5680_v8  ;;  %v2944_v7 = vsel %vm1047_vm2, 0.0, %v2943_v4  ;;  %v2106_v1 = vrot.slane %v6976_v33, 4  ;;  %v1658_v4 = vrot.slane %v6829_v42, 4 }
 0x4c1   : > { %v2916_v56 = vsel %vm1047_vm2, %v2915_v13, %v2898_v12  ;;  %v2862_v62 = vsel %vm1047_vm2, %v6871_v51, %v2861_v58 }
 0x4c2   : > { %v1732_v29 = vpop.permute.xlu1 %1731  ;;  %v6992_v23 = vperm.slane %v2916_v56, %v5680_v8  ;;  %v1686_v40 = vrot.slane %v6986_v48, 4  ;;  %v2107_v59 = vsel %vm1047_vm2, 0.0, %v2106_v1  ;;  %v2870_v5 = vperm.slane %v2862_v62, %v5680_v8 }
 0x4c3   : > { %2207 = vrot.lane.b32.xlu2 %v2113_v15, %s5331_s9  ;;  %v2918_v56 = vsel %vm1047_vm2, %v6952_v57, %v2917_v18  ;;  %v1659_v42 = vsel %vm1047_vm2, %v1658_v4, %v6821_v38 }
 0x4c4   : > { %2996 = vrot.lane.b32.xlu0 %v2884_v21, %s5332_s10  ;;  %v2939_v43 = vrot.slane %v6992_v23, 4  ;;  %v1687_v55 = vsel %vm1047_vm2, 0.0, %v1686_v40  ;;  %v7044_v62 = vperm.slane %v1659_v42, %v5680_v8  ;;  %v8348_v40 = vld [vmem:[#allocation29_spill] sm:$0xff] }
 0x4c5   : > { %v2965_v20 = vpop.permute.xlu2 %2964 }
 0x4c6   : > { %v6971_v0 = vpop.permute.xlu0 %1723  ;;  %v2940_v60 = vsel %vm1047_vm2, 0.0, %v2939_v43 }
 0x4c8   : > { %3016 = vrot.lane.b32.xlu1 %v2890_v37, %s5331_s9 }
 0x4ca   : > { %v6983_v45 = vpop.permute.xlu1 %1719 }
 0x4cb   : > { %3012 = vrot.lane.b32.xlu2 %v2882_v49, %s5330_s8  ;;  %v2929_v49 = vrot.slane %v6944_v30, 4 }
 0x4cc   : > { %3032 = vrot.lane.b32.xlu0 %v2944_v7, %s5332_s10  ;;  %v2926_v7 = vperm.slane %v2918_v56, %v5680_v8 }
 0x4cd   : > { %v1728_v50 = vpop.permute.xlu2 %1727  ;;  %v2930_v30 = vsel %vm1047_vm2, %v6913_v26, %v2929_v49 }
 0x4ce   : > { %v1795_v9 = vsel %vm1367_vm3, %v6589_v10, %v1728_v50  ;;  %v6999_v41 = vpop.permute.xlu0 %2179  ;;  %v2941_v57 = vrot.slane %v2926_v7, 4 }
 0x4cf   : > { %v1796_v2 = vsel %vm1369_vm4, %v1795_v9, %v1732_v29  ;;  %v2885_v29 = vrot.slane %v2870_v5, 4 }
 0x4d0   : > { %v1797_v24 = vsel %vm1371_vm5, %v1796_v2, %v1736_v63  ;;  %2187 = vrot.lane.b32.xlu1 %v2107_v59, %s5332_s10 }
 0x4d1   : > { %v1821_v51 = vrot.slane %v1797_v24, 4  ;;  %v2886_v13 = vsel %vm1047_vm2, 0.0, %v2885_v29  ;;  %v1682_v24 = vrot.slane %v7044_v62, 4 }
 0x4d2   : > { %v2152_v10 = vpop.permute.xlu1 %2151 }
 0x4d3   : > { %1837 = vst [vmem:[#allocation2 + $0x18] sm:$0xf0] %v1821_v51  ;;  %v2219_v44 = vsel %vm1367_vm3, %v6499_v16, %v2152_v10  ;;  %1775 = vrot.lane.b32.xlu2 %v1687_v55, %s5332_s10  ;;  %v2108_v16 = vrot.slane %v6785_v34, 4  ;;  %v1683_v10 = vsel %vm1047_vm2, 0.0, %v1682_v24 }
 0x4d4   : > { %v2220_v63 = vsel %vm1369_vm4, %v2219_v44, %v6863_v25  ;;  %3020 = vrot.lane.b32.xlu0 %v2940_v60, %s5332_s10  ;;  %v2938_v25 = vperm.slane %v2930_v30, %v5680_v8  ;;  %v8350_v60 = vld [vmem:[#allocation15_spill] sm:$0xff]  ;;  %v8351_v30 = vld [vmem:[#allocation57_spill] sm:$0xff] }
 0x4d5   : > { %v2221_v15 = vsel %vm1371_vm5, %v2220_v63, %v6940_v14  ;;  %v2148_v52 = vpop.permute.xlu2 %2147  ;;  %v2109_v14 = vsel %vm1047_vm2, 0.0, %v2108_v16 }
 0x4d6   : > { %2237 = vst [vmem:[#allocation2 + $0x58] sm:$0xf] %v2221_v15  ;;  %v2961_v21 = vpop.permute.xlu0 %2960  ;;  %v2945_v34 = vrot.slane %v2938_v25, 4 }
 0x4d7   : > { %v3046_v46 = vsel %vm1367_vm3, %v6516_v3, %v2961_v21  ;;  %v8347_v3 = vld [vmem:[#allocation25_spill] sm:$0xff]  ;;  %v8352_v21 = vld [vmem:[#allocation22_spill] sm:$0xff] }
 0x4d8   : > { %3004 = vrot.lane.b32.xlu1 %v2886_v13, %s5331_s9  ;;  %v3047_v26 = vsel %vm1369_vm4, %v3046_v46, %v2965_v20  ;;  %v2946_v20 = vsel %vm1047_vm2, 0.0, %v2945_v34 }
 0x4da   : > { %v2969_v37 = vpop.permute.xlu1 %2968 }
 0x4db   : > { %v3048_v31 = vsel %vm1371_vm5, %v3047_v26, %v2969_v37  ;;  %2195 = vrot.lane.b32.xlu2 %v2109_v14, %s5331_s9  ;;  %v8353_v26 = vld [vmem:[#allocation41_spill] sm:$0xff] }
 0x4dc   : > { %3068 = vst [vmem:[#allocation2 + $0x88] sm:$0xf] %v3048_v31  ;;  %3087 = vrot.lane.b32.xlu0 %v8347_v3, %s5327_s7  ;;  %v8354_v31 = vld [vmem:[#allocation20_spill] sm:$0xff] }
 0x4dd   : > { %v2953_v12 = vpop.permute.xlu2 %2952 }
 0x4de   : > { %v7036_v58 = vpop.permute.xlu0 %2167 }
 0x4e0   : > { %3040 = vrot.lane.b32.xlu1 %v2946_v20, %s5331_s9  ;;  %v8355_v20 = vld [vmem:[#allocation50_spill] sm:$0xff] }
 0x4e2   : > { %v2140_v1 = vpop.permute.xlu1 %2139 }
 0x4e3   : > { %v2216_v50 = vsel %vm1367_vm3, %v6573_v6, %v2140_v1  ;;  %3000 = vrot.lane.b32.xlu2 %v2870_v5, %s5330_s8  ;;  %v2942_v5 = vsel %vm1047_vm2, 0.0, %v2941_v57  ;;  %v8356_v1 = vld [vmem:[#allocation27_spill] sm:$0xff] }
 0x4e4   : > { %v2217_v9 = vsel %vm1369_vm4, %v2216_v50, %v6903_v54  ;;  %3093 = vrot.lane.b32.xlu0 %v8348_v40, %s5327_s7 }
 0x4e5   : > { %v2218_v38 = vsel %vm1371_vm5, %v2217_v9, %v2148_v52  ;;  %v1716_v2 = vpop.permute.xlu2 %1715 }
 0x4e6   : > { %2236 = vst [vmem:[#allocation2 + $0x50] sm:$0xf] %v2218_v38  ;;  %v1792_v59 = vsel %vm1367_vm3, %v6673_v27, %v1716_v2  ;;  %v2949_v43 = vpop.permute.xlu0 %2948  ;;  %v8349_v27 = vld [vmem:[#allocation36_spill] sm:$0xff] }
 0x4e7   : > { %v1793_v6 = vsel %vm1369_vm4, %v1792_v59, %v6983_v45  ;;  %v3043_v45 = vsel %vm1367_vm3, %v6596_v61, %v2949_v43 }
 0x4e8   : > { %v1794_v54 = vsel %vm1371_vm5, %v1793_v6, %v6971_v0  ;;  %3028 = vrot.lane.b32.xlu1 %v2942_v5, %s5331_s9  ;;  %v3044_v0 = vsel %vm1369_vm4, %v3043_v45, %v2953_v12 }
 0x4e9   : > { %v1820_v51 = vrot.slane %v1794_v54, 4  ;;  %v8358_v54 = vld [vmem:[#allocation45_spill] sm:$0xff] }
 0x4ea   : > { %v1756_v49 = vpop.permute.xlu1 %1755 }
 0x4eb   : > { %1836 = vst [vmem:[#allocation2 + $0x10] sm:$0xf0] %v1820_v51  ;;  %1763 = vrot.lane.b32.xlu2 %v1683_v10, %s5332_s10 }
 0x4ec   : > { %3099 = vrot.lane.b32.xlu0 %v8349_v27, %s5327_s7 }
 0x4ed   : > { %v2184_v55 = vpop.permute.xlu2 %2183 }
 0x4ee   : > { %v1760_v44 = vpop.permute.xlu0 %1759 }
 0x4f0   : > { %3085 = vrot.lane.b32.xlu1 %v8350_v60, %s5327_s7 }
 0x4f2   : > { %v2957_v29 = vpop.permute.xlu1 %2956 }
 0x4f3   : > { %v3045_v63 = vsel %vm1371_vm5, %v3044_v0, %v2957_v29  ;;  %3036 = vrot.lane.b32.xlu2 %v2938_v25, %s5330_s8 }
 0x4f4   : > { %3067 = vst [vmem:[#allocation2 + $0x80] sm:$0xf] %v3045_v63  ;;  %3105 = vrot.lane.b32.xlu0 %v8351_v30, %s5327_s7 }
 0x4f5   : > { %v2989_v15 = vpop.permute.xlu2 %2988 }
 0x4f6   : > { %v1748_v52 = vpop.permute.xlu0 %1747 }
 0x4f8   : > { %3091 = vrot.lane.b32.xlu1 %v8352_v21, %s5327_s7 }
 0x4fa   : > { %v1744_v61 = vpop.permute.xlu1 %1743 }
 0x4fb   : > { %3024 = vrot.lane.b32.xlu2 %v2926_v7, %s5330_s8 }
 0x4fd   : > { %v1752_v16 = vpop.permute.xlu2 %1751 }
 0x4fe   : > { %v1801_v46 = vsel %vm1367_vm3, %v6788_v36, %v1752_v16  ;;  %v2204_v13 = vpop.permute.xlu0 %2203 }
 0x4ff   : > { %v1802_v18 = vsel %vm1369_vm4, %v1801_v46, %v1756_v49 }
 0x500   : > { %v1803_v25 = vsel %vm1371_vm5, %v1802_v18, %v1760_v44  ;;  %3097 = vrot.lane.b32.xlu1 %v8353_v26, %s5327_s7 }
 0x501   : > { %v1823_v37 = vrot.slane %v1803_v25, 4 }
 0x502   : > { %v2176_v14 = vpop.permute.xlu1 %2175 }
 0x503   : > { %1839 = vst [vmem:[#allocation2 + $0x28] sm:$0xf0] %v1823_v37  ;;  %v2225_v4 = vsel %vm1367_vm3, %v6698_v35, %v2176_v14  ;;  %3083 = vrot.lane.b32.xlu2 %v8354_v31, %s5327_s7 }
 0x504   : > { %v2226_v36 = vsel %vm1369_vm4, %v2225_v4, %v6999_v41 }
 0x505   : > { %v2227_v34 = vsel %vm1371_vm5, %v2226_v36, %v2184_v55  ;;  %v2172_v3 = vpop.permute.xlu2 %2171 }
 0x506   : > { %2239 = vst [vmem:[#allocation2 + $0x68] sm:$0xf] %v2227_v34  ;;  %v2985_v56 = vpop.permute.xlu0 %2984 }
 0x507   : > { %v3052_v12 = vsel %vm1367_vm3, %v6713_v17, %v2985_v56  ;;  %v8357_v17 = vld [vmem:[#allocation35_spill] sm:$0xff] }
 0x508   : > { %3103 = vrot.lane.b32.xlu1 %v8355_v20, %s5327_s7  ;;  %v3053_v7 = vsel %vm1369_vm4, %v3052_v12, %v2989_v15 }
 0x50a   : > { %v2993_v35 = vpop.permute.xlu1 %2992 }
 0x50b   : > { %v3054_v42 = vsel %vm1371_vm5, %v3053_v7, %v2993_v35  ;;  %3089 = vrot.lane.b32.xlu2 %v8356_v1, %s5327_s7 }
 0x50c   : > { %3070 = vst [vmem:[#allocation2 + $0x98] sm:$0xf] %v3054_v42 }
 0x50d   : > { %v2977_v41 = vpop.permute.xlu2 %2976 }
 0x50e   : > { %v2192_v50 = vpop.permute.xlu0 %2191 }
 0x512   : > { %v2164_v57 = vpop.permute.xlu1 %2163 }
 0x513   : > { %v2222_v9 = vsel %vm1367_vm3, %v6773_v32, %v2164_v57  ;;  %3095 = vrot.lane.b32.xlu2 %v8357_v17, %s5327_s7 }
 0x514   : > { %v2223_v40 = vsel %vm1369_vm4, %v2222_v9, %v7036_v58 }
 0x515   : > { %v2224_v38 = vsel %vm1371_vm5, %v2223_v40, %v2172_v3  ;;  %v1740_v2 = vpop.permute.xlu2 %1739 }
 0x516   : > { %2238 = vst [vmem:[#allocation2 + $0x60] sm:$0xf] %v2224_v38  ;;  %v1798_v59 = vsel %vm1367_vm3, %v6877_v19, %v1740_v2  ;;  %v2973_v43 = vpop.permute.xlu0 %2972 }
 0x517   : > { %v1799_v24 = vsel %vm1369_vm4, %v1798_v59, %v1744_v61  ;;  %v3049_v49 = vsel %vm1367_vm3, %v6796_v47, %v2973_v43 }
 0x518   : > { %v1800_v6 = vsel %vm1371_vm5, %v1799_v24, %v1748_v52  ;;  %v3050_v10 = vsel %vm1369_vm4, %v3049_v49, %v2977_v41 }
 0x519   : > { %v1822_v5 = vrot.slane %v1800_v6, 4 }
 0x51a   : > { %v1780_v32 = vpop.permute.xlu1 %1779 }
 0x51b   : > { %1838 = vst [vmem:[#allocation2 + $0x20] sm:$0xf0] %v1822_v5  ;;  %3101 = vrot.lane.b32.xlu2 %v8358_v54, %s5327_s7  ;;  %v8359_v54 = vld [vmem:[#allocation17_spill] sm:$0xff] }
 0x51d   : > { %v2208_v51 = vpop.permute.xlu2 %2207 }
 0x51e   : > { %v1784_v58 = vpop.permute.xlu0 %1783 }
 0x522   : > { %v2981_v27 = vpop.permute.xlu1 %2980 }
 0x523   : > { %v3051_v19 = vsel %vm1371_vm5, %v3050_v10, %v2981_v27 }
 0x524   : > { %3069 = vst [vmem:[#allocation2 + $0x90] sm:$0xf] %v3051_v19 }
 0x525   : > { %v3013_v55 = vpop.permute.xlu2 %3012 }
 0x526   : > { %v1772_v44 = vpop.permute.xlu0 %1771 }
 0x52a   : > { %v1768_v45 = vpop.permute.xlu1 %1767 }
 0x52d   : > { %v1776_v60 = vpop.permute.xlu2 %1775 }
 0x52e   : > { %v1807_v0 = vsel %vm1367_vm3, %v6986_v48, %v1776_v60  ;;  %v3009_v29 = vpop.permute.xlu0 %3008 }
 0x52f   : > { %v1808_v63 = vsel %vm1369_vm4, %v1807_v0, %v1780_v32  ;;  %v3058_v48 = vsel %vm1367_vm3, %v6886_v39, %v3009_v29 }
 0x530   : > { %v1809_v30 = vsel %vm1371_vm5, %v1808_v63, %v1784_v58  ;;  %v3059_v18 = vsel %vm1369_vm4, %v3058_v48, %v3013_v55 }
 0x531   : > { %v1825_v15 = vrot.slane %v1809_v30, 4 }
 0x532   : > { %v2200_v47 = vpop.permute.xlu1 %2199 }
 0x533   : > { %1841 = vst [vmem:[#allocation2 + $0x38] sm:$0xf0] %v1825_v15  ;;  %v2231_v52 = vsel %vm1367_vm3, %v6909_v11, %v2200_v47 }
 0x534   : > { %v2232_v21 = vsel %vm1369_vm4, %v2231_v52, %v2204_v13 }
 0x535   : > { %v2233_v61 = vsel %vm1371_vm5, %v2232_v21, %v2208_v51  ;;  %v2196_v16 = vpop.permute.xlu2 %2195  ;;  %v3125_v51 = vrot.slane %v8359_v54, 4 }
 0x536   : > { %2241 = vst [vmem:[#allocation2 + $0x78] sm:$0xf] %v2233_v61  ;;  %v2997_v46 = vpop.permute.xlu0 %2996 }
 0x537   : > { %v3055_v12 = vsel %vm1367_vm3, %v6929_v28, %v2997_v46 }
 0x53a   : > { %v3017_v25 = vpop.permute.xlu1 %3016 }
 0x53b   : > { %v3060_v26 = vsel %vm1371_vm5, %v3059_v18, %v3017_v25 }
 0x53c   : > { %3072 = vst [vmem:[#allocation2 + $0xa8] sm:$0xf] %v3060_v26 }
 0x53d   : > { %v3001_v37 = vpop.permute.xlu2 %3000 }
 0x53e   : > { %v3033_v14 = vpop.permute.xlu0 %3032 }
 0x542   : > { %v2188_v4 = vpop.permute.xlu1 %2187 }
 0x543   : > { %v2228_v11 = vsel %vm1367_vm3, %v6976_v33, %v2188_v4  ;;  %v3056_v33 = vsel %vm1369_vm4, %v3055_v12, %v3001_v37 }
 0x544   : > { %v2229_v13 = vsel %vm1369_vm4, %v2228_v11, %v2192_v50 }
 0x545   : > { %v2230_v31 = vsel %vm1371_vm5, %v2229_v13, %v2196_v16  ;;  %v1764_v36 = vpop.permute.xlu2 %1763  ;;  %v8360_v16 = vld [vmem:[#allocation28_spill] sm:$0xff] }
 0x546   : > { %2240 = vst [vmem:[#allocation2 + $0x70] sm:$0xf] %v2230_v31  ;;  %v1804_v39 = vsel %vm1367_vm3, %v7044_v62, %v1764_v36  ;;  %v3021_v34 = vpop.permute.xlu0 %3020  ;;  %v3064_v62 = vsel %vm1367_vm3, %v6964_v22, %v3033_v14 }
 0x547   : > { %v1805_v3 = vsel %vm1369_vm4, %v1804_v39, %v1768_v45  ;;  %v3061_v17 = vsel %vm1367_vm3, %v6992_v23, %v3021_v34 }
 0x548   : > { %v1806_v56 = vsel %vm1371_vm5, %v1805_v3, %v1772_v44 }
 0x549   : > { %v1824_v20 = vrot.slane %v1806_v56, 4  ;;  %v3181_v56 = vrot.slane %v8360_v16, 4 }
 0x54a   : > { %v3005_v7 = vpop.permute.xlu1 %3004 }
 0x54b   : > { %1840 = vst [vmem:[#allocation2 + $0x30] sm:$0xf0] %v1824_v20  ;;  %v3057_v35 = vsel %vm1371_vm5, %v3056_v33, %v3005_v7 }
 0x54c   : > { %3071 = vst [vmem:[#allocation2 + $0xa0] sm:$0xf] %v3057_v35 }
 0x54d   : > { %v3037_v42 = vpop.permute.xlu2 %3036 }
 0x54e   : > { %v7141_v1 = vpop.permute.xlu0 %3087  ;;  %v3065_v41 = vsel %vm1369_vm4, %v3064_v62, %v3037_v42 }
 0x552   : > { %v3041_v50 = vpop.permute.xlu1 %3040 }
 0x553   : > { %v3066_v57 = vsel %vm1371_vm5, %v3065_v41, %v3041_v50 }
 0x554   : > { %3074 = vst [vmem:[#allocation2 + $0xb8] sm:$0xf] %v3066_v57 }
 0x555   : > { %v3025_v28 = vpop.permute.xlu2 %3024 }
 0x556   : > { %v3094_v9 = vpop.permute.xlu0 %3093  ;;  %v3062_v40 = vsel %vm1369_vm4, %v3061_v17, %v3025_v28 }
 0x557   : > { %v3179_v29 = vrot.slane %v3094_v9, 4  ;;  %v3182_v35 = vsel %vm1047_vm2, %v3094_v9, %v3181_v56 }
 0x559   : > { %v3180_v46 = vsel %vm1047_vm2, %v3179_v29, %v8360_v16 }
 0x55a   : > { %v3029_v38 = vpop.permute.xlu1 %3028  ;;  %v3186_v4 = vperm.slane %v3180_v46, %v5652_v53 }
 0x55b   : > { %v3063_v2 = vsel %vm1371_vm5, %v3062_v40, %v3029_v38  ;;  %v3190_v40 = vperm.slane %v3182_v35, %v5652_v53  ;;  %v8363_v35 = vld [vmem:[#allocation18_spill] sm:$0xff] }
 0x55c   : > { %3073 = vst [vmem:[#allocation2 + $0xb0] sm:$0xf] %v3063_v2  ;;  %v3205_v33 = vrot.slane %v3186_v4, 4 }
 0x55d   : > { %v3084_v59 = vpop.permute.xlu2 %3083 }
 0x55e   : > { %v3100_v43 = vpop.permute.xlu0 %3099  ;;  %v3137_v5 = vrot.slane %v3084_v59, 4 }
 0x55f   : > { %v3135_v24 = vrot.slane %v3100_v43, 4 }
 0x560   : > { %v3138_v49 = vsel %vm1047_vm2, %v3100_v43, %v3137_v5  ;;  %v3217_v5 = vrot.slane %v3190_v40, 4 }
 0x561   : > { %v3136_v32 = vsel %vm1047_vm2, %v3135_v24, %v3084_v59  ;;  %v3146_v45 = vperm.slane %v3138_v49, %v5652_v53 }
 0x562   : > { %v3086_v22 = vpop.permute.xlu1 %3085  ;;  %v3142_v58 = vperm.slane %v3136_v32, %v5652_v53  ;;  %v8361_v32 = vld [vmem:[#allocation23_spill] sm:$0xff] }
 0x563   : > { %v3159_v52 = vrot.slane %v3146_v45, 4  ;;  %v3193_v11 = vrot.slane %v3086_v22, 4 }
 0x564   : > { %v3147_v60 = vrot.slane %v3142_v58, 4 }
 0x565   : > { %v7151_v6 = vpop.permute.xlu2 %3089 }
 0x56a   : > { %v3092_v23 = vpop.permute.xlu1 %3091 }
 0x56b   : > { %v3123_v10 = vrot.slane %v3092_v23, 4  ;;  %v3126_v27 = vsel %vm1047_vm2, %v3092_v23, %v3125_v51 }
 0x56c   : > { %v3134_v19 = vperm.slane %v3126_v27, %v5652_v53  ;;  %v3249_v27 = vrot.slane %v7141_v1, 4 }
 0x56d   : > { %v3124_v55 = vsel %vm1047_vm2, %v3123_v10, %v8359_v54  ;;  %v7161_v44 = vpop.permute.xlu2 %3095 }
 0x56e   : > { %v3130_v0 = vperm.slane %v3124_v55, %v5652_v53  ;;  %v3161_v30 = vrot.slane %v3134_v19, 4  ;;  %v3160_v18 = vsel %vm1047_vm2, %v3159_v52, %v3134_v19  ;;  %v3235_v38 = vrot.slane %v7161_v44, 4 }
 0x56f   : > { %v7184_v34 = vperm.slane %v3160_v18, %v5680_v8 }
 0x570   : > { %v3149_v63 = vrot.slane %v3130_v0, 4  ;;  %v3148_v15 = vsel %vm1047_vm2, %v3147_v60, %v3130_v0  ;;  %v3162_v26 = vsel %vm1047_vm2, %v3146_v45, %v3161_v30  ;;  %v3236_v54 = vsel %vm1047_vm2, %v3235_v38, %v8361_v32 }
 0x571   : > { %v7167_v47 = vperm.slane %v3148_v15, %v5680_v8  ;;  %v3170_v39 = vperm.slane %v3162_v26, %v5680_v8  ;;  %v3175_v62 = vrot.slane %v7184_v34, 4  ;;  %v3242_v19 = vperm.slane %v3236_v54, %v5652_v53  ;;  %v3106_v15 = vpop.permute.xlu0 %3105 }
 0x572   : > { %v7169_v21 = vpop.permute.xlu1 %3097  ;;  %v3150_v61 = vsel %vm1047_vm2, %v3142_v58, %v3149_v63  ;;  %v3237_v63 = vrot.slane %v8361_v32, 4  ;;  %v3303_v26 = vrot.slane %v3106_v15, 4  ;;  %v8367_v32 = vld [vmem:[#allocation12_spill] sm:$0xff] }
 0x573   : > { %v3158_v48 = vperm.slane %v3150_v61, %v5680_v8  ;;  %v3171_v25 = vrot.slane %v7167_v47, 4  ;;  %v3177_v41 = vrot.slane %v3170_v39, 4  ;;  %v3176_v2 = vsel %vm1047_vm2, 0.0, %v3175_v62  ;;  %v8364_v62 = vld [vmem:[#allocation19_spill] sm:$0xff] }
 0x574   : > { %v3261_v30 = vrot.slane %v3242_v19, 4  ;;  %v3238_v52 = vsel %vm1047_vm2, %v7161_v44, %v3237_v63  ;;  %v3509_v54 = vrot.slane %v8367_v32, 2  ;;  %v8369_v63 = vld [vmem:[#allocation8_spill] sm:$0xff] }
 0x575   : > { %v3102_v37 = vpop.permute.xlu2 %3101  ;;  %3352 = vrot.lane.b32.xlu1 %v3158_v48, %s5330_s8  ;;  %v3173_v14 = vrot.slane %v3158_v48, 4  ;;  %v3172_v31 = vsel %vm1047_vm2, 0.0, %v3171_v25  ;;  %v3178_v9 = vsel %vm1047_vm2, 0.0, %v3177_v41  ;;  %v3291_v25 = vrot.slane %v7169_v21, 4 }
 0x576   : > { %v3191_v13 = vrot.slane %v3102_v37, 4  ;;  %3348 = vrot.lane.b32.xlu2 %v3172_v31, %s5332_s10  ;;  %v3194_v12 = vsel %vm1047_vm2, %v3102_v37, %v3193_v11  ;;  %v3246_v37 = vperm.slane %v3238_v52, %v5652_v53  ;;  %v8362_v31 = vld [vmem:[#allocation46_spill] sm:$0xff]  ;;  %v3519_v41 = vrot.slane %v8364_v62, 2 }
 0x577   : > { %v3174_v36 = vsel %vm1047_vm2, 0.0, %v3173_v14  ;;  %v3202_v50 = vperm.slane %v3194_v12, %v5652_v53 }
 0x578   : > { %v3192_v3 = vsel %vm1047_vm2, %v3191_v13, %v3086_v22  ;;  %3356 = vrot.lane.b32.xlu0 %v3174_v36, %s5331_s9  ;;  %v3292_v36 = vsel %vm1047_vm2, %v3291_v25, %v8362_v31 }
 0x579   : > { %v3198_v20 = vperm.slane %v3192_v3, %v5652_v53  ;;  %v3215_v22 = vrot.slane %v3202_v50, 4  ;;  %v3218_v23 = vsel %vm1047_vm2, %v3202_v50, %v3217_v5  ;;  %v3304_v3 = vsel %vm1047_vm2, %v3303_v26, %v7151_v6  ;;  %v8365_v50 = vld [vmem:[#allocation33_spill] sm:$0xff] }
 0x57a   : > { %v3104_v7 = vpop.permute.xlu1 %3103  ;;  %v3226_v60 = vperm.slane %v3218_v23, %v5680_v8 }
 0x57b   : > { %v3203_v42 = vrot.slane %v3198_v20, 4  ;;  %v3206_v57 = vsel %vm1047_vm2, %v3198_v20, %v3205_v33  ;;  %v3247_v28 = vrot.slane %v3104_v7, 4  ;;  %v3216_v10 = vsel %vm1047_vm2, %v3215_v22, %v3190_v40  ;;  %v8366_v22 = vld [vmem:[#allocation30_spill] sm:$0xff] }
 0x57c   : > { %v3214_v59 = vperm.slane %v3206_v57, %v5680_v8  ;;  %v7223_v0 = vperm.slane %v3216_v10, %v5680_v8  ;;  %v3233_v16 = vrot.slane %v3226_v60, 4  ;;  %v3298_v20 = vperm.slane %v3292_v36, %v5652_v53 }
 0x57d   : > { %3364 = vrot.lane.b32.xlu1 %v3170_v39, %s5330_s8  ;;  %v3204_v17 = vsel %vm1047_vm2, %v3203_v42, %v3186_v4  ;;  %v3248_v24 = vsel %vm1047_vm2, %v3247_v28, %v7141_v1  ;;  %v3250_v1 = vsel %vm1047_vm2, %v3104_v7, %v3249_v27  ;;  %v3273_v39 = vrot.slane %v3246_v37, 4 }
 0x57e   : > { %v7204_v43 = vperm.slane %v3204_v17, %v5680_v8  ;;  %3360 = vrot.lane.b32.xlu2 %v3176_v2, %s5332_s10  ;;  %v3229_v58 = vrot.slane %v3214_v59, 4  ;;  %v3254_v49 = vperm.slane %v3248_v24, %v5652_v53  ;;  %v3231_v61 = vrot.slane %v7223_v0, 4 }
 0x57f   : > { %v3258_v46 = vperm.slane %v3250_v1, %v5652_v53  ;;  %v3234_v44 = vsel %vm1047_vm2, 0.0, %v3233_v16  ;;  %v3518_v42 = vrot.slane %v8363_v35, 2  ;;  %v3528_v57 = vrot.slane %v8365_v50, 2 }
 0x580   : > { %3368 = vrot.lane.b32.xlu0 %v3178_v9, %s5331_s9  ;;  %v3227_v51 = vrot.slane %v7204_v43, 4  ;;  %v3230_v45 = vsel %vm1047_vm2, 0.0, %v3229_v58  ;;  %v3259_v29 = vrot.slane %v3254_v49, 4  ;;  %v3262_v48 = vsel %vm1047_vm2, %v3254_v49, %v3261_v30 }
 0x581   : > { %v3232_v14 = vsel %vm1047_vm2, 0.0, %v3231_v61  ;;  %v3270_v4 = vperm.slane %v3262_v48, %v5680_v8  ;;  %v3271_v13 = vrot.slane %v3258_v46, 4  ;;  %v3274_v33 = vsel %vm1047_vm2, %v3258_v46, %v3273_v39  ;;  %v8370_v48 = vld [vmem:[#allocation7_spill] sm:$0xff] }
 0x582   : > { %v3228_v55 = vsel %vm1047_vm2, 0.0, %v3227_v51  ;;  %v3260_v18 = vsel %vm1047_vm2, %v3259_v29, %v3242_v19  ;;  %v3293_v28 = vrot.slane %v8362_v31, 4  ;;  %v3305_v17 = vrot.slane %v7151_v6, 4  ;;  %v8368_v19 = vld [vmem:[#allocation13_spill] sm:$0xff] }
 0x583   : > { %v7242_v11 = vperm.slane %v3260_v18, %v5680_v8  ;;  %v3285_v12 = vrot.slane %v3270_v4, 4  ;;  %v3272_v7 = vsel %vm1047_vm2, %v3271_v13, %v3246_v37  ;;  %v3310_v40 = vperm.slane %v3304_v3, %v5652_v53 }
 0x584   : > { %v3282_v9 = vperm.slane %v3274_v33, %v5680_v8  ;;  %v3527_v24 = vrot.slane %v8366_v22, 2  ;;  %v3317_v5 = vrot.slane %v3298_v20, 4  ;;  %v3294_v6 = vsel %vm1047_vm2, %v7169_v21, %v3293_v28 }
 0x585   : > { %3376 = vrot.lane.b32.xlu1 %v3214_v59, %s5330_s8  ;;  %v3283_v56 = vrot.slane %v7242_v11, 4  ;;  %v3286_v2 = vsel %vm1047_vm2, 0.0, %v3285_v12  ;;  %v7265_v59 = vperm.slane %v3272_v7, %v5680_v8  ;;  %v3315_v58 = vrot.slane %v3310_v40, 4 }
 0x586   : > { %3372 = vrot.lane.b32.xlu2 %v3228_v55, %s5332_s10  ;;  %v7276_v51 = vsel %vm3499_vm6, %v3527_v24, %v3528_v57  ;;  %v7281_v23 = vsel %vm3499_vm6, %v3518_v42, %v3519_v41  ;;  %v3306_v49 = vsel %vm1047_vm2, %v3106_v15, %v3305_v17  ;;  %v3289_v27 = vrot.slane %v3282_v9, 4 }
 0x587   : > { %v3284_v38 = vsel %vm1047_vm2, 0.0, %v3283_v56  ;;  %v3287_v10 = vrot.slane %v7265_v59, 4  ;;  %v3510_v21 = vrot.slane %v8368_v19, 2  ;;  %v3302_v55 = vperm.slane %v3294_v6, %v5652_v53  ;;  %v8371_v56 = vld [vmem:[#allocation24_spill] sm:$0xff] }
 0x588   : > { %3380 = vrot.lane.b32.xlu0 %v3230_v45, %s5331_s9  ;;  %v3318_v45 = vsel %vm1047_vm2, %v3310_v40, %v3317_v5  ;;  %v3564_v29 = vrot.slane %v7276_v51, 4  ;;  %v3501_v1 = vrot.slane %v8369_v63, 2  ;;  %v3314_v30 = vperm.slane %v3306_v49, %v5652_v53 }
 0x589   : > { %v3552_v15 = vrot.slane %v7281_v23, 4  ;;  %v3288_v52 = vsel %vm1047_vm2, 0.0, %v3287_v10  ;;  %v3290_v61 = vsel %vm1047_vm2, 0.0, %v3289_v27  ;;  %v3326_v16 = vperm.slane %v3318_v45, %v5680_v8 }
 0x58a   : > { %v3500_v18 = vrot.slane %v8370_v48, 2  ;;  %v3329_v25 = vrot.slane %v3302_v55, 4  ;;  %v7306_v26 = vsel %vm3499_vm6, %v3509_v54, %v3510_v21  ;;  %v3521_v12 = vrot.slane %v8371_v56, 2 }
 0x58b   : > { %v3565_v37 = vsel %vm1047_vm2, %v3564_v29, %v7306_v26  ;;  %v3341_v13 = vrot.slane %v3326_v16, 4  ;;  %v3566_v35 = vrot.slane %v7306_v26, 4 }
 0x58c   : > { %v3330_v39 = vsel %vm1047_vm2, %v3314_v30, %v3329_v25  ;;  %v3571_v3 = vperm.slane %v3565_v37, %v5652_v53  ;;  %v7343_v5 = vsel %vm3499_vm6, %v3519_v41, %v3521_v12  ;;  %v8374_v41 = vld [vmem:[#allocation9_spill] sm:$0xff] }
 0x58d   : > { %3388 = vrot.lane.b32.xlu1 %v3226_v60, %s5330_s8  ;;  %v3316_v60 = vsel %vm1047_vm2, %v3315_v58, %v3298_v20  ;;  %v8372_v20 = vld [vmem:[#allocation37_spill] sm:$0xff]  ;;  %v3342_v28 = vsel %vm1047_vm2, 0.0, %v3341_v13  ;;  %v3338_v17 = vperm.slane %v3330_v39, %v5680_v8  ;;  %v8373_v58 = vld [vmem:[#allocation14_spill] sm:$0xff]  ;;  %v3503_v27 = vrot.slane %v8374_v41, 2 }
 0x58e   : > { %3384 = vrot.lane.b32.xlu2 %v3232_v14, %s5332_s10  ;;  %v7298_v46 = vperm.slane %v3316_v60, %v5680_v8  ;;  %v3327_v14 = vrot.slane %v3314_v30, 4  ;;  %v3530_v33 = vrot.slane %v8372_v20, 2  ;;  %v3512_v49 = vrot.slane %v8373_v58, 2 }
 0x58f   : > { %v3345_v32 = vrot.slane %v3338_v17, 4  ;;  %v3608_v45 = vrot.slane %v7343_v5, 4  ;;  %v7375_v48 = vsel %vm3499_vm6, %v3501_v1, %v3503_v27 }
 0x590   : > { %3392 = vrot.lane.b32.xlu0 %v3234_v44, %s5331_s9  ;;  %v7311_v44 = vsel %vm3499_vm6, %v3500_v18, %v3501_v1  ;;  %v3328_v36 = vsel %vm1047_vm2, %v3327_v14, %v3302_v55  ;;  %v7338_v22 = vsel %vm3499_vm6, %v3528_v57, %v3530_v33 }
 0x591   : > { %v3553_v31 = vsel %vm1047_vm2, %v3552_v15, %v7311_v44  ;;  %v7328_v40 = vperm.slane %v3328_v36, %v5680_v8  ;;  %v3620_v62 = vrot.slane %v7338_v22, 4  ;;  %v3346_v29 = vsel %vm1047_vm2, 0.0, %v3345_v32  ;;  %v8377_v32 = vld [vmem:[#allocation16_spill] sm:$0xff] }
 0x592   : > { %v3559_v7 = vperm.slane %v3553_v31, %v5652_v53  ;;  %v3609_v37 = vsel %vm1047_vm2, %v3608_v45, %v7375_v48  ;;  %v8376_v31 = vld [vmem:[#allocation44_spill] sm:$0xff] }
 0x593   : > { %v3343_v6 = vrot.slane %v7328_v40, 4  ;;  %v3532_v36 = vrot.slane %v8376_v31, 2  ;;  %v3615_v1 = vperm.slane %v3609_v37, %v5652_v53 }
 0x594   : > { %v3578_v24 = vrot.slane %v3559_v7, 4 }
 0x595   : > { %3400 = vrot.lane.b32.xlu1 %v3270_v4, %s5330_s8  ;;  %v3339_v4 = vrot.slane %v7298_v46, 4  ;;  %v3344_v60 = vsel %vm1047_vm2, 0.0, %v3343_v6 }
 0x596   : > { %3396 = vrot.lane.b32.xlu2 %v3284_v38, %s5332_s10  ;;  %v3576_v38 = vrot.slane %v3571_v3, 4  ;;  %v3579_v10 = vsel %vm1047_vm2, %v3571_v3, %v3578_v24 }
 0x597   : > { %v3340_v42 = vsel %vm1047_vm2, 0.0, %v3339_v4  ;;  %v3587_v63 = vperm.slane %v3579_v10, %v5680_v8  ;;  %v8375_v4 = vld [vmem:[#allocation32_spill] sm:$0xff] }
 0x598   : > { %3404 = vrot.lane.b32.xlu0 %v3286_v2, %s5331_s9  ;;  %v3554_v2 = vrot.slane %v7311_v44, 4  ;;  %v3577_v50 = vsel %vm1047_vm2, %v3576_v38, %v3559_v7  ;;  %v3523_v13 = vrot.slane %v8375_v4, 2  ;;  %v3634_v38 = vrot.slane %v3615_v1, 4 }
 0x599   : > { %v7361_v30 = vperm.slane %v3577_v50, %v5680_v8  ;;  %v3602_v25 = vrot.slane %v3587_v63, 4 }
 0x59a   : > { %v3555_v54 = vsel %vm1047_vm2, %v7281_v23, %v3554_v2  ;;  %v7407_v2 = vsel %vm3499_vm6, %v3521_v12, %v3523_v13  ;;  %v8378_v12 = vld [vmem:[#allocation10_spill] sm:$0xff] }
 0x59b   : > { %v3563_v55 = vperm.slane %v3555_v54, %v5652_v53  ;;  %v3600_v18 = vrot.slane %v7361_v30, 4  ;;  %v3603_v56 = vsel %vm1047_vm2, 0.0, %v3602_v25  ;;  %v3514_v54 = vrot.slane %v8377_v32, 2 }
 0x59d   : > { %3412 = vrot.lane.b32.xlu1 %v3282_v9, %s5330_s8  ;;  %v3567_v9 = vsel %vm1047_vm2, %v7276_v51, %v3566_v35  ;;  %v3601_v3 = vsel %vm1047_vm2, 0.0, %v3600_v18 }
 0x59e   : > { %3408 = vrot.lane.b32.xlu2 %v3288_v52, %s5332_s10  ;;  %v3575_v57 = vperm.slane %v3567_v9, %v5652_v53  ;;  %v7370_v52 = vsel %vm3499_vm6, %v3510_v21, %v3512_v49 }
 0x59f   : > { %v3622_v39 = vrot.slane %v7370_v52, 4 }
 0x5a0   : > { %3416 = vrot.lane.b32.xlu0 %v3290_v61, %s5331_s9  ;;  %v3588_v15 = vrot.slane %v3575_v57, 4  ;;  %v3621_v61 = vsel %vm1047_vm2, %v3620_v62, %v7370_v52  ;;  %v3505_v62 = vrot.slane %v8378_v12, 2 }
 0x5a1   : > { %v3627_v21 = vperm.slane %v3621_v61, %v5652_v53  ;;  %v7434_v61 = vsel %vm3499_vm6, %v3512_v49, %v3514_v54 }
 0x5a2   : > { %v3589_v19 = vsel %vm1047_vm2, %v3588_v15, %v3563_v55  ;;  %v7441_v25 = vsel %vm3499_vm6, %v3503_v27, %v3505_v62 }
 0x5a3   : > { %v7392_v7 = vperm.slane %v3589_v19, %v5680_v8  ;;  %v3632_v35 = vrot.slane %v3627_v21, 4  ;;  %v3635_v10 = vsel %vm1047_vm2, %v3627_v21, %v3634_v38 }
 0x5a5   : > { %3424 = vrot.lane.b32.xlu1 %v3326_v16, %s5330_s8  ;;  %v3590_v16 = vrot.slane %v3563_v55, 4  ;;  %v3604_v9 = vrot.slane %v7392_v7, 4  ;;  %v3633_v50 = vsel %vm1047_vm2, %v3632_v35, %v3615_v1  ;;  %v3664_v55 = vrot.slane %v7407_v2, 4 }
 0x5a6   : > { %3420 = vrot.lane.b32.xlu2 %v3340_v42, %s5332_s10  ;;  %v3610_v42 = vrot.slane %v7375_v48, 4 }
 0x5a7   : > { %v3591_v14 = vsel %vm1047_vm2, %v3575_v57, %v3590_v16  ;;  %v3605_v45 = vsel %vm1047_vm2, 0.0, %v3604_v9  ;;  %v3665_v19 = vsel %vm1047_vm2, %v3664_v55, %v7441_v25 }
 0x5a8   : > { %3428 = vrot.lane.b32.xlu0 %v3342_v28, %s5331_s9  ;;  %v3599_v20 = vperm.slane %v3591_v14, %v5680_v8  ;;  %v3623_v28 = vsel %vm1047_vm2, %v7338_v22, %v3622_v39  ;;  %v3611_v6 = vsel %vm1047_vm2, %v7343_v5, %v3610_v42  ;;  %v3671_v1 = vperm.slane %v3665_v19, %v5652_v53 }
 0x5a9   : > { %v3619_v41 = vperm.slane %v3611_v6, %v5652_v53  ;;  %v3678_v39 = vrot.slane %v7434_v61, 4 }
 0x5aa   : > { %v3606_v24 = vrot.slane %v3599_v20, 4 }
 0x5ab   : > { %v3646_v18 = vrot.slane %v3619_v41, 4 }
 0x5ad   : > { %3436 = vrot.lane.b32.xlu1 %v3338_v17, %s5330_s8  ;;  %v7402_v17 = vsel %vm3499_vm6, %v3530_v33, %v3532_v36  ;;  %v3631_v33 = vperm.slane %v3623_v28, %v5652_v53  ;;  %v3690_v28 = vrot.slane %v3671_v1, 4 }
 0x5ae   : > { %3432 = vrot.lane.b32.xlu2 %v3344_v60, %s5332_s10  ;;  %v3676_v57 = vrot.slane %v7402_v17, 4  ;;  %v3607_v60 = vsel %vm1047_vm2, 0.0, %v3606_v24  ;;  %v3679_v42 = vsel %vm1047_vm2, %v7402_v17, %v3678_v39 }
 0x5af   : > { %v3644_v15 = vrot.slane %v3631_v33, 4  ;;  %v3647_v58 = vsel %vm1047_vm2, %v3631_v33, %v3646_v18 }
 0x5b0   : > { %3440 = vrot.lane.b32.xlu0 %v3346_v29, %s5331_s9  ;;  %v3643_v29 = vperm.slane %v3635_v10, %v5680_v8  ;;  %v3677_v16 = vsel %vm1047_vm2, %v3676_v57, %v7434_v61  ;;  %v3666_v10 = vrot.slane %v7441_v25, 4 }
 0x5b1   : > { %v3645_v49 = vsel %vm1047_vm2, %v3644_v15, %v3619_v41  ;;  %v3683_v21 = vperm.slane %v3677_v16, %v5652_v53 }
 0x5b2   : > { %v3658_v14 = vrot.slane %v3643_v29, 4  ;;  %v3667_v33 = vsel %vm1047_vm2, %v7407_v2, %v3666_v10 }
 0x5b3   : > { %v3688_v35 = vrot.slane %v3683_v21, 4  ;;  %v3691_v24 = vsel %vm1047_vm2, %v3683_v21, %v3690_v28  ;;  %v3675_v15 = vperm.slane %v3667_v33, %v5652_v53 }
 0x5b4   : > { %v3699_v55 = vperm.slane %v3691_v24, %v5680_v8 }
 0x5b5   : > { %3781 = vrot.lane.b32.xlu1 %v3587_v63, %s5330_s8  ;;  %v7425_v63 = vperm.slane %v3633_v50, %v5680_v8  ;;  %v3689_v6 = vsel %vm1047_vm2, %v3688_v35, %v3671_v1  ;;  %v3687_v50 = vperm.slane %v3679_v42, %v5652_v53 }
 0x5b6   : > { %3777 = vrot.lane.b32.xlu2 %v3601_v3, %s5332_s10  ;;  %v3659_v3 = vsel %vm1047_vm2, 0.0, %v3658_v14  ;;  %v3714_v18 = vrot.slane %v3699_v55, 4  ;;  %v3702_v14 = vrot.slane %v3675_v15, 4 }
 0x5b7   : > { %v3656_v37 = vrot.slane %v7425_v63, 4 }
 0x5b8   : > { %3785 = vrot.lane.b32.xlu0 %v3603_v56, %s5331_s9  ;;  %v3655_v56 = vperm.slane %v3647_v58, %v5680_v8  ;;  %v3715_v58 = vsel %vm1047_vm2, 0.0, %v3714_v18  ;;  %v3703_v21 = vsel %vm1047_vm2, %v3687_v50, %v3702_v14 }
 0x5b9   : > { %v3657_v27 = vsel %vm1047_vm2, 0.0, %v3656_v37  ;;  %v7491_v39 = vperm.slane %v3703_v21, %v5680_v8 }
 0x5ba   : > { %v3662_v9 = vrot.slane %v3655_v56, 4 }
 0x5bc   : > { %v3663_v41 = vsel %vm1047_vm2, 0.0, %v3662_v9 }
 0x5bd   : > { %3793 = vrot.lane.b32.xlu1 %v3599_v20, %s5330_s8  ;;  %v7456_v20 = vperm.slane %v3645_v49, %v5680_v8 }
 0x5be   : > { %3789 = vrot.lane.b32.xlu2 %v3605_v45, %s5332_s10  ;;  %v7474_v45 = vperm.slane %v3689_v6, %v5680_v8 }
 0x5bf   : > { %v3660_v38 = vrot.slane %v7456_v20, 4 }
 0x5c0   : > { %3797 = vrot.lane.b32.xlu0 %v3607_v60, %s5331_s9  ;;  %v3700_v60 = vrot.slane %v3687_v50, 4  ;;  %v3712_v16 = vrot.slane %v7474_v45, 4 }
 0x5c1   : > { %v3661_v57 = vsel %vm1047_vm2, 0.0, %v3660_v38 }
 0x5c2   : > { %v3701_v37 = vsel %vm1047_vm2, %v3700_v60, %v3675_v15  ;;  %v3713_v19 = vsel %vm1047_vm2, 0.0, %v3712_v16 }
 0x5c3   : > { %v7485_v49 = vperm.slane %v3701_v37, %v5680_v8 }
 0x5c5   : > { %3805 = vrot.lane.b32.xlu1 %v3643_v29, %s5330_s8 }
 0x5c6   : > { %3801 = vrot.lane.b32.xlu2 %v3657_v27, %s5332_s10  ;;  %v3716_v27 = vrot.slane %v7485_v49, 4 }
 0x5c8   : > { %3809 = vrot.lane.b32.xlu0 %v3659_v3, %s5331_s9  ;;  %v3717_v3 = vsel %vm1047_vm2, 0.0, %v3716_v27 }
 0x5cd   : > { %3817 = vrot.lane.b32.xlu1 %v3655_v56, %s5330_s8 }
 0x5ce   : > { %3813 = vrot.lane.b32.xlu2 %v3661_v57, %s5332_s10 }
 0x5d0   : > { %3821 = vrot.lane.b32.xlu0 %v3663_v41, %s5331_s9  ;;  %v3349_v29 = vpop.permute.xlu2 %3348 }
 0x5d1   : > { %v3443_v42 = vsel %vm1367_vm3, %v7167_v47, %v3349_v29 }
 0x5d5   : > { %3829 = vrot.lane.b32.xlu1 %v3699_v55, %s5330_s8 }
 0x5d6   : > { %3825 = vrot.lane.b32.xlu2 %v3713_v19, %s5332_s10 }
 0x5d8   : > { %3833 = vrot.lane.b32.xlu0 %v3715_v58, %s5331_s9  ;;  %v3361_v1 = vpop.permute.xlu2 %3360 }
 0x5d9   : > { %v3446_v47 = vsel %vm1367_vm3, %v7184_v34, %v3361_v1 }
 0x5dd   : > { %3841 = vrot.lane.b32.xlu1 %v7491_v39, %s5330_s8 }
 0x5de   : > { %3837 = vrot.lane.b32.xlu2 %v3717_v3, %s5332_s10 }
 0x5e0   : > { %3914 = vrot.lane.b32.xlu0 %v7370_v52, %s5326_s6  ;;  %v3373_v56 = vpop.permute.xlu2 %3372 }
 0x5e1   : > { %v3449_v34 = vsel %vm1367_vm3, %v7204_v43, %v3373_v56 }
 0x5e5   : > { %3906 = vrot.lane.b32.xlu1 %v7375_v48, %s5326_s6 }
 0x5e6   : > { %4338 = vrot.lane.b32.xlu2 %v7370_v52, %s5327_s7 }
 0x5e7   : > { %v3353_v35 = vpop.permute.xlu1 %3352 }
 0x5e8   : > { %3930 = vrot.lane.b32.xlu0 %v7338_v22, %s5326_s6  ;;  %v3444_v28 = vsel %vm1369_vm4, %v3443_v42, %v3353_v35  ;;  %v3385_v38 = vpop.permute.xlu2 %3384  ;;  %v8379_v35 = vld [vmem:[#allocation21_spill] sm:$0xff] }
 0x5e9   : > { %v3452_v43 = vsel %vm1367_vm3, %v7223_v0, %v3385_v38  ;;  %v3516_v42 = vrot.slane %v8379_v35, 2 }
 0x5ea   : > { %v3357_v9 = vpop.permute.xlu0 %3356 }
 0x5eb   : > { %v3445_v24 = vsel %vm1371_vm5, %v3444_v28, %v3357_v9 }
 0x5ec   : > { %v3475_v6 = vrot.slane %v3445_v24, 4 }
 0x5ed   : > { %4354 = vrot.lane.b32.xlu1 %v7338_v22, %s5327_s7 }
 0x5ee   : > { %3491 = vst [vmem:[#allocation2 + $0x80] sm:$0xf0] %v3475_v6  ;;  %4330 = vrot.lane.b32.xlu2 %v7375_v48, %s5327_s7 }
 0x5ef   : > { %v3365_v10 = vpop.permute.xlu1 %3364 }
 0x5f0   : > { %3922 = vrot.lane.b32.xlu0 %v7343_v5, %s5326_s6  ;;  %v3447_v52 = vsel %vm1369_vm4, %v3446_v47, %v3365_v10  ;;  %v3397_v50 = vpop.permute.xlu2 %3396 }
 0x5f1   : > { %v3455_v0 = vsel %vm1367_vm3, %v7242_v11, %v3397_v50 }
 0x5f2   : > { %v3369_v33 = vpop.permute.xlu0 %3368 }
 0x5f3   : > { %v3448_v57 = vsel %vm1371_vm5, %v3447_v52, %v3369_v33  ;;  %v8380_v52 = vld [vmem:[#allocation47_spill] sm:$0xff] }
 0x5f4   : > { %v3476_v41 = vrot.slane %v3448_v57, 4  ;;  %v3534_v50 = vrot.slane %v8380_v52, 2 }
 0x5f5   : > { %3916 = vrot.lane.b32.xlu1 %v7434_v61, %s5326_s6 }
 0x5f6   : > { %3492 = vst [vmem:[#allocation2 + $0x88] sm:$0xf0] %v3476_v41  ;;  %4346 = vrot.lane.b32.xlu2 %v7343_v5, %s5327_s7  ;;  %v8381_v41 = vld [vmem:[#allocation11_spill] sm:$0xff] }
 0x5f7   : > { %v3377_v22 = vpop.permute.xlu1 %3376 }
 0x5f8   : > { %4340 = vrot.lane.b32.xlu0 %v7434_v61, %s5327_s7  ;;  %v3450_v48 = vsel %vm1369_vm4, %v3449_v34, %v3377_v22  ;;  %v3409_v55 = vpop.permute.xlu2 %3408  ;;  %v3507_v22 = vrot.slane %v8381_v41, 2 }
 0x5f9   : > { %v3458_v11 = vsel %vm1367_vm3, %v7265_v59, %v3409_v55 }
 0x5fa   : > { %v3381_v60 = vpop.permute.xlu0 %3380 }
 0x5fb   : > { %v3451_v29 = vsel %vm1371_vm5, %v3450_v48, %v3381_v60  ;;  %v7591_v48 = vsel %vm3499_vm6, %v3532_v36, %v3534_v50 }
 0x5fc   : > { %v3477_v15 = vrot.slane %v3451_v29, 4 }
 0x5fd   : > { %3932 = vrot.lane.b32.xlu1 %v7402_v17, %s5326_s6 }
 0x5fe   : > { %3493 = vst [vmem:[#allocation2 + $0x90] sm:$0xf0] %v3477_v15  ;;  %3908 = vrot.lane.b32.xlu2 %v7441_v25, %s5326_s6  ;;  %v8382_v15 = vld [vmem:[#allocation38_spill] sm:$0xff] }
 0x5ff   : > { %v3389_v16 = vpop.permute.xlu1 %3388 }
 0x600   : > { %4332 = vrot.lane.b32.xlu0 %v7441_v25, %s5327_s7  ;;  %v3453_v5 = vsel %vm1369_vm4, %v3452_v43, %v3389_v16  ;;  %v3421_v61 = vpop.permute.xlu2 %3420  ;;  %v3525_v16 = vrot.slane %v8382_v15, 2 }
 0x601   : > { %v3461_v59 = vsel %vm1367_vm3, %v7298_v46, %v3421_v61 }
 0x602   : > { %v3393_v18 = vpop.permute.xlu0 %3392 }
 0x603   : > { %v3454_v37 = vsel %vm1371_vm5, %v3453_v5, %v3393_v18 }
 0x604   : > { %v3478_v14 = vrot.slane %v3454_v37, 4 }
 0x605   : > { %3924 = vrot.lane.b32.xlu1 %v7407_v2, %s5326_s6 }
 0x606   : > { %3494 = vst [vmem:[#allocation2 + $0x98] sm:$0xf0] %v3478_v14  ;;  %4356 = vrot.lane.b32.xlu2 %v7402_v17, %s5327_s7 }
 0x607   : > { %v3401_v19 = vpop.permute.xlu1 %3400 }
 0x608   : > { %4348 = vrot.lane.b32.xlu0 %v7407_v2, %s5327_s7  ;;  %v3456_v25 = vsel %vm1369_vm4, %v3455_v0, %v3401_v19  ;;  %v3433_v58 = vpop.permute.xlu2 %3432 }
 0x609   : > { %v3464_v46 = vsel %vm1367_vm3, %v7328_v40, %v3433_v58  ;;  %v7598_v40 = vsel %vm3499_vm6, %v3505_v62, %v3507_v22 }
 0x60a   : > { %v3405_v21 = vpop.permute.xlu0 %3404 }
 0x60b   : > { %v3457_v1 = vsel %vm1371_vm5, %v3456_v25, %v3405_v21 }
 0x60c   : > { %v3479_v27 = vrot.slane %v3457_v1, 4 }
 0x60d   : > { %4352 = vrot.lane.b32.xlu1 %v7276_v51, %s5327_s7 }
 0x60e   : > { %3495 = vst [vmem:[#allocation2 + $0xa0] sm:$0xf0] %v3479_v27  ;;  %3928 = vrot.lane.b32.xlu2 %v7276_v51, %s5326_s6  ;;  %v7566_v51 = vsel %vm3499_vm6, %v3514_v54, %v3516_v42 }
 0x60f   : > { %v3413_v3 = vpop.permute.xlu1 %3412 }
 0x610   : > { %3912 = vrot.lane.b32.xlu0 %v7306_v26, %s5326_s6  ;;  %v3459_v17 = vsel %vm1369_vm4, %v3458_v11, %v3413_v3  ;;  %v3778_v2 = vpop.permute.xlu2 %3777 }
 0x611   : > { %v3872_v31 = vsel %vm1367_vm3, %v7361_v30, %v3778_v2 }
 0x612   : > { %v3417_v56 = vpop.permute.xlu0 %3416 }
 0x613   : > { %v3460_v28 = vsel %vm1371_vm5, %v3459_v17, %v3417_v56 }
 0x614   : > { %v3480_v38 = vrot.slane %v3460_v28, 4 }
 0x615   : > { %3920 = vrot.lane.b32.xlu1 %v7281_v23, %s5326_s6 }
 0x616   : > { %3496 = vst [vmem:[#allocation2 + $0xa8] sm:$0xf0] %v3480_v38  ;;  %3918 = vrot.lane.b32.xlu2 %v7566_v51, %s5326_s6 }
 0x617   : > { %v3425_v9 = vpop.permute.xlu1 %3424 }
 0x618   : > { %4336 = vrot.lane.b32.xlu0 %v7306_v26, %s5327_s7  ;;  %v3462_v24 = vsel %vm1369_vm4, %v3461_v59, %v3425_v9  ;;  %v3790_v6 = vpop.permute.xlu2 %3789 }
 0x619   : > { %v3875_v30 = vsel %vm1367_vm3, %v7392_v7, %v3790_v6 }
 0x61a   : > { %v3429_v10 = vpop.permute.xlu0 %3428 }
 0x61b   : > { %v3463_v47 = vsel %vm1371_vm5, %v3462_v24, %v3429_v10 }
 0x61c   : > { %v3481_v32 = vrot.slane %v3463_v47, 4 }
 0x61d   : > { %4344 = vrot.lane.b32.xlu1 %v7281_v23, %s5327_s7 }
 0x61e   : > { %3497 = vst [vmem:[#allocation2 + $0xb0] sm:$0xf0] %v3481_v32  ;;  %4342 = vrot.lane.b32.xlu2 %v7566_v51, %s5327_s7 }
 0x61f   : > { %v3437_v54 = vpop.permute.xlu1 %3436 }
 0x620   : > { %3904 = vrot.lane.b32.xlu0 %v7311_v44, %s5326_s6  ;;  %v3465_v26 = vsel %vm1369_vm4, %v3464_v46, %v3437_v54  ;;  %v3802_v33 = vpop.permute.xlu2 %3801 }
 0x622   : > { %v3441_v57 = vpop.permute.xlu0 %3440 }
 0x623   : > { %v3466_v23 = vsel %vm1371_vm5, %v3465_v26, %v3441_v57 }
 0x624   : > { %v3482_v34 = vrot.slane %v3466_v23, 4 }
 0x625   : > { %3934 = vrot.lane.b32.xlu1 %v7591_v48, %s5326_s6 }
 0x626   : > { %3498 = vst [vmem:[#allocation2 + $0xb8] sm:$0xf0] %v3482_v34  ;;  %3910 = vrot.lane.b32.xlu2 %v7598_v40, %s5326_s6 }
 0x627   : > { %v3782_v55 = vpop.permute.xlu1 %3781 }
 0x628   : > { %4328 = vrot.lane.b32.xlu0 %v7311_v44, %s5327_s7  ;;  %v3873_v36 = vsel %vm1369_vm4, %v3872_v31, %v3782_v55  ;;  %v3814_v60 = vpop.permute.xlu2 %3813  ;;  %v7614_v44 = vsel %vm3499_vm6, %v3523_v13, %v3525_v16  ;;  %v3878_v13 = vsel %vm1367_vm3, %v7425_v63, %v3802_v33 }
 0x629   : > { %v3881_v25 = vsel %vm1367_vm3, %v7456_v20, %v3814_v60 }
 0x62a   : > { %v3786_v29 = vpop.permute.xlu0 %3785 }
 0x62b   : > { %v3874_v12 = vsel %vm1371_vm5, %v3873_v36, %v3786_v29 }
 0x62c   : > { %3896 = vst [vmem:[#allocation2 + $0xc0] sm:$0xf] %v3874_v12 }
 0x62d   : > { %4358 = vrot.lane.b32.xlu1 %v7591_v48, %s5327_s7 }
 0x62e   : > { %4334 = vrot.lane.b32.xlu2 %v7598_v40, %s5327_s7 }
 0x62f   : > { %v3794_v62 = vpop.permute.xlu1 %3793 }
 0x630   : > { %3926 = vrot.lane.b32.xlu0 %v7614_v44, %s5326_s6  ;;  %v3876_v43 = vsel %vm1369_vm4, %v3875_v30, %v3794_v62  ;;  %v3826_v5 = vpop.permute.xlu2 %3825  ;;  %s5006_s6 = scalar_lea.sflag [#allocation5], %s224_s13 }
 0x631   : > { %v3884_v63 = vsel %vm1367_vm3, %v7474_v45, %v3826_v5 }
 0x632   : > { %v3798_v61 = vpop.permute.xlu0 %3797 }
 0x633   : > { %v3877_v18 = vsel %vm1371_vm5, %v3876_v43, %v3798_v61 }
 0x634   : > { %3897 = vst [vmem:[#allocation2 + $0xc8] sm:$0xf] %v3877_v18 }
 0x636   : > { %4350 = vrot.lane.b32.xlu2 %v7614_v44, %s5327_s7  ;;  %s5260_s7 = sshra.s32 %s5022_s5, 4  ;;  %s5261_s7 = int_to_ptr.hbm [resolvable:$true] %s5260_s7 }
 0x637   : > { %v3806_v4 = vpop.permute.xlu1 %3805  ;;  %p5267_p1 = scmp.lt.s32.totalorder %s5261_s7, %s8196_s4 }
 0x638   : > { %v3879_v37 = vsel %vm1369_vm4, %v3878_v13, %v3806_v4  ;;  %v3838_v14 = vpop.permute.xlu2 %3837 }
 0x639   : > { %v3887_v20 = vsel %vm1367_vm3, %v7485_v49, %v3838_v14 }
 0x63a   : > { %v3810_v19 = vpop.permute.xlu0 %3809 }
 0x63b   : > { %v3880_v7 = vsel %vm1371_vm5, %v3879_v37, %v3810_v19 }
 0x63c   : > { %3898 = vst [vmem:[#allocation2 + $0xd0] sm:$0xf] %v3880_v7 }
 0x63f   : > { %v3818_v0 = vpop.permute.xlu1 %3817 }
 0x640   : > { %v3882_v58 = vsel %vm1369_vm4, %v3881_v25, %v3818_v0  ;;  %v4339_v27 = vpop.permute.xlu2 %4338 }
 0x641   : > { %v4446_v6 = vrot.slane %v4339_v27, 4 }
 0x642   : > { %v3822_v21 = vpop.permute.xlu0 %3821 }
 0x643   : > { %v3883_v1 = vsel %vm1371_vm5, %v3882_v58, %v3822_v21 }
 0x644   : > { %3899 = vst [vmem:[#allocation2 + $0xd8] sm:$0xf] %v3883_v1 }
 0x647   : > { %v3830_v3 = vpop.permute.xlu1 %3829 }
 0x648   : > { %v3885_v11 = vsel %vm1369_vm4, %v3884_v63, %v3830_v3  ;;  %v4331_v56 = vpop.permute.xlu2 %4330 }
 0x649   : > { %v4434_v10 = vrot.slane %v4331_v56, 4 }
 0x64a   : > { %v3834_v17 = vpop.permute.xlu0 %3833 }
 0x64b   : > { %v3886_v2 = vsel %vm1371_vm5, %v3885_v11, %v3834_v17 }
 0x64c   : > { %3900 = vst [vmem:[#allocation2 + $0xe0] sm:$0xf] %v3886_v2 }
 0x64f   : > { %v3842_v35 = vpop.permute.xlu1 %3841 }
 0x650   : > { %v7641_v42 = vsel %vm1369_vm4, %v3887_v20, %v3842_v35  ;;  %v4347_v9 = vpop.permute.xlu2 %4346 }
 0x651   : > { %v4435_v54 = vsel %vm1047_vm2, %v4347_v9, %v4434_v10  ;;  %v4432_v18 = vrot.slane %v4347_v9, 4 }
 0x652   : > { %v3915_v28 = vpop.permute.xlu0 %3914  ;;  %v4443_v22 = vperm.slane %v4435_v54, %v5652_v53 }
 0x653   : > { %v4022_v24 = vrot.slane %v3915_v28, 4  ;;  %v4433_v1 = vsel %vm1047_vm2, %v4432_v18, %v4331_v56 }
 0x654   : > { %v4439_v20 = vperm.slane %v4433_v1, %v5652_v53 }
 0x657   : > { %v3907_v38 = vpop.permute.xlu1 %3906 }
 0x658   : > { %v4010_v26 = vrot.slane %v3907_v38, 4  ;;  %v7649_v33 = vpop.permute.xlu2 %3908 }
 0x65a   : > { %v3931_v59 = vpop.permute.xlu0 %3930 }
 0x65b   : > { %v4020_v45 = vrot.slane %v3931_v59, 4  ;;  %v4023_v47 = vsel %vm1047_vm2, %v3931_v59, %v4022_v24 }
 0x65c   : > { %v4031_v50 = vperm.slane %v4023_v47, %v5652_v53 }
 0x65d   : > { %v4021_v52 = vsel %vm1047_vm2, %v4020_v45, %v3915_v28 }
 0x65e   : > { %v4027_v23 = vperm.slane %v4021_v52, %v5652_v53  ;;  %v4044_v36 = vrot.slane %v4031_v50, 4 }
 0x65f   : > { %v4355_v32 = vpop.permute.xlu1 %4354 }
 0x660   : > { %v4447_v49 = vsel %vm1047_vm2, %v4355_v32, %v4446_v6  ;;  %v4444_v57 = vrot.slane %v4355_v32, 4  ;;  %v4032_v62 = vrot.slane %v4027_v23, 4  ;;  %v7682_v3 = vpop.permute.xlu2 %4356  ;;  %v4458_v32 = vrot.slane %v4439_v20, 4 }
 0x661   : > { %v4455_v46 = vperm.slane %v4447_v49, %v5652_v53 }
 0x662   : > { %v3923_v41 = vpop.permute.xlu0 %3922  ;;  %v4445_v15 = vsel %vm1047_vm2, %v4444_v57, %v4339_v27  ;;  %v4470_v27 = vrot.slane %v4443_v22, 4 }
 0x663   : > { %v4468_v34 = vrot.slane %v4455_v46, 4  ;;  %v4008_v55 = vrot.slane %v3923_v41, 4  ;;  %v4011_v31 = vsel %vm1047_vm2, %v3923_v41, %v4010_v26  ;;  %v4451_v37 = vperm.slane %v4445_v15, %v5652_v53 }
 0x664   : > { %v4019_v60 = vperm.slane %v4011_v31, %v5652_v53  ;;  %v4471_v17 = vsel %vm1047_vm2, %v4455_v46, %v4470_v27  ;;  %v4066_v26 = vrot.slane %v7649_v33, 4 }
 0x665   : > { %v4469_v29 = vsel %vm1047_vm2, %v4468_v34, %v4443_v22  ;;  %v4009_v16 = vsel %vm1047_vm2, %v4008_v55, %v3907_v38  ;;  %v4456_v11 = vrot.slane %v4451_v37, 4  ;;  %v4479_v56 = vperm.slane %v4471_v17, %v5680_v8 }
 0x666   : > { %v7659_v12 = vperm.slane %v4469_v29, %v5680_v8  ;;  %v4015_v30 = vperm.slane %v4009_v16, %v5652_v53  ;;  %v4045_v43 = vsel %vm1047_vm2, %v4044_v36, %v4019_v60  ;;  %v4046_v5 = vrot.slane %v4019_v60, 4 }
 0x667   : > { %v7663_v61 = vpop.permute.xlu1 %3916  ;;  %v7667_v13 = vperm.slane %v4045_v43, %v5680_v8  ;;  %v4457_v38 = vsel %vm1047_vm2, %v4456_v11, %v4439_v20  ;;  %v4486_v47 = vrot.slane %v4479_v56, 4  ;;  %v4459_v22 = vsel %vm1047_vm2, %v4451_v37, %v4458_v32 }
 0x668   : > { %v4484_v4 = vrot.slane %v7659_v12, 4  ;;  %v4047_v14 = vsel %vm1047_vm2, %v4031_v50, %v4046_v5  ;;  %v4033_v19 = vsel %vm1047_vm2, %v4032_v62, %v4015_v30  ;;  %v4034_v45 = vrot.slane %v4015_v30, 4  ;;  %v7704_v52 = vpop.permute.xlu2 %3928 }
 0x669   : > { %v4055_v0 = vperm.slane %v4047_v14, %v5680_v8  ;;  %v4060_v58 = vrot.slane %v7667_v13, 4  ;;  %v7678_v21 = vperm.slane %v4033_v19, %v5680_v8  ;;  %v7700_v10 = vperm.slane %v4457_v38, %v5680_v8 }
 0x66a   : > { %v7672_v7 = vpop.permute.xlu0 %4340  ;;  %v4485_v25 = vsel %vm1047_vm2, 0.0, %v4484_v4  ;;  %v4078_v54 = vrot.slane %v7663_v61, 4  ;;  %v4035_v46 = vsel %vm1047_vm2, %v4027_v23, %v4034_v45  ;;  %v4487_v55 = vsel %vm1047_vm2, 0.0, %v4486_v47 }
 0x66b   : > { %4637 = vrot.lane.b32.xlu0 %v4485_v25, %s5332_s10  ;;  %4217 = vrot.lane.b32.xlu2 %v4055_v0, %s5330_s8  ;;  %v4061_v63 = vsel %vm1047_vm2, 0.0, %v4060_v58  ;;  %v4056_v2 = vrot.slane %v7678_v21, 4  ;;  %v4062_v28 = vrot.slane %v4055_v0, 4  ;;  %v4502_v9 = vrot.slane %v7672_v7, 4 }
 0x66c   : > { %4213 = vrot.lane.b32.xlu1 %v4061_v63, %s5332_s10  ;;  %v4480_v41 = vrot.slane %v7700_v10, 4  ;;  %v4043_v23 = vperm.slane %v4035_v46, %v5680_v8  ;;  %v4467_v16 = vperm.slane %v4459_v22, %v5680_v8 }
 0x66d   : > { %v4057_v24 = vsel %vm1047_vm2, 0.0, %v4056_v2  ;;  %v4063_v6 = vsel %vm1047_vm2, 0.0, %v4062_v28  ;;  %v4503_v49 = vsel %vm1047_vm2, %v7682_v3, %v4502_v9 }
 0x66e   : > { %v7714_v34 = vperm.slane %v4503_v49, %v5652_v53  ;;  %v4481_v43 = vsel %vm1047_vm2, 0.0, %v4480_v41  ;;  %v4058_v14 = vrot.slane %v4043_v23, 4  ;;  %v4482_v58 = vrot.slane %v4467_v16, 4 }
 0x66f   : > { %v3933_v35 = vpop.permute.xlu1 %3932 }
 0x670   : > { %v4079_v57 = vsel %vm1047_vm2, %v3933_v35, %v4078_v54  ;;  %v4076_v31 = vrot.slane %v3933_v35, 4  ;;  %v4524_v5 = vrot.slane %v7714_v34, 4  ;;  %v7735_v1 = vpop.permute.xlu2 %3918 }
 0x671   : > { %v4087_v15 = vperm.slane %v4079_v57, %v5652_v53 }
 0x672   : > { %v7693_v59 = vpop.permute.xlu0 %4332  ;;  %v4077_v37 = vsel %vm1047_vm2, %v4076_v31, %v7663_v61  ;;  %v4059_v61 = vsel %vm1047_vm2, 0.0, %v4058_v14 }
 0x673   : > { %4201 = vrot.lane.b32.xlu0 %v4057_v24, %s5332_s10  ;;  %4221 = vrot.lane.b32.xlu2 %v4063_v6, %s5331_s9  ;;  %v4490_v36 = vrot.slane %v7693_v59, 4  ;;  %v4100_v19 = vrot.slane %v4087_v15, 4  ;;  %v7740_v63 = vperm.slane %v4077_v37, %v5652_v53  ;;  %v4500_v24 = vrot.slane %v7682_v3, 4 }
 0x674   : > { %4641 = vrot.lane.b32.xlu1 %v4479_v56, %s5330_s8  ;;  %v4483_v56 = vsel %vm1047_vm2, 0.0, %v4482_v58 }
 0x675   : > { %v4088_v38 = vrot.slane %v7740_v63, 4  ;;  %v4501_v49 = vsel %vm1047_vm2, %v4500_v24, %v7672_v7 }
 0x677   : > { %v3925_v50 = vpop.permute.xlu1 %3924 }
 0x678   : > { %v4067_v60 = vsel %vm1047_vm2, %v3925_v50, %v4066_v26  ;;  %v4064_v62 = vrot.slane %v3925_v50, 4  ;;  %v7767_v46 = vpop.permute.xlu2 %4342 }
 0x679   : > { %v4075_v18 = vperm.slane %v4067_v60, %v5652_v53 }
 0x67a   : > { %v4349_v29 = vpop.permute.xlu0 %4348  ;;  %v4065_v27 = vsel %vm1047_vm2, %v4064_v62, %v7649_v33 }
 0x67b   : > { %4645 = vrot.lane.b32.xlu0 %v4487_v55, %s5331_s9  ;;  %v4491_v30 = vsel %vm1047_vm2, %v4349_v29, %v4490_v36  ;;  %4205 = vrot.lane.b32.xlu2 %v4043_v23, %s5330_s8  ;;  %v4101_v11 = vsel %vm1047_vm2, %v4100_v19, %v4075_v18  ;;  %v4071_v20 = vperm.slane %v4065_v27, %v5652_v53  ;;  %v4102_v35 = vrot.slane %v4075_v18, 4 }
 0x67c   : > { %v4499_v4 = vperm.slane %v4491_v30, %v5652_v53  ;;  %4625 = vrot.lane.b32.xlu1 %v4481_v43, %s5332_s10  ;;  %v7752_v33 = vperm.slane %v4101_v11, %v5680_v8  ;;  %v4488_v45 = vrot.slane %v4349_v29, 4  ;;  %v4507_v55 = vperm.slane %v4501_v49, %v5652_v53 }
 0x67d   : > { %v4103_v32 = vsel %vm1047_vm2, %v4087_v15, %v4102_v35  ;;  %v4089_v54 = vsel %vm1047_vm2, %v4088_v38, %v4071_v20  ;;  %v3964_v19 = vrot.slane %v7704_v52, 4 }
 0x67e   : > { %v4525_v0 = vsel %vm1047_vm2, %v4524_v5, %v4499_v4  ;;  %v4116_v50 = vrot.slane %v7752_v33, 4  ;;  %v4489_v26 = vsel %vm1047_vm2, %v4488_v45, %v7693_v59  ;;  %v4111_v41 = vperm.slane %v4103_v32, %v5680_v8 }
 0x67f   : > { %v7733_v25 = vpop.permute.xlu1 %4352  ;;  %v7745_v2 = vperm.slane %v4525_v0, %v5680_v8  ;;  %v7774_v22 = vperm.slane %v4089_v54, %v5680_v8  ;;  %v4526_v31 = vrot.slane %v4499_v4, 4  ;;  %v4495_v59 = vperm.slane %v4489_v26, %v5652_v53 }
 0x680   : > { %v4117_v7 = vsel %vm1047_vm2, 0.0, %v4116_v50  ;;  %v4512_v23 = vrot.slane %v4507_v55, 4  ;;  %v4090_v4 = vrot.slane %v4071_v20, 4  ;;  %v7797_v0 = vpop.permute.xlu2 %3910  ;;  %v4388_v58 = vrot.slane %v7733_v25, 4 }
 0x681   : > { %v4540_v6 = vrot.slane %v7745_v2, 4  ;;  %v4112_v29 = vrot.slane %v7774_v22, 4  ;;  %v4527_v62 = vsel %vm1047_vm2, %v7714_v34, %v4526_v31  ;;  %v4514_v54 = vrot.slane %v4495_v59, 4 }
 0x682   : > { %v3913_v17 = vpop.permute.xlu0 %3912  ;;  %v4513_v30 = vsel %vm1047_vm2, %v4512_v23, %v4495_v59  ;;  %v4535_v18 = vperm.slane %v4527_v62, %v5680_v8  ;;  %v4091_v35 = vsel %vm1047_vm2, %v7740_v63, %v4090_v4  ;;  %v4558_v62 = vrot.slane %v7767_v46, 4 }
 0x683   : > { %v3966_v28 = vrot.slane %v3913_v17, 4  ;;  %4209 = vrot.lane.b32.xlu0 %v4059_v61, %s5331_s9  ;;  %4633 = vrot.lane.b32.xlu2 %v4483_v56, %s5331_s9  ;;  %v4541_v3 = vsel %vm1047_vm2, 0.0, %v4540_v6  ;;  %v4113_v5 = vsel %vm1047_vm2, 0.0, %v4112_v29  ;;  %v7801_v34 = vperm.slane %v4513_v30, %v5680_v8 }
 0x684   : > { %4629 = vrot.lane.b32.xlu1 %v4467_v16, %s5330_s8  ;;  %v4118_v16 = vrot.slane %v4111_v41, 4  ;;  %v3965_v11 = vsel %vm1047_vm2, %v3964_v19, %v3913_v17  ;;  %v4542_v20 = vrot.slane %v4535_v18, 4  ;;  %v4099_v6 = vperm.slane %v4091_v35, %v5680_v8 }
 0x685   : > { %v7757_v9 = vsel %vm1047_vm2, %v7704_v52, %v3966_v28  ;;  %v3971_v38 = vperm.slane %v3965_v11, %v5652_v53  ;;  %v4515_v59 = vsel %vm1047_vm2, %v4507_v55, %v4514_v54 }
 0x686   : > { %v4119_v14 = vsel %vm1047_vm2, 0.0, %v4118_v16 }
 0x687   : > { %v3921_v47 = vpop.permute.xlu1 %3920  ;;  %v3976_v26 = vrot.slane %v3971_v38, 4 }
 0x688   : > { %v3952_v61 = vrot.slane %v3921_v47, 4 }
 0x68a   : > { %v4337_v57 = vpop.permute.xlu0 %4336 }
 0x68b   : > { %v4390_v36 = vrot.slane %v4337_v57, 4  ;;  %4661 = vrot.lane.b32.xlu0 %v4541_v3, %s5332_s10  ;;  %4241 = vrot.lane.b32.xlu2 %v4111_v41, %s5330_s8  ;;  %v4389_v52 = vsel %vm1047_vm2, %v4388_v58, %v4337_v57  ;;  %v7831_v57 = vpop.permute.xlu2 %4334  ;;  %v3718_v41 = vrot.slane %v7491_v39, 4  ;;  %v4523_v39 = vperm.slane %v4515_v59, %v5680_v8 }
 0x68c   : > { %4237 = vrot.lane.b32.xlu1 %v4117_v7, %s5332_s10  ;;  %v4395_v45 = vperm.slane %v4389_v52, %v5652_v53  ;;  %v4546_v35 = vrot.slane %v7831_v57, 4  ;;  %v3722_v59 = vrot.slane %v7598_v40, 4 }
 0x68d   : > { %v7783_v60 = vsel %vm1047_vm2, %v7733_v25, %v4390_v36  ;;  %v4536_v25 = vrot.slane %v7801_v34, 4  ;;  %v4114_v36 = vrot.slane %v4099_v6, 4  ;;  %v3719_v23 = vsel %vm1047_vm2, 0.0, %v3718_v41 }
 0x68e   : > { %v4400_v3 = vrot.slane %v4395_v45, 4 }
 0x68f   : > { %v7787_v15 = vpop.permute.xlu1 %4344  ;;  %v4537_v50 = vsel %vm1047_vm2, 0.0, %v4536_v25  ;;  %v4115_v30 = vsel %vm1047_vm2, 0.0, %v4114_v36 }
 0x690   : > { %v4376_v24 = vrot.slane %v7787_v15, 4 }
 0x692   : > { %v3905_v43 = vpop.permute.xlu0 %3904 }
 0x693   : > { %v3954_v37 = vrot.slane %v3905_v43, 4  ;;  %4225 = vrot.lane.b32.xlu0 %v4113_v5, %s5332_s10  ;;  %4245 = vrot.lane.b32.xlu2 %v4119_v14, %s5331_s9  ;;  %v3953_v28 = vsel %vm1047_vm2, %v3952_v61, %v3905_v43  ;;  %v4351_v58 = vpop.permute.xlu2 %4350 }
 0x694   : > { %4665 = vrot.lane.b32.xlu1 %v4535_v18, %s5330_s8  ;;  %v3959_v63 = vperm.slane %v3953_v28, %v5652_v53  ;;  %v4134_v18 = vrot.slane %v7735_v1, 4  ;;  %v3734_v28 = vrot.slane %v7566_v51, 4 }
 0x695   : > { %v7805_v27 = vsel %vm1047_vm2, %v3921_v47, %v3954_v37  ;;  %v4543_v47 = vsel %vm1047_vm2, 0.0, %v4542_v20  ;;  %v4122_v37 = vrot.slane %v7797_v0, 4  ;;  %v4538_v20 = vrot.slane %v4523_v39, 4 }
 0x696   : > { %v3977_v31 = vsel %vm1047_vm2, %v3976_v26, %v3959_v63  ;;  %v3978_v5 = vrot.slane %v3959_v63, 4 }
 0x697   : > { %v7813_v56 = vpop.permute.xlu1 %3934  ;;  %v7839_v16 = vperm.slane %v3977_v31, %v5680_v8 }
 0x698   : > { %v4135_v11 = vsel %vm1047_vm2, %v7813_v56, %v4134_v18  ;;  %v3979_v52 = vsel %vm1047_vm2, %v3971_v38, %v3978_v5  ;;  %v3735_v38 = vsel %vm1047_vm2, %v7591_v48, %v3734_v28  ;;  %v3723_v5 = vsel %vm1047_vm2, %v7614_v44, %v3722_v59 }
 0x699   : > { %v4000_v4 = vrot.slane %v7839_v16, 4  ;;  %v4143_v63 = vperm.slane %v4135_v11, %v5652_v53  ;;  %v3987_v54 = vperm.slane %v3979_v52, %v5680_v8  ;;  %v7880_v31 = vperm.slane %v3735_v38, %v5652_v53 }
 0x69a   : > { %v7819_v17 = vpop.permute.xlu0 %4328  ;;  %v4544_v52 = vrot.slane %v4351_v58, 4 }
 0x69b   : > { %v4377_v32 = vsel %vm1047_vm2, %v4376_v24, %v7819_v17  ;;  %4669 = vrot.lane.b32.xlu0 %v4543_v47, %s5331_s9  ;;  %4229 = vrot.lane.b32.xlu2 %v4099_v6, %s5330_s8  ;;  %v4001_v6 = vsel %vm1047_vm2, 0.0, %v4000_v4  ;;  %v4547_v47 = vsel %vm1047_vm2, %v4351_v58, %v4546_v35  ;;  %v4156_v36 = vrot.slane %v4143_v63, 4 }
 0x69c   : > { %v4383_v49 = vperm.slane %v4377_v32, %v5652_v53  ;;  %4649 = vrot.lane.b32.xlu1 %v4537_v50, %s5332_s10  ;;  %v4132_v4 = vrot.slane %v7813_v56, 4 }
 0x69e   : > { %v4401_v7 = vsel %vm1047_vm2, %v4400_v3, %v4383_v49  ;;  %v4402_v25 = vrot.slane %v4383_v49, 4  ;;  %v4539_v49 = vsel %vm1047_vm2, 0.0, %v4538_v20  ;;  %v4555_v3 = vperm.slane %v4547_v47, %v5652_v53 }
 0x69f   : > { %v4359_v29 = vpop.permute.xlu1 %4358  ;;  %v7846_v43 = vperm.slane %v4401_v7, %v5680_v8  ;;  %v4002_v7 = vrot.slane %v3987_v54, 4  ;;  %v4133_v28 = vsel %vm1047_vm2, %v4132_v4, %v7735_v1 }
 0x6a0   : > { %v4559_v55 = vsel %vm1047_vm2, %v4359_v29, %v4558_v62  ;;  %v4403_v41 = vsel %vm1047_vm2, %v4395_v45, %v4402_v25  ;;  %v4556_v62 = vrot.slane %v4359_v29, 4  ;;  %v4139_v47 = vperm.slane %v4133_v28, %v5652_v53 }
 0x6a1   : > { %v4424_v19 = vrot.slane %v7846_v43, 4  ;;  %v7858_v61 = vperm.slane %v4559_v55, %v5652_v53  ;;  %v3756_v55 = vrot.slane %v7880_v31, 4  ;;  %v4003_v45 = vsel %vm1047_vm2, 0.0, %v4002_v7 }
 0x6a2   : > { %v3927_v14 = vpop.permute.xlu0 %3926  ;;  %v4378_v7 = vrot.slane %v7819_v17, 4 }
 0x6a3   : > { %3845 = vrot.lane.b32.xlu0 %v3719_v23, %s5331_s9  ;;  %4233 = vrot.lane.b32.xlu2 %v4115_v30, %s5331_s9  ;;  %v4123_v24 = vsel %vm1047_vm2, %v3927_v14, %v4122_v37  ;;  %v4425_v32 = vsel %vm1047_vm2, 0.0, %v4424_v19  ;;  %v4580_v50 = vrot.slane %v7858_v61, 4  ;;  %v7900_v37 = vperm.slane %v3723_v5, %v5652_v53 }
 0x6a4   : > { %4653 = vrot.lane.b32.xlu1 %v4523_v39, %s5330_s8  ;;  %v4131_v26 = vperm.slane %v4123_v24, %v5652_v53  ;;  %v4411_v39 = vperm.slane %v4403_v41, %v5680_v8  ;;  %v4557_v19 = vsel %vm1047_vm2, %v4556_v62, %v7767_v46  ;;  %v4120_v11 = vrot.slane %v3927_v14, 4 }
 0x6a5   : > { %v4581_v23 = vsel %vm1047_vm2, %v4580_v50, %v4555_v3  ;;  %v3757_v56 = vsel %vm1047_vm2, %v3756_v55, %v7900_v37  ;;  %v7911_v25 = vperm.slane %v4557_v19, %v5652_v53  ;;  %v4144_v41 = vrot.slane %v4139_v47, 4 }
 0x6a6   : > { %v4157_v30 = vsel %vm1047_vm2, %v4156_v36, %v4131_v26  ;;  %v7892_v18 = vperm.slane %v4581_v23, %v5680_v8  ;;  %v4426_v20 = vrot.slane %v4411_v39, 4  ;;  %v4121_v46 = vsel %vm1047_vm2, %v4120_v11, %v7797_v0 }
 0x6a7   : > { %v7897_v29 = vperm.slane %v4157_v30, %v5680_v8  ;;  %v7918_v58 = vperm.slane %v3757_v56, %v5680_v8  ;;  %v4568_v38 = vrot.slane %v7911_v25, 4  ;;  %v4127_v50 = vperm.slane %v4121_v46, %v5652_v53 }
 0x6a8   : > { %v4596_v35 = vrot.slane %v7892_v18, 4  ;;  %v4427_v14 = vsel %vm1047_vm2, 0.0, %v4426_v20  ;;  %v3975_v30 = vperm.slane %v7757_v9, %v5652_v53  ;;  %v4379_v5 = vsel %vm1047_vm2, %v7787_v15, %v4378_v7 }
 0x6a9   : > { %v4172_v24 = vrot.slane %v7897_v29, 4  ;;  %v4145_v62 = vsel %vm1047_vm2, %v4144_v41, %v4127_v50  ;;  %v3720_v55 = vrot.slane %v7614_v44, 4  ;;  %v4387_v15 = vperm.slane %v4379_v5, %v5652_v53 }
 0x6aa   : > { %v4597_v1 = vsel %vm1047_vm2, 0.0, %v4596_v35  ;;  %v7959_v9 = vperm.slane %v4145_v62, %v5680_v8  ;;  %v4146_v44 = vrot.slane %v4127_v50, 4 }
 0x6ab   : > { %4177 = vrot.lane.b32.xlu0 %v4001_v6, %s5332_s10  ;;  %4601 = vrot.lane.b32.xlu2 %v4425_v32, %s5332_s10  ;;  %v4545_v6 = vsel %vm1047_vm2, %v4544_v52, %v7831_v57  ;;  %v4158_v32 = vrot.slane %v4131_v26, 4  ;;  %v4173_v0 = vsel %vm1047_vm2, 0.0, %v4172_v24  ;;  %v3732_v26 = vrot.slane %v7591_v48, 4 }
 0x6ac   : > { %4657 = vrot.lane.b32.xlu1 %v4539_v49, %s5331_s9  ;;  %v7931_v57 = vperm.slane %v4545_v6, %v5652_v53  ;;  %v4168_v52 = vrot.slane %v7959_v9, 4  ;;  %v4147_v50 = vsel %vm1047_vm2, %v4139_v47, %v4146_v44 }
 0x6ad   : > { %v4159_v36 = vsel %vm1047_vm2, %v4143_v63, %v4158_v32  ;;  %v3733_v48 = vsel %vm1047_vm2, %v3732_v26, %v7566_v51  ;;  %v3963_v63 = vperm.slane %v7805_v27, %v5652_v53  ;;  %v4399_v51 = vperm.slane %v7783_v60, %v5652_v53 }
 0x6ae   : > { %v4569_v59 = vsel %vm1047_vm2, %v4568_v38, %v7931_v57  ;;  %v3739_v27 = vperm.slane %v3733_v48, %v5652_v53  ;;  %v3721_v60 = vsel %vm1047_vm2, %v3720_v55, %v7598_v40  ;;  %v3758_v32 = vrot.slane %v7900_v37, 4 }
 0x6af   : > { %v3990_v11 = vrot.slane %v3963_v63, 4  ;;  %v4412_v56 = vrot.slane %v4399_v51, 4  ;;  %v4169_v40 = vsel %vm1047_vm2, 0.0, %v4168_v52  ;;  %v5333_v48 = vmov 1.0  }
 0x6b0   : > { %v3744_v24 = vrot.slane %v3739_v27, 4  ;;  %4729 = vst [vmem:[#allocation2 + $0x104] ss:$8 sm:$0xf] %v5333_v48 }
 0x6b1   : > { %v7977_v6 = vsel %vm1047_vm2, %v3975_v30, %v3990_v11  ;;  %4730 = vst [vmem:[#allocation2 + $0x104] ss:$8 sm:$0xf0] %v5333_v48 }
 0x6b3   : > { %4605 = vrot.lane.b32.xlu0 %v4411_v39, %s5330_s8  ;;  %4185 = vrot.lane.b32.xlu2 %v4003_v45, %s5331_s9  ;;  %v7953_v39 = vperm.slane %v4569_v59, %v5680_v8  ;;  %v3988_v45 = vrot.slane %v3975_v30, 4 }
 0x6b4   : > { %4181 = vrot.lane.b32.xlu1 %v3987_v54, %s5330_s8  ;;  %v4582_v54 = vrot.slane %v4555_v3, 4  ;;  %v3772_v3 = vrot.slane %v7918_v58, 4 }
 0x6b5   : > { %v4592_v20 = vrot.slane %v7953_v39, 4  ;;  %v3989_v35 = vsel %vm1047_vm2, %v3988_v45, %v3963_v63 }
 0x6b6   : > { %v4583_v49 = vsel %vm1047_vm2, %v7858_v61, %v4582_v54  ;;  %v4167_v61 = vperm.slane %v4159_v36, %v5680_v8  ;;  %v3773_v17 = vsel %vm1047_vm2, 0.0, %v3772_v3  ;;  %v3727_v54 = vperm.slane %v3721_v60, %v5652_v53 }
 0x6b7   : > { %v4591_v23 = vperm.slane %v4583_v49, %v5680_v8  ;;  %v4593_v46 = vsel %vm1047_vm2, 0.0, %v4592_v20  ;;  %v4155_v3 = vperm.slane %v4147_v50, %v5680_v8  ;;  %v8018_v52 = vperm.slane %v3989_v35, %v5680_v8 }
 0x6b8   : > { %v4174_v19 = vrot.slane %v4167_v61, 4  ;;  %v3745_v49 = vsel %vm1047_vm2, %v3744_v24, %v3727_v54  ;;  %v3746_v63 = vrot.slane %v3727_v54, 4 }
 0x6b9   : > { %v4598_v26 = vrot.slane %v4591_v23, 4  ;;  %v7994_v36 = vperm.slane %v3745_v49, %v5680_v8  ;;  %v4170_v45 = vrot.slane %v4155_v3, 4 }
 0x6ba   : > { %v4175_v28 = vsel %vm1047_vm2, 0.0, %v4174_v19 }
 0x6bb   : > { %4609 = vrot.lane.b32.xlu0 %v4427_v14, %s5331_s9  ;;  %4685 = vrot.lane.b32.xlu2 %v4597_v1, %s5332_s10  ;;  %v4413_v14 = vsel %vm1047_vm2, %v4412_v56, %v4387_v15  ;;  %v4414_v1 = vrot.slane %v4387_v15, 4  ;;  %v4599_v53 = vsel %vm1047_vm2, 0.0, %v4598_v26  ;;  %v3768_v7 = vrot.slane %v7994_v36, 4 }
 0x6bc   : > { %4261 = vrot.lane.b32.xlu1 %v4173_v0, %s5332_s10  ;;  %v3759_v0 = vsel %vm1047_vm2, %v7880_v31, %v3758_v32  ;;  %v4570_v31 = vrot.slane %v7931_v57, 4  ;;  %v3999_v32 = vperm.slane %v7977_v6, %v5680_v8 }
 0x6bd   : > { %v7989_v37 = vsel %vm1047_vm2, %v4399_v51, %v4414_v1  ;;  %v3767_v41 = vperm.slane %v3759_v0, %v5680_v8  ;;  %v3769_v62 = vsel %vm1047_vm2, 0.0, %v3768_v7  ;;  %v3747_v51 = vsel %vm1047_vm2, %v3739_v27, %v3746_v63  ;;  %v4739_v63 = vld [vmem:[#allocation2 + $0x18] sm:$0xff] }
 0x6be   : > { %v3755_v20 = vperm.slane %v3747_v51, %v5680_v8  ;;  %v8022_v27 = vperm.slane %v4413_v14, %v5680_v8  ;;  %v4006_v26 = vrot.slane %v3999_v32, 4  ;;  %v4423_v6 = vperm.slane %v7989_v37, %v5680_v8 }
 0x6bf   : > { %v3774_v59 = vrot.slane %v3767_v41, 4 }
 0x6c0   : > { %v4428_v35 = vrot.slane %v8022_v27, 4  ;;  %v3770_v44 = vrot.slane %v3755_v20, 4 }
 0x6c2   : > { %v4429_v14 = vsel %vm1047_vm2, 0.0, %v4428_v35 }
 0x6c3   : > { %4689 = vrot.lane.b32.xlu0 %v4591_v23, %s5330_s8  ;;  %3861 = vrot.lane.b32.xlu2 %v3773_v17, %s5332_s10  ;;  %v4571_v23 = vsel %vm1047_vm2, %v7911_v25, %v4570_v31 }
 0x6c4   : > { %4265 = vrot.lane.b32.xlu1 %v4167_v61, %s5330_s8  ;;  %v4579_v30 = vperm.slane %v4571_v23, %v5680_v8  ;;  %v3775_v61 = vsel %vm1047_vm2, 0.0, %v3774_v59 }
 0x6c5   : > { %v4218_v4 = vpop.permute.xlu2 %4217 }
 0x6c6   : > { %v4594_v5 = vrot.slane %v4579_v30, 4 }
 0x6c8   : > { %v4595_v15 = vsel %vm1047_vm2, 0.0, %v4594_v5 }
 0x6cb   : > { %4269 = vrot.lane.b32.xlu0 %v4175_v28, %s5331_s9  ;;  %4673 = vrot.lane.b32.xlu2 %v4593_v46, %s5332_s10  ;;  %v4004_v28 = vrot.slane %v8018_v52, 4 }
 0x6cc   : > { %4249 = vrot.lane.b32.xlu1 %v4169_v40, %s5332_s10  ;;  %v3771_v40 = vsel %vm1047_vm2, 0.0, %v3770_v44 }
 0x6cd   : > { %v4222_v38 = vpop.permute.xlu2 %4221  ;;  %v4005_v46 = vsel %vm1047_vm2, 0.0, %v4004_v28 }
 0x6d3   : > { %3865 = vrot.lane.b32.xlu0 %v3767_v41, %s5330_s8  ;;  %4253 = vrot.lane.b32.xlu2 %v4155_v3, %s5330_s8  ;;  %v4007_v41 = vsel %vm1047_vm2, 0.0, %v4006_v26 }
 0x6d4   : > { %4693 = vrot.lane.b32.xlu1 %v4599_v53, %s5331_s9 }
 0x6d5   : > { %v4206_v47 = vpop.permute.xlu2 %4205 }
 0x6db   : > { %3849 = vrot.lane.b32.xlu0 %v3769_v62, %s5332_s10  ;;  %3869 = vrot.lane.b32.xlu2 %v3775_v61, %s5331_s9 }
 0x6dc   : > { %4677 = vrot.lane.b32.xlu1 %v4579_v30, %s5330_s8  ;;  %v4430_v30 = vrot.slane %v4423_v6, 4 }
 0x6dd   : > { %v4638_v57 = vpop.permute.xlu0 %4637  ;;  %v4634_v17 = vpop.permute.xlu2 %4633 }
 0x6de   : > { %v4214_v25 = vpop.permute.xlu1 %4213  ;;  %v4705_v1 = vsel %vm1367_vm3, %v7659_v12, %v4638_v57  ;;  %v4431_v48 = vsel %vm1047_vm2, 0.0, %v4430_v30  ;;  %v4747_v57 = vld [vmem:[#allocation2 + $0x58] sm:$0xff] }
 0x6df   : > { %v4281_v55 = vsel %vm1367_vm3, %v7667_v13, %v4214_v25  ;;  %v4171_v13 = vsel %vm1047_vm2, 0.0, %v4170_v45 }
 0x6e0   : > { %v4282_v19 = vsel %vm1369_vm4, %v4281_v55, %v4218_v4 }
 0x6e1   : > { %v4283_v11 = vsel %vm1371_vm5, %v4282_v19, %v4222_v38 }
 0x6e2   : > { %v4307_v56 = vrot.slane %v4283_v11, 4 }
 0x6e3   : > { %4681 = vrot.lane.b32.xlu0 %v4595_v15, %s5331_s9  ;;  %3853 = vrot.lane.b32.xlu2 %v3755_v20, %s5330_s8  ;;  %v4754_v20 = vld [vmem:[#allocation2 + $0x90] sm:$0xff] }
 0x6e4   : > { %4323 = vst [vmem:[#allocation2 + $0xd8] sm:$0xf0] %v4307_v56  ;;  %4257 = vrot.lane.b32.xlu1 %v4171_v13, %s5331_s9 }
 0x6e5   : > { %v4202_v4 = vpop.permute.xlu0 %4201  ;;  %v4242_v60 = vpop.permute.xlu2 %4241 }
 0x6e6   : > { %v4642_v24 = vpop.permute.xlu1 %4641  ;;  %v4278_v12 = vsel %vm1367_vm3, %v7678_v21, %v4202_v4  ;;  %v4746_v4 = vld [vmem:[#allocation2 + $0x50] sm:$0xff] }
 0x6e7   : > { %v4706_v54 = vsel %vm1369_vm4, %v4705_v1, %v4642_v24  ;;  %v4279_v3 = vsel %vm1369_vm4, %v4278_v12, %v4206_v47  ;;  %v4755_v47 = vld [vmem:[#allocation2 + $0x98] sm:$0xff]  ;;  %v4738_v24 = vld [vmem:[#allocation2 + $0x10] sm:$0xff] }
 0x6eb   : > { %4189 = vrot.lane.b32.xlu0 %v4005_v46, %s5332_s10  ;;  %4613 = vrot.lane.b32.xlu2 %v4429_v14, %s5332_s10  ;;  %v4763_v62 = vld [vmem:[#allocation2 + $0xd8] sm:$0xff]  ;;  %s5266_s10 = scalar_lea.hbm %s8196_s4, 64 }
 0x6ec   : > { %3857 = vrot.lane.b32.xlu1 %v3771_v40, %s5331_s9 }
 0x6ed   : > { %v4646_v38 = vpop.permute.xlu0 %4645  ;;  %v4246_v50 = vpop.permute.xlu2 %4245 }
 0x6ee   : > { %v4707_v0 = vsel %vm1371_vm5, %v4706_v54, %v4646_v38  ;;  %v4626_v49 = vpop.permute.xlu1 %4625 }
 0x6ef   : > { %4723 = vst [vmem:[#allocation2 + $0x118] sm:$0xf] %v4707_v0  ;;  %v4702_v8 = vsel %vm1367_vm3, %v7700_v10, %v4626_v49 }
 0x6f3   : > { %4617 = vrot.lane.b32.xlu0 %v4423_v6, %s5330_s8  ;;  %4197 = vrot.lane.b32.xlu2 %v4007_v41, %s5331_s9 }
 0x6f4   : > { %4193 = vrot.lane.b32.xlu1 %v3999_v32, %s5330_s8  ;;  %s5262_s8 = scalar_lea.hbm %s5261_s7, 32 }
 0x6f5   : > { %v4210_v53 = vpop.permute.xlu0 %4209  ;;  %v4230_v7 = vpop.permute.xlu2 %4229  ;;  %p5263_p12 = scmp.ne.s32.totalorder %s5261_s7, %s5262_s8  ;;  %p5268_p2 = scmp.lt.s32.totalorder %s5266_s10, %s5262_s8 }
 0x6f6   : > { %v4280_v31 = vsel %vm1371_vm5, %v4279_v3, %v4210_v53  ;;  %v4771_v59 = vld [vmem:[#allocation2 + $0x118] sm:$0x1f]  ;;  %v4630_v37 = vpop.permute.xlu1 %4629  ;;  %v4757_v3 = vld [vmem:[#allocation2 + $0xa8] sm:$0xff] }
 0x6f7   : > { %v4306_v21 = vrot.slane %v4280_v31, 4  ;;  %5155 = vmatpush.msk.msrb.mxu3 %vm4780_vm7, %v4771_v59  ;;  %v4703_v23 = vsel %vm1369_vm4, %v4702_v8, %v4630_v37  ;;  %v4741_v53 = vld [vmem:[#allocation2 + $0x28] sm:$0xff]  ;;  %p5264_p13 = pnand %p5263_p12, %p5399_p4  ;;  %p5269_p3 = por %p5268_p2, %p5267_p1 }
 0x6f8   : > { %v4704_v61 = vsel %vm1371_vm5, %v4703_v23, %v4634_v17 }
 0x6f9   : > { %4322 = vst [vmem:[#allocation2 + $0xd0] sm:$0xf0] %v4306_v21  ;;  %4877 = vmatpush.msrb.mxu3 %v4763_v62  ;;  %p5265_p0 = pneg %p5264_p13 }
 0x6fa   : > { %4722 = vst [vmem:[#allocation2 + $0x110] sm:$0xf] %v4704_v61  ;;  %v4756_v61 = vld [vmem:[#allocation2 + $0xa0] sm:$0xff] }
 0x6fb   : > { %4878 = vmatpush.msrb.mxu3 %v4755_v47  ;;  %p5270_p5 = pnand %p5269_p3, %p5265_p0 }
 0x6fc   : > { %4621 = vrot.lane.b32.xlu1 %v4431_v48, %s5331_s9 }
 0x6fd   : > { %v4662_v10 = vpop.permute.xlu0 %4661  ;;  %4879 = vmatpush.msrb.mxu3 %v4747_v57  ;;  %v4234_v25 = vpop.permute.xlu2 %4233  ;;  %v4748_v57 = vld [vmem:[#allocation2 + $0x60] sm:$0xff] }
 0x6fe   : > { %v4238_v5 = vpop.permute.xlu1 %4237  ;;  %v4711_v44 = vsel %vm1367_vm3, %v7745_v2, %v4662_v10 }
 0x6ff   : > { %4880 = vmatpush.msrb.mxu3 %v4739_v63  ;;  %v4287_v51 = vsel %vm1367_vm3, %v7752_v33, %v4238_v5  ;;  %v4740_v63 = vld [vmem:[#allocation2 + $0x20] sm:$0xff]  ;;  %v8092_v5 = vld [vmem:[%s8195_s3] sm:$0xf] }
 0x700   : > { %v4288_v17 = vsel %vm1369_vm4, %v4287_v51, %v4242_v60  ;;  %v4762_v11 = vld [vmem:[#allocation2 + $0xd0] sm:$0xff]  ;;  %5156 = vmatmul.msk.f32.vlgmr.msrb.gmra.mxu3 %vm4776_vm8, %v8092_v5 }
 0x701   : > { %v4770_v55 = vld [vmem:[#allocation2 + $0x110] sm:$0x1f]  ;;  %v4289_v45 = vsel %vm1371_vm5, %v4288_v17, %v4246_v50 }
 0x702   : > { %5153 = vmatpush.msk.msrb.mxu2 %vm4780_vm7, %v4770_v55  ;;  %v4309_v19 = vrot.slane %v4289_v45, 4  ;;  %v4752_v45 = vld [vmem:[#allocation2 + $0x80] sm:$0xff] }
 0x704   : > { %4857 = vmatpush.msrb.mxu2 %v4762_v11  ;;  %4325 = vst [vmem:[#allocation2 + $0xe8] sm:$0xf0] %v4309_v19 }
 0x705   : > { %v4226_v15 = vpop.permute.xlu0 %4225  ;;  %v4602_v35 = vpop.permute.xlu2 %4601 }
 0x706   : > { %v4284_v56 = vsel %vm1367_vm3, %v7774_v22, %v4226_v15  ;;  %4858 = vmatpush.msrb.mxu2 %v4754_v20  ;;  %v4666_v33 = vpop.permute.xlu1 %4665  ;;  %v4696_v30 = vsel %vm1367_vm3, %v7846_v43, %v4602_v35  ;;  %v4744_v15 = vld [vmem:[#allocation2 + $0x40] sm:$0xff] }
 0x707   : > { %v4285_v13 = vsel %vm1369_vm4, %v4284_v56, %v4230_v7  ;;  %v4712_v46 = vsel %vm1369_vm4, %v4711_v44, %v4666_v33  ;;  %v4736_v33 = vld [vmem:[#allocation2] sm:$0xff] }
 0x708   : > { %v4286_v60 = vsel %vm1371_vm5, %v4285_v13, %v4234_v25  ;;  %4859 = vmatpush.msrb.mxu2 %v4746_v4 }
 0x709   : > { %v4308_v28 = vrot.slane %v4286_v60, 4 }
 0x70a   : > { %4860 = vmatpush.msrb.mxu2 %v4738_v24 }
 0x70b   : > { %4324 = vst [vmem:[#allocation2 + $0xe0] sm:$0xf0] %v4308_v28  ;;  %5154 = vmatmul.msk.f32.vlgmr.msrb.gmra.mxu2 %vm4776_vm8, %v8092_v5 }
 0x70d   : > { %v4670_v14 = vpop.permute.xlu0 %4669  ;;  %v4186_v1 = vpop.permute.xlu2 %4185 }
 0x70e   : > { %v4713_v22 = vsel %vm1371_vm5, %v4712_v46, %v4670_v14  ;;  %v4650_v32 = vpop.permute.xlu1 %4649 }
 0x70f   : > { %4725 = vst [vmem:[#allocation2 + $0x128] sm:$0xf] %v4713_v22  ;;  %v4708_v2 = vsel %vm1367_vm3, %v7801_v34, %v4650_v32 }
 0x712   : > { %v4764_v62 = vld [vmem:[#allocation2 + $0xe0] sm:$0xff] }
 0x715   : > { %v3846_v40 = vpop.permute.xlu0 %3845  ;;  %v8076_v49 = vpop.permute.xlu2 %4685 }
 0x716   : > { %v3889_v54 = vsel %vm1371_vm5, %v7641_v42, %v3846_v40  ;;  %v4773_v38 = vld [vmem:[#allocation2 + $0x128] sm:$0x1f]  ;;  %v4654_v0 = vpop.permute.xlu1 %4653 }
 0x717   : > { %3901 = vst [vmem:[#allocation2 + $0xe8] sm:$0xf] %v3889_v54  ;;  %5159 = vmatpush.msk.msra.mxu3 %vm4780_vm7, %v4773_v38  ;;  %v4709_v6 = vsel %vm1369_vm4, %v4708_v2, %v4654_v0  ;;  %v4749_v42 = vld [vmem:[#allocation2 + $0x68] sm:$0xff] }
 0x71d   : > { %v4178_v50 = vpop.permute.xlu0 %4177  ;;  %v3862_v59 = vpop.permute.xlu2 %3861 }
 0x71e   : > { %v4765_v26 = vld [vmem:[#allocation2 + $0xe8] sm:$0xff]  ;;  %v4658_v12 = vpop.permute.xlu1 %4657  ;;  %v4272_v34 = vsel %vm1367_vm3, %v7839_v16, %v4178_v50  ;;  %v3893_v28 = vsel %vm1367_vm3, %v7918_v58, %v3862_v59  ;;  %v4759_v50 = vld [vmem:[#allocation2 + $0xb8] sm:$0xff] }
 0x71f   : > { %4917 = vmatpush.msra.mxu3 %v4765_v26  ;;  %v4710_v41 = vsel %vm1371_vm5, %v4709_v6, %v4658_v12  ;;  %v4751_v6 = vld [vmem:[#allocation2 + $0x78] sm:$0xff] }
 0x720   : > { %4724 = vst [vmem:[#allocation2 + $0x120] sm:$0xf] %v4710_v41 }
 0x721   : > { %4918 = vmatpush.msra.mxu3 %v4757_v3 }
 0x723   : > { %4919 = vmatpush.msra.mxu3 %v4749_v42 }
 0x725   : > { %v4606_v31 = vpop.permute.xlu0 %4605  ;;  %4920 = vmatpush.msra.mxu3 %v4741_v53  ;;  %v4674_v43 = vpop.permute.xlu2 %4673 }
 0x726   : > { %v4182_v7 = vpop.permute.xlu1 %4181  ;;  %v4697_v47 = vsel %vm1369_vm4, %v4696_v30, %v4606_v31  ;;  %5160 = vmatmul.msk.f32.vlgmr.msra.gmra.mxu3 %vm4776_vm8, %v8092_v5 }
 0x727   : > { %v4273_v8 = vsel %vm1369_vm4, %v4272_v34, %v4182_v7  ;;  %v4772_v21 = vld [vmem:[#allocation2 + $0x120] sm:$0x1f] }
 0x728   : > { %v4274_v37 = vsel %vm1371_vm5, %v4273_v8, %v4186_v1  ;;  %5157 = vmatpush.msk.msra.mxu2 %vm4780_vm7, %v4772_v21 }
 0x729   : > { %v4304_v23 = vrot.slane %v4274_v37, 4 }
 0x72a   : > { %4897 = vmatpush.msra.mxu2 %v4764_v62 }
 0x72b   : > { %4320 = vst [vmem:[#allocation2 + $0xc0] sm:$0xf0] %v4304_v23 }
 0x72c   : > { %4898 = vmatpush.msra.mxu2 %v4756_v61 }
 0x72d   : > { %v4610_v16 = vpop.permute.xlu0 %4609  ;;  %v4254_v19 = vpop.permute.xlu2 %4253 }
 0x72e   : > { %v4698_v48 = vsel %vm1371_vm5, %v4697_v47, %v4610_v16  ;;  %4899 = vmatpush.msra.mxu2 %v4748_v57  ;;  %v4262_v10 = vpop.permute.xlu1 %4261  ;;  %v4758_v47 = vld [vmem:[#allocation2 + $0xb0] sm:$0xff] }
 0x72f   : > { %4720 = vst [vmem:[#allocation2 + $0x100] sm:$0xf] %v4698_v48  ;;  %v4293_v11 = vsel %vm1367_vm3, %v7897_v29, %v4262_v10  ;;  %v4717_v29 = vsel %vm1367_vm3, %v7892_v18, %v8076_v49  ;;  %v4714_v18 = vsel %vm1367_vm3, %v7953_v39, %v4674_v43  ;;  %v4743_v39 = vld [vmem:[#allocation2 + $0x38] sm:$0xff]  ;;  %v4750_v48 = vld [vmem:[#allocation2 + $0x70] sm:$0xff] }
 0x730   : > { %4900 = vmatpush.msra.mxu2 %v4740_v63  ;;  %v4742_v10 = vld [vmem:[#allocation2 + $0x30] sm:$0xff] }
 0x731   : > { %5158 = vmatmul.msk.f32.vlgmr.msra.gmra.mxu2 %vm4776_vm8, %v8092_v5 }
 0x732   : > { %v4760_v55 = vld [vmem:[#allocation2 + $0xc0] sm:$0xff] }
 0x735   : > { %v4690_v25 = vpop.permute.xlu0 %4689  ;;  %v3870_v35 = vpop.permute.xlu2 %3869 }
 0x736   : > { %v4768_v51 = vld [vmem:[#allocation2 + $0x100] sm:$0x1f]  ;;  %v4266_v17 = vpop.permute.xlu1 %4265  ;;  %v4718_v46 = vsel %vm1369_vm4, %v4717_v29, %v4690_v25 }
 0x737   : > { %5149 = vmatpush.msk.msrb.mxu0 %vm4780_vm7, %v4768_v51  ;;  %v4294_v20 = vsel %vm1369_vm4, %v4293_v11, %v4266_v17  ;;  %v4753_v17 = vld [vmem:[#allocation2 + $0x88] sm:$0xff] }
 0x739   : > { %4817 = vmatpush.msrb.mxu0 %v4760_v55  ;;  %v4737_v55 = vld [vmem:[#allocation2 + $0x8] sm:$0xff] }
 0x73b   : > { %4818 = vmatpush.msrb.mxu0 %v4752_v45 }
 0x73d   : > { %v4270_v56 = vpop.permute.xlu0 %4269  ;;  %4819 = vmatpush.msrb.mxu0 %v4744_v15  ;;  %v3854_v38 = vpop.permute.xlu2 %3853 }
 0x73e   : > { %v4295_v13 = vsel %vm1371_vm5, %v4294_v20, %v4270_v56  ;;  %v4250_v60 = vpop.permute.xlu1 %4249 }
 0x73f   : > { %v4311_v4 = vrot.slane %v4295_v13, 4  ;;  %4820 = vmatpush.msrb.mxu0 %v4736_v33  ;;  %v4290_v0 = vsel %vm1367_vm3, %v7959_v9, %v4250_v60 }
 0x740   : > { %5150 = vmatmul.msk.f32.vlgmr.msrb.gmra.mxu0 %vm4776_vm8, %v8092_v5  ;;  %v4291_v12 = vsel %vm1369_vm4, %v4290_v0, %v4254_v19 }
 0x741   : > { %4327 = vst [vmem:[#allocation2 + $0xf8] sm:$0xf0] %v4311_v4 }
 0x745   : > { %v3866_v24 = vpop.permute.xlu0 %3865  ;;  %v4614_v53 = vpop.permute.xlu2 %4613 }
 0x746   : > { %v3894_v44 = vsel %vm1369_vm4, %v3893_v28, %v3866_v24  ;;  %v4694_v22 = vpop.permute.xlu1 %4693  ;;  %v4699_v57 = vsel %vm1367_vm3, %v8022_v27, %v4614_v53  ;;  %v4745_v27 = vld [vmem:[#allocation2 + $0x48] sm:$0xff] }
 0x747   : > { %v3895_v14 = vsel %vm1371_vm5, %v3894_v44, %v3870_v35  ;;  %v4719_v32 = vsel %vm1371_vm5, %v4718_v46, %v4694_v22 }
 0x748   : > { %3903 = vst [vmem:[#allocation2 + $0xf8] sm:$0xf] %v3895_v14 }
 0x749   : > { %4727 = vst [vmem:[#allocation2 + $0x138] sm:$0xf] %v4719_v32 }
 0x74d   : > { %v3850_v1 = vpop.permute.xlu0 %3849  ;;  %v4198_v23 = vpop.permute.xlu2 %4197 }
 0x74e   : > { %v4678_v40 = vpop.permute.xlu1 %4677  ;;  %v3890_v9 = vsel %vm1367_vm3, %v7994_v36, %v3850_v1 }
 0x74f   : > { %v4767_v54 = vld [vmem:[#allocation2 + $0xf8] sm:$0xff]  ;;  %v4715_v2 = vsel %vm1369_vm4, %v4714_v18, %v4678_v40  ;;  %v3891_v34 = vsel %vm1369_vm4, %v3890_v9, %v3854_v38 }
 0x750   : > { %v4775_v58 = vld [vmem:[#allocation2 + $0x138] sm:$0x1f] }
 0x751   : > { %5163 = vmatpush.msk.msrb.mxu3 %vm4780_vm7, %v4775_v58 }
 0x753   : > { %4957 = vmatpush.msrb.mxu3 %v4767_v54 }
 0x755   : > { %4958 = vmatpush.msrb.mxu3 %v4759_v50  ;;  %v4682_v49 = vpop.permute.xlu0 %4681 }
 0x756   : > { %v4716_v26 = vsel %vm1371_vm5, %v4715_v2, %v4682_v49  ;;  %v4258_v41 = vpop.permute.xlu1 %4257 }
 0x757   : > { %4726 = vst [vmem:[#allocation2 + $0x130] sm:$0xf] %v4716_v26  ;;  %4959 = vmatpush.msrb.mxu3 %v4751_v6  ;;  %v4292_v3 = vsel %vm1371_vm5, %v4291_v12, %v4258_v41 }
 0x758   : > { %v4310_v42 = vrot.slane %v4292_v3, 4 }
 0x759   : > { %4960 = vmatpush.msrb.mxu3 %v4743_v39 }
 0x75a   : > { %5164 = vmatmul.msk.f32.vlgmr.msrb.gmra.mxu3 %vm4776_vm8, %v8092_v5  ;;  %4326 = vst [vmem:[#allocation2 + $0xf0] sm:$0xf0] %v4310_v42 }
 0x75d   : > { %v4190_v8 = vpop.permute.xlu0 %4189 }
 0x75e   : > { %v4774_v31 = vld [vmem:[#allocation2 + $0x130] sm:$0x1f]  ;;  %v3858_v7 = vpop.permute.xlu1 %3857  ;;  %v4275_v21 = vsel %vm1367_vm3, %v8018_v52, %v4190_v8 }
 0x75f   : > { %5161 = vmatpush.msk.msrb.mxu2 %vm4780_vm7, %v4774_v31  ;;  %v3892_v59 = vsel %vm1371_vm5, %v3891_v34, %v3858_v7 }
 0x760   : > { %3902 = vst [vmem:[#allocation2 + $0xf0] sm:$0xf] %v3892_v59 }
 0x765   : > { %v4618_v16 = vpop.permute.xlu0 %4617 }
 0x766   : > { %v4194_v37 = vpop.permute.xlu1 %4193  ;;  %v4700_v52 = vsel %vm1369_vm4, %v4699_v57, %v4618_v16 }
 0x767   : > { %v4276_v62 = vsel %vm1369_vm4, %v4275_v21, %v4194_v37  ;;  %v4766_v30 = vld [vmem:[#allocation2 + $0xf0] sm:$0xff] }
 0x768   : > { %v4277_v36 = vsel %vm1371_vm5, %v4276_v62, %v4198_v23  ;;  %4937 = vmatpush.msrb.mxu2 %v4766_v30 }
 0x769   : > { %v4305_v61 = vrot.slane %v4277_v36, 4 }
 0x76a   : > { %4938 = vmatpush.msrb.mxu2 %v4758_v47 }
 0x76b   : > { %4321 = vst [vmem:[#allocation2 + $0xc8] sm:$0xf0] %v4305_v61 }
 0x76c   : > { %4939 = vmatpush.msrb.mxu2 %v4750_v48 }
 0x76e   : > { %4940 = vmatpush.msrb.mxu2 %v4742_v10  ;;  %v4622_v63 = vpop.permute.xlu1 %4621 }
 0x76f   : > { %v4701_v43 = vsel %vm1371_vm5, %v4700_v52, %v4622_v63  ;;  %5162 = vmatmul.msk.f32.vlgmr.msrb.gmra.mxu2 %vm4776_vm8, %v8092_v5 }
 0x770   : > { %4721 = vst [vmem:[#allocation2 + $0x108] sm:$0xf] %v4701_v43 }
 0x772   : > { %v4761_v51 = vld [vmem:[#allocation2 + $0xc8] sm:$0xff] }
 0x777   : > { %v4769_v25 = vld [vmem:[#allocation2 + $0x108] sm:$0x1f] }
 0x778   : > { %5151 = vmatpush.msk.msra.mxu0 %vm4780_vm7, %v4769_v25 }
 0x77a   : > { %4837 = vmatpush.msra.mxu0 %v4761_v51 }
 0x77c   : > { %4838 = vmatpush.msra.mxu0 %v4753_v17 }
 0x77e   : > { %4839 = vmatpush.msra.mxu0 %v4745_v27 }
 0x780   : > { %4840 = vmatpush.msra.mxu0 %v4737_v55 }
 0x781   : > { %5152 = vmatmul.msk.f32.vlgmr.msra.gmra.mxu0 %vm4776_vm8, %v8092_v5 }
 0x783   : > { %v4882_v45 = vpop.f32.mrf.mxu3 }
 0x784   : > { %v4974_v19 = vrot.slane %v4882_v45, 4 }
 0x78e   : > { %v4862_v11 = vpop.f32.mrf.mxu2 }
 0x78f   : > { %v4979_v15 = vsel %vm4977_vm9, %v4862_v11, %v4974_v19 }
 0x790   : > { %5002 = vst [vmem:[%s226_s21 + $0x8] sm:$0xff] %v4979_v15 }
 0x7a9   : > { %v4922_v20 = vpop.f32.mrf.mxu3 }
 0x7aa   : > { %v4975_v56 = vrot.slane %v4922_v20, 4 }
 0x7b4   : > { %v4902_v13 = vpop.f32.mrf.mxu2 }
 0x7b5   : > { %v4980_v33 = vsel %vm4977_vm9, %v4902_v13, %v4975_v56 }
 0x7b6   : > { %5003 = vst [vmem:[%s226_s21 + $0x10] sm:$0xff] %v4980_v33 }
 0x7bd   : > { %v4822_v24 = vpop.f32.mrf.mxu0 }
 0x7dd   : > { %v4962_v4 = vpop.f32.mrf.mxu3 }
 0x7de   : > { %v4976_v5 = vrot.slane %v4962_v4, 4 }
 0x7f2   : > { %v4942_v60 = vpop.f32.mrf.mxu2 }
 0x7f3   : > { %v4981_v28 = vsel %vm4977_vm9, %v4942_v60, %v4976_v5 }
 0x7f4   : > { %5004 = vst [vmem:[%s226_s21 + $0x18] sm:$0xff] %v4981_v28 }
 0x7fe   : > { %v4842_v29 = vpop.f32.mrf.mxu0 }
 0x7ff   : > { %v4973_v35 = vrot.slane %v4842_v29, 4 }
 0x801   : > { %v4978_v44 = vsel %vm4977_vm9, %v4822_v24, %v4973_v35 }
 0x802   : > { %5001 = vst [vmem:[%s226_s21] sm:$0xff] %v4978_v44 }
 0x803   : > { %5273 = shalt.err (!%p5270_p5)
}
 0x804   : > { %5182 = dma.vmem_to_hbm [thread:$0]  (%p5399_p4), %s5020_s30, 512, %s5022_s5, %s5006_s6  }
 0x805 PF: > { %p5188_p6 = scmp.ge.s32.totalorder %s5324_s20, 2  ;;  %s5033_s13 = sand.u32 1, %s5304_s15  }
 0x806   : > { %s5034_s14 = scalar_lea.sflag [#allocation5], %s5033_s13 }
 0x807   : > { %p5185_p7 = pnand %p5188_p6, %p5406_p8 }
 0x809   : > { %p5186_p9 = pneg %p5185_p7 }
 0x80b   : > { %5299 = dma.done.wait (%p5186_p9), %s5034_s14, 512  }
 0x80c   : > { %5301 = vsyncadd (%p5186_p9), %s5034_s14, 4294966784  ;;  %s17_s20 = sadd.s32 1, %s5324_s20   ;;  %s8383_s15 = smov %s5308_s16 }
 0x80d   : > { %p14_p10 = scmp.ge.s32.totalorder %s17_s20, 4   ;;  %s8384_s16 = smov %s5312_s17 }
 0x80e   : > { %s8385_s17 = smov %s5412_s28  ;;  %s8386_s18 = smov %s5320_s19 }
 0x80f   : > { %s8387_s19 = smov %s8389_s23  ;;  %16 = sbr.rel (!%p14_p10) target bundleno = 4 (0x4), region = 97 }
 0x814   :  { %5040 = vsyncpa [#allocation5], 1 }
 0x815   :  { %5042 = vsyncpa [#allocation5 + $0x1], 1 }

</bundles_post_ra>
